<compile_context>
chip_gen: v5e
topology: v5e:2x2
jax: 0.10.0
libtpu: 0.0.40
codegen_flags: <defaults>
</compile_context>

<pallas_src>
import functools

import jax
import jax.numpy as jnp
from jax.experimental import pallas as pl
from jax.experimental.pallas import tpu as pltpu


# ----------------------------------------------------------------------------
# Pallas kernels
# ----------------------------------------------------------------------------

def _layernorm_f32(x, g, b):
    mean = jnp.mean(x, axis=-1, keepdims=True)
    var = jnp.mean((x - mean) ** 2, axis=-1, keepdims=True)
    y = (x - mean) * jax.lax.rsqrt(var + 1e-5)     # CLIP layer_norm_eps = 1e-5
    return y * g + b


def _ln_qkv_kernel(x_ref, g_ref, b_ref, w_ref, wb_ref, o_ref):
    """Fused LayerNorm + QKV projection for one batch element: (S, D) -> (S, 3D)."""
    x = x_ref[0].astype(jnp.float32)                         # (S, D)
    h = _layernorm_f32(x, g_ref[...], b_ref[...])            # f32 stats / affine
    y = jnp.dot(h.astype(jnp.bfloat16), w_ref[...].astype(jnp.bfloat16),
                preferred_element_type=jnp.float32)          # bf16 MXU, f32 acc
    y = y + wb_ref[...]
    o_ref[0] = y.astype(o_ref.dtype)


def _attention_kernel(q_ref, k_ref, v_ref, o_ref, *, causal):
    """All heads of one batch element per grid step. 1/sqrt(Dh) is folded into q_w."""
    q = q_ref[0].astype(jnp.bfloat16)                        # (H, S, Dh)
    k = k_ref[0].astype(jnp.bfloat16)
    v = v_ref[0].astype(jnp.bfloat16)
    s = jnp.einsum("hqd,hkd->hqk", q, k, preferred_element_type=jnp.float32)
    if causal:
        H, S, _ = s.shape
        row = jax.lax.broadcasted_iota(jnp.int32, (H, S, S), 1)
        col = jax.lax.broadcasted_iota(jnp.int32, (H, S, S), 2)
        s = jnp.where(col <= row, s, jnp.float32(-1e9))      # in-kernel mask (no DMA)
    s = s - jnp.max(s, axis=-1, keepdims=True)
    p = jnp.exp(s)
    p = p * pl.reciprocal(jnp.sum(p, axis=-1, keepdims=True), approx=True)
    o = jnp.einsum("hqk,hkd->hqd", p.astype(jnp.bfloat16), v,
                   preferred_element_type=jnp.float32)
    o_ref[0] = o.astype(o_ref.dtype)


def _proj_res_kernel(x_ref, res_ref, w_ref, b_ref, o_ref):
    """Fused output projection + residual add: out = res + x @ w + b."""
    y = jnp.dot(x_ref[0].astype(jnp.bfloat16), w_ref[...].astype(jnp.bfloat16),
                preferred_element_type=jnp.float32)
    y = y + b_ref[...] + res_ref[0].astype(jnp.float32)
    o_ref[0] = y.astype(o_ref.dtype)


def _ln_mlp_res_kernel(x_ref, g_ref, b_ref, w1_ref, b1_ref, w2_ref, b2_ref, o_ref):
    """Fused LN2 + fc1 + quick-GELU + fc2 + residual add."""
    x = x_ref[0].astype(jnp.float32)                         # (S, D)
    h = _layernorm_f32(x, g_ref[...], b_ref[...])
    h1 = jnp.dot(h.astype(jnp.bfloat16), w1_ref[...].astype(jnp.bfloat16),
                 preferred_element_type=jnp.float32) + b1_ref[...]
    h1 = h1 * jax.nn.sigmoid(1.702 * h1)                     # quick_gelu, f32 VPU/EUP
    y = jnp.dot(h1.astype(jnp.bfloat16), w2_ref[...].astype(jnp.bfloat16),
                preferred_element_type=jnp.float32) + b2_ref[...]
    o_ref[0] = (x + y).astype(o_ref.dtype)


def _linear_kernel(*refs, has_bias, activation):
    if has_bias:
        x_ref, w_ref, b_ref, o_ref = refs
    else:
        x_ref, w_ref, o_ref = refs
    y = jnp.dot(x_ref[...].astype(jnp.bfloat16), w_ref[...].astype(jnp.bfloat16),
                preferred_element_type=jnp.float32)
    if has_bias:
        y = y + b_ref[...]
    if activation == "quick_gelu":
        y = y * jax.nn.sigmoid(1.702 * y)
    o_ref[...] = y.astype(o_ref.dtype)


def _layernorm_kernel(x_ref, g_ref, b_ref, o_ref):
    x = x_ref[...].astype(jnp.float32)
    o_ref[...] = _layernorm_f32(x, g_ref[...], b_ref[...]).astype(o_ref.dtype)


def _ln_proj_kernel(x_ref, g_ref, b_ref, w_ref, ln_ref, proj_ref):
    """Fused post-LayerNorm (pooled CLS) + visual projection; emits both outputs."""
    x = x_ref[...].astype(jnp.float32)
    h = _layernorm_f32(x, g_ref[...], b_ref[...])
    ln_ref[...] = h.astype(ln_ref.dtype)
    proj_ref[...] = jnp.dot(h.astype(jnp.bfloat16), w_ref[...].astype(jnp.bfloat16),
                            preferred_element_type=jnp.float32).astype(proj_ref.dtype)


# ----------------------------------------------------------------------------
# Pallas wrappers (grids / BlockSpecs)
# ----------------------------------------------------------------------------

_PARALLEL = pltpu.CompilerParams(dimension_semantics=("parallel",))


def ln_qkv(x, g, b, w, wb):
    B, S, D = x.shape
    N = w.shape[1]
    return pl.pallas_call(
        _ln_qkv_kernel,
        out_shape=jax.ShapeDtypeStruct((B, S, N), x.dtype),
        grid=(B,),
        in_specs=[
            pl.BlockSpec((1, S, D), lambda i: (i, 0, 0)),
            pl.BlockSpec((1, D), lambda i: (0, 0)),
            pl.BlockSpec((1, D), lambda i: (0, 0)),
            pl.BlockSpec((D, N), lambda i: (0, 0)),
            pl.BlockSpec((1, N), lambda i: (0, 0)),
        ],
        out_specs=pl.BlockSpec((1, S, N), lambda i: (i, 0, 0)),
        compiler_params=_PARALLEL,
    )(x, g.reshape(1, D), b.reshape(1, D), w, wb.reshape(1, N))


def multi_head_attention(q, k, v, *, causal):
    """q/k/v: (B, H, S, Dh); grid over batch, all heads per step."""
    B, H, S, Dh = q.shape
    spec = pl.BlockSpec((1, H, S, Dh), lambda i: (i, 0, 0, 0))
    return pl.pallas_call(
        functools.partial(_attention_kernel, causal=causal),
        out_shape=jax.ShapeDtypeStruct((B, H, S, Dh), q.dtype),
        grid=(B,),
        in_specs=[spec, spec, spec],
        out_specs=spec,
        compiler_params=_PARALLEL,
    )(q, k, v)


def proj_residual(x, res, w, b):
    B, S, D = x.shape
    N = w.shape[1]
    return pl.pallas_call(
        _proj_res_kernel,
        out_shape=jax.ShapeDtypeStruct((B, S, N), x.dtype),
        grid=(B,),
        in_specs=[
            pl.BlockSpec((1, S, D), lambda i: (i, 0, 0)),
            pl.BlockSpec((1, S, N), lambda i: (i, 0, 0)),
            pl.BlockSpec((D, N), lambda i: (0, 0)),
            pl.BlockSpec((1, N), lambda i: (0, 0)),
        ],
        out_specs=pl.BlockSpec((1, S, N), lambda i: (i, 0, 0)),
        compiler_params=_PARALLEL,
    )(x, res, w, b.reshape(1, N))


def ln_mlp_residual(x, g, b, w1, b1, w2, b2):
    B, S, D = x.shape
    I = w1.shape[1]
    return pl.pallas_call(
        _ln_mlp_res_kernel,
        out_shape=jax.ShapeDtypeStruct((B, S, D), x.dtype),
        grid=(B,),
        in_specs=[
            pl.BlockSpec((1, S, D), lambda i: (i, 0, 0)),
            pl.BlockSpec((1, D), lambda i: (0, 0)),
            pl.BlockSpec((1, D), lambda i: (0, 0)),
            pl.BlockSpec((D, I), lambda i: (0, 0)),
            pl.BlockSpec((1, I), lambda i: (0, 0)),
            pl.BlockSpec((I, D), lambda i: (0, 0)),
            pl.BlockSpec((1, D), lambda i: (0, 0)),
        ],
        out_specs=pl.BlockSpec((1, S, D), lambda i: (i, 0, 0)),
        compiler_params=_PARALLEL,
    )(x, g.reshape(1, D), b.reshape(1, D), w1, b1.reshape(1, I), w2, b2.reshape(1, D))


def linear(x, w, b=None, activation=None):
    """Small single-block matmul (patch embed / projections). Bias optional."""
    # TODO(synk): at real CLIP sizes this should get a (M//tm, N//tn, K//tk) grid
    # with a VMEM f32 accumulator; at these shapes one block fits trivially.
    M, K = x.shape
    N = w.shape[1]
    has_bias = b is not None
    args = (x, w, b.reshape(1, N)) if has_bias else (x, w)
    return pl.pallas_call(
        functools.partial(_linear_kernel, has_bias=has_bias, activation=activation),
        out_shape=jax.ShapeDtypeStruct((M, N), x.dtype),
    )(*args)


def layernorm(x, g, b):
    M, D = x.shape
    return pl.pallas_call(
        _layernorm_kernel,
        out_shape=jax.ShapeDtypeStruct((M, D), x.dtype),
    )(x, g.reshape(1, D), b.reshape(1, D))


def ln_proj(x, g, b, w):
    M, D = x.shape
    P = w.shape[1]
    return pl.pallas_call(
        _ln_proj_kernel,
        out_shape=(jax.ShapeDtypeStruct((M, D), x.dtype),
                   jax.ShapeDtypeStruct((M, P), x.dtype)),
    )(x, g.reshape(1, D), b.reshape(1, D), w)


# ----------------------------------------------------------------------------
# CLIP blocks (glue in JAX, compute in Pallas kernels above)
# ----------------------------------------------------------------------------

def encoder_layer(x, p, heads, causal):
    """Pre-norm CLIP encoder layer with fused kernels."""
    B, S, D = x.shape
    dh = D // heads

    qkv = ln_qkv(x, p["ln1_g"], p["ln1_b"], p["qkv_w"], p["qkv_b"])   # (B, S, 3D)
    qkv = qkv.reshape(B, S, 3, heads, dh)
    q = qkv[:, :, 0].transpose(0, 2, 1, 3)                             # (B, H, S, dh)
    k = qkv[:, :, 1].transpose(0, 2, 1, 3)
    v = qkv[:, :, 2].transpose(0, 2, 1, 3)

    attn = multi_head_attention(q, k, v, causal=causal)                # (B, H, S, dh)
    attn = attn.transpose(0, 2, 1, 3).reshape(B, S, D)                 # head merge (glue)

    x = proj_residual(attn, x, p["o_w"], p["o_b"])                     # o-proj + residual
    x = ln_mlp_residual(x, p["ln2_g"], p["ln2_b"],
                        p["fc1_w"], p["fc1_b"], p["fc2_w"], p["fc2_b"])  # LN2+MLP+residual
    return x


# torchvision Normalize values used by the original module (ImageNet stats).
IMAGE_MEAN = jnp.array([0.485, 0.456, 0.406], jnp.float32)
IMAGE_STD = jnp.array([0.229, 0.224, 0.225], jnp.float32)


def vision_model(pixel_values, p, cfg):
    """CLIPVisionTransformer: patch-embed conv -> cls+pos -> pre-LN -> encoder -> pool."""
    B, C, H, W = pixel_values.shape
    ph = cfg["patch"]
    D = cfg["hidden"]

    # Fold Normalize((x - mean)/std) into the patch-embed weights (removes one
    # full HBM pass over the pixels and all broadcast tensors).
    inv_std = 1.0 / IMAGE_STD                                   # (C,)
    row_scale = jnp.repeat(inv_std, ph * ph)                    # (C*ph*ph,), c-major
    row_shift = jnp.repeat(IMAGE_MEAN * inv_std, ph * ph)       # (C*ph*ph,)
    patch_w = p["patch_w"] * row_scale[:, None]
    patch_b = -(row_shift[None, :] @ p["patch_w"])[0]           # (D,)

    # Conv2d(kernel=stride=patch, no bias) == matmul over flattened patches.
    x = pixel_values.reshape(B, C, H // ph, ph, W // ph, ph)
    x = x.transpose(0, 2, 4, 1, 3, 5).reshape(B, (H // ph) * (W // ph), C * ph * ph)
    num_patches = x.shape[1]
    patches = linear(x.reshape(B * num_patches, C * ph * ph), patch_w, patch_b)
    patches = patches.reshape(B, num_patches, D)

    cls = jnp.broadcast_to(p["class_emb"].reshape(1, 1, D), (B, 1, D))
    x = jnp.concatenate([cls, patches], axis=1)
    S = num_patches + 1
    x = x + p["pos_emb"][None, :S, :]

    x = layernorm(x.reshape(B * S, D), p["pre_ln_g"], p["pre_ln_b"]).reshape(B, S, D)

    for lp in p["layers"]:
        x = encoder_layer(x, lp, cfg["heads"], causal=False)

    last_hidden_state = x
    # CLS pool -> post-LN -> visual_projection (fused, two outputs).
    pooled, embeds = ln_proj(x[:, 0, :], p["post_ln_g"], p["post_ln_b"],
                             p["visual_proj_w"])
    return last_hidden_state, pooled, embeds


def text_model(input_ids, p, cfg):
    """CLIPTextTransformer: tok+pos embed -> causal encoder -> final LN -> EOT pool."""
    B, S = input_ids.shape
    D = cfg["hidden"]

    tok = jnp.take(p["token_emb"], input_ids, axis=0)   # embedding gather (glue)
    x = tok + p["pos_emb"][None, :S, :]

    for lp in p["layers"]:
        x = encoder_layer(x, lp, cfg["heads"], causal=True)

    last = layernorm(x.reshape(B * S, D), p["final_ln_g"], p["final_ln_b"]).reshape(B, S, D)
    eot = jnp.argmax(input_ids, axis=-1)                 # HF trick: pool at highest token id
    pooled = last[jnp.arange(B), eot]
    embeds = linear(pooled, p["text_proj_w"])            # text_projection (no bias)
    return last, pooled, embeds


# ----------------------------------------------------------------------------
# Deterministic synthetic parameters (shapes follow CLIPModel config, scaled down)
# ----------------------------------------------------------------------------

def _dense(key, shape):
    return jax.random.normal(key, shape, jnp.float32) * 0.02


def _init_layer(key, D, I, heads):
    dh = D // heads
    scale = dh ** -0.5
    ks = jax.random.split(key, 6)
    # q/k/v fused into one (D, 3D) weight; 1/sqrt(Dh) folded into the q slice.
    qkv_w = jnp.concatenate([_dense(ks[0], (D, D)) * scale,
                             _dense(ks[1], (D, D)),
                             _dense(ks[2], (D, D))], axis=1)
    return dict(
        ln1_g=jnp.ones((D,), jnp.float32), ln1_b=jnp.zeros((D,), jnp.float32),
        qkv_w=qkv_w, qkv_b=jnp.zeros((3 * D,), jnp.float32),
        o_w=_dense(ks[3], (D, D)), o_b=jnp.zeros((D,), jnp.float32),
        ln2_g=jnp.ones((D,), jnp.float32), ln2_b=jnp.zeros((D,), jnp.float32),
        fc1_w=_dense(ks[4], (D, I)), fc1_b=jnp.zeros((I,), jnp.float32),
        fc2_w=_dense(ks[5], (I, D)), fc2_b=jnp.zeros((D,), jnp.float32),
    )


def init_vision_params(key, cfg):
    D, I, C, ph = cfg["hidden"], cfg["inter"], 3, cfg["patch"]
    S = (cfg["image"] // ph) ** 2 + 1
    ks = jax.random.split(key, 4 + cfg["layers"])
    return dict(
        patch_w=_dense(ks[0], (C * ph * ph, D)),
        class_emb=_dense(ks[1], (D,)),
        pos_emb=_dense(ks[2], (S, D)),
        pre_ln_g=jnp.ones((D,), jnp.float32), pre_ln_b=jnp.zeros((D,), jnp.float32),
        post_ln_g=jnp.ones((D,), jnp.float32), post_ln_b=jnp.zeros((D,), jnp.float32),
        visual_proj_w=_dense(ks[3], (D, cfg["proj"])),
        layers=[_init_layer(ks[4 + i], D, I, cfg["heads"]) for i in range(cfg["layers"])],
    )


def init_text_params(key, cfg):
    D, I = cfg["hidden"], cfg["inter"]
    ks = jax.random.split(key, 3 + cfg["layers"])
    return dict(
        token_emb=_dense(ks[0], (cfg["vocab"], D)),
        pos_emb=_dense(ks[1], (cfg["max_pos"], D)),
        final_ln_g=jnp.ones((D,), jnp.float32), final_ln_b=jnp.zeros((D,), jnp.float32),
        text_proj_w=_dense(ks[2], (D, cfg["proj"])),
        layers=[_init_layer(ks[3 + i], D, I, cfg["heads"]) for i in range(cfg["layers"])],
    )


# ----------------------------------------------------------------------------
# Top-level forward (== CLIPEncoder.forward -> (visual_embeds, text_embeds))
# ----------------------------------------------------------------------------

# hidden padded to 128 so the activation last dim is lane-dense on all generations.
VCFG = dict(image=32, patch=8, hidden=128, heads=4, inter=256, layers=2, proj=64)
TCFG = dict(vocab=64, max_pos=8, hidden=128, heads=4, inter=256, layers=2, proj=64)


def clip_encoder_forward(images, input_ids, vparams, tparams):
    # TODO(synk): CLIPTokenizer (string -> ids) and PIL image decoding have no
    # Pallas equivalent; inputs here are pre-tokenized ids and image tensors.
    v_last, v_pool, v_emb = vision_model(images, vparams, VCFG)
    t_last, t_pool, t_emb = text_model(input_ids, tparams, TCFG)
    visual_embeds = dict(last_hidden_state=v_last, pooler_output=v_pool, embeds=v_emb)
    text_embeds = dict(last_hidden_state=t_last, pooler_output=t_pool, embeds=t_emb)
    return visual_embeds, text_embeds


if __name__ == "__main__":
    key = jax.random.PRNGKey(0)
    k_img, k_txt, k_vp, k_tp = jax.random.split(key, 4)

    B = 2
    images = jax.random.uniform(k_img, (B, 3, VCFG["image"], VCFG["image"]),
                                jnp.float32)                       # NCHW in [0, 1]
    input_ids = jax.random.randint(k_txt, (B, TCFG["max_pos"]), 0, TCFG["vocab"],
                                   dtype=jnp.int32)

    vparams = init_vision_params(k_vp, VCFG)
    tparams = init_text_params(k_tp, TCFG)

    fwd = jax.jit(clip_encoder_forward)
    visual_embeds, text_embeds = fwd(images, input_ids, vparams, tparams)
    jax.block_until_ready((visual_embeds, text_embeds))

    S_v = (VCFG["image"] // VCFG["patch"]) ** 2 + 1
    assert visual_embeds["last_hidden_state"].shape == (B, S_v, VCFG["hidden"])
    assert visual_embeds["pooler_output"].shape == (B, VCFG["hidden"])
    assert visual_embeds["embeds"].shape == (B, VCFG["proj"])
    assert text_embeds["last_hidden_state"].shape == (B, TCFG["max_pos"], TCFG["hidden"])
    assert text_embeds["pooler_output"].shape == (B, TCFG["hidden"])
    assert text_embeds["embeds"].shape == (B, TCFG["proj"])

    print("KERNEL_OK")
</pallas_src>

<mosaic_0001>
module attributes {stable_mosaic.version = 11 : i64} {
  func.func @_linear_kernel(%arg0: memref<32x192xf32, #tpu.memory_space<vmem>>, %arg1: memref<192x128xf32, #tpu.memory_space<vmem>>, %arg2: memref<1x128xf32, #tpu.memory_space<vmem>>, %arg3: memref<32x128xf32, #tpu.memory_space<vmem>>) attributes {dimension_semantics = [], scalar_prefetch = 0 : i64, scratch_operands = 0 : i64, tpu.core_type = #tpu.core_type<tc>} {
    %c0 = arith.constant 0 : index
    %c0_0 = arith.constant 0 : index
    %0 = vector.load %arg0[%c0, %c0_0] : memref<32x192xf32, #tpu.memory_space<vmem>>, vector<32x192xf32>
    %1 = arith.truncf %0 : vector<32x192xf32> to vector<32x192xbf16>
    %c0_1 = arith.constant 0 : index
    %c0_2 = arith.constant 0 : index
    %2 = vector.load %arg1[%c0_1, %c0_2] : memref<192x128xf32, #tpu.memory_space<vmem>>, vector<192x128xf32>
    %3 = arith.truncf %2 : vector<192x128xf32> to vector<192x128xbf16>
    %cst = arith.constant dense<0.000000e+00> : vector<32x128xf32>
    %4 = tpu.matmul %1, %3, %cst {dimension_numbers = #tpu.dot_dimension_numbers<[1], [0], [0], [1], [0, 0, 1, 1], [], []>} : vector<32x192xbf16>, vector<192x128xbf16>, vector<32x128xf32> -> vector<32x128xf32>
    %c0_3 = arith.constant 0 : index
    %c0_4 = arith.constant 0 : index
    %5 = vector.load %arg2[%c0_3, %c0_4] : memref<1x128xf32, #tpu.memory_space<vmem>>, vector<1x128xf32>
    %6 = vector.broadcast %5 : vector<1x128xf32> to vector<32x128xf32>
    %7 = arith.addf %4, %6 : vector<32x128xf32>
    %c0_5 = arith.constant 0 : index
    %c0_6 = arith.constant 0 : index
    %8 = vector.load %arg3[%c0_5, %c0_6] : memref<32x128xf32, #tpu.memory_space<vmem>>, vector<32x128xf32>
    tpu.vector_store %arg3[%c0_5, %c0_6], %7 {strides = array<i32>} : memref<32x128xf32, #tpu.memory_space<vmem>>, vector<32x128xf32>,
    return
  }
}

module attributes {stable_mosaic.version = 11 : i64} {
  func.func @_layernorm_kernel(%arg0: memref<34x128xf32, #tpu.memory_space<vmem>>, %arg1: memref<1x128xf32, #tpu.memory_space<vmem>>, %arg2: memref<1x128xf32, #tpu.memory_space<vmem>>, %arg3: memref<34x128xf32, #tpu.memory_space<vmem>>) attributes {dimension_semantics = [], scalar_prefetch = 0 : i64, scratch_operands = 0 : i64, tpu.core_type = #tpu.core_type<tc>} {
    %c0 = arith.constant 0 : index
    %c0_0 = arith.constant 0 : index
    %0 = vector.load %arg0[%c0, %c0_0] : memref<34x128xf32, #tpu.memory_space<vmem>>, vector<34x128xf32>
    %c0_1 = arith.constant 0 : index
    %c0_2 = arith.constant 0 : index
    %1 = vector.load %arg1[%c0_1, %c0_2] : memref<1x128xf32, #tpu.memory_space<vmem>>, vector<1x128xf32>
    %c0_3 = arith.constant 0 : index
    %c0_4 = arith.constant 0 : index
    %2 = vector.load %arg2[%c0_3, %c0_4] : memref<1x128xf32, #tpu.memory_space<vmem>>, vector<1x128xf32>
    %cst = arith.constant dense<0.000000e+00> : vector<34xf32>
    %3 = vector.multi_reduction <add>, %0, %cst [1] : vector<34x128xf32> to vector<34xf32>
    %4 = vector.shape_cast %3 : vector<34xf32> to vector<34x1xf32>
    %cst_5 = arith.constant 1.280000e+02 : f32
    %5 = vector.broadcast %cst_5 : f32 to vector<34x1xf32>
    %6 = arith.divf %4, %5 : vector<34x1xf32>
    %7 = vector.broadcast %6 : vector<34x1xf32> to vector<34x128xf32>
    %8 = arith.subf %0, %7 : vector<34x128xf32>
    %9 = arith.mulf %8, %8 : vector<34x128xf32>
    %cst_6 = arith.constant dense<0.000000e+00> : vector<34xf32>
    %10 = vector.multi_reduction <add>, %9, %cst_6 [1] : vector<34x128xf32> to vector<34xf32>
    %11 = vector.shape_cast %10 : vector<34xf32> to vector<34x1xf32>
    %cst_7 = arith.constant 1.280000e+02 : f32
    %12 = vector.broadcast %cst_7 : f32 to vector<34x1xf32>
    %13 = arith.divf %11, %12 : vector<34x1xf32>
    %14 = vector.broadcast %6 : vector<34x1xf32> to vector<34x128xf32>
    %15 = arith.subf %0, %14 : vector<34x128xf32>
    %cst_8 = arith.constant 9.99999974E-6 : f32
    %16 = vector.broadcast %cst_8 : f32 to vector<34x1xf32>
    %17 = arith.addf %13, %16 : vector<34x1xf32>
    %18 = math.rsqrt %17 : vector<34x1xf32>
    %19 = vector.broadcast %18 : vector<34x1xf32> to vector<34x128xf32>
    %20 = arith.mulf %15, %19 : vector<34x128xf32>
    %21 = vector.broadcast %1 : vector<1x128xf32> to vector<34x128xf32>
    %22 = arith.mulf %20, %21 : vector<34x128xf32>
    %23 = vector.broadcast %2 : vector<1x128xf32> to vector<34x128xf32>
    %24 = arith.addf %22, %23 : vector<34x128xf32>
    %c0_9 = arith.constant 0 : index
    %c0_10 = arith.constant 0 : index
    %25 = vector.load %arg3[%c0_9, %c0_10] : memref<34x128xf32, #tpu.memory_space<vmem>>, vector<34x128xf32>
    tpu.vector_store %arg3[%c0_9, %c0_10], %24 {strides = array<i32>} : memref<34x128xf32, #tpu.memory_space<vmem>>, vector<34x128xf32>,
    return
  }
}

module attributes {stable_mosaic.version = 11 : i64} {
  func.func @_ln_qkv_kernel(%arg0: i32, %arg1: memref<1x17x128xf32, #tpu.memory_space<vmem>>, %arg2: memref<1x128xf32, #tpu.memory_space<vmem>>, %arg3: memref<1x128xf32, #tpu.memory_space<vmem>>, %arg4: memref<128x384xf32, #tpu.memory_space<vmem>>, %arg5: memref<1x384xf32, #tpu.memory_space<vmem>>, %arg6: memref<1x17x384xf32, #tpu.memory_space<vmem>>) attributes {dimension_semantics = [#tpu.dimension_semantics<parallel>], iteration_bounds = array<i64: 2>, scalar_prefetch = 0 : i64, scratch_operands = 0 : i64, tpu.core_type = #tpu.core_type<tc>, window_params = [{transform_indices = @transform_0, window_bounds = array<i64: 1, 17, 128>}, {pipeline_mode = #tpu.pipeline_mode<synchronous>, transform_indices = @transform_1, window_bounds = array<i64: 1, 128>}, {pipeline_mode = #tpu.pipeline_mode<synchronous>, transform_indices = @transform_2, window_bounds = array<i64: 1, 128>}, {pipeline_mode = #tpu.pipeline_mode<synchronous>, transform_indices = @transform_3, window_bounds = array<i64: 128, 384>}, {pipeline_mode = #tpu.pipeline_mode<synchronous>, transform_indices = @transform_4, window_bounds = array<i64: 1, 384>}, {transform_indices = @transform_5, window_bounds = array<i64: 1, 17, 384>}]} {
    %c0 = arith.constant 0 : index
    %c0_0 = arith.constant 0 : index
    %c0_1 = arith.constant 0 : index
    %0 = vector.load %arg1[%c0, %c0_0, %c0_1] : memref<1x17x128xf32, #tpu.memory_space<vmem>>, vector<1x17x128xf32>
    %1 = vector.shape_cast %0 : vector<1x17x128xf32> to vector<17x128xf32>
    %c0_2 = arith.constant 0 : index
    %c0_3 = arith.constant 0 : index
    %2 = vector.load %arg2[%c0_2, %c0_3] : memref<1x128xf32, #tpu.memory_space<vmem>>, vector<1x128xf32>
    %c0_4 = arith.constant 0 : index
    %c0_5 = arith.constant 0 : index
    %3 = vector.load %arg3[%c0_4, %c0_5] : memref<1x128xf32, #tpu.memory_space<vmem>>, vector<1x128xf32>
    %cst = arith.constant dense<0.000000e+00> : vector<17xf32>
    %4 = vector.multi_reduction <add>, %1, %cst [1] : vector<17x128xf32> to vector<17xf32>
    %5 = vector.shape_cast %4 : vector<17xf32> to vector<17x1xf32>
    %cst_6 = arith.constant 1.280000e+02 : f32
    %6 = vector.broadcast %cst_6 : f32 to vector<17x1xf32>
    %7 = arith.divf %5, %6 : vector<17x1xf32>
    %8 = vector.broadcast %7 : vector<17x1xf32> to vector<17x128xf32>
    %9 = arith.subf %1, %8 : vector<17x128xf32>
    %10 = arith.mulf %9, %9 : vector<17x128xf32>
    %cst_7 = arith.constant dense<0.000000e+00> : vector<17xf32>
    %11 = vector.multi_reduction <add>, %10, %cst_7 [1] : vector<17x128xf32> to vector<17xf32>
    %12 = vector.shape_cast %11 : vector<17xf32> to vector<17x1xf32>
    %cst_8 = arith.constant 1.280000e+02 : f32
    %13 = vector.broadcast %cst_8 : f32 to vector<17x1xf32>
    %14 = arith.divf %12, %13 : vector<17x1xf32>
    %15 = vector.broadcast %7 : vector<17x1xf32> to vector<17x128xf32>
    %16 = arith.subf %1, %15 : vector<17x128xf32>
    %cst_9 = arith.constant 9.99999974E-6 : f32
    %17 = vector.broadcast %cst_9 : f32 to vector<17x1xf32>
    %18 = arith.addf %14, %17 : vector<17x1xf32>
    %19 = math.rsqrt %18 : vector<17x1xf32>
    %20 = vector.broadcast %19 : vector<17x1xf32> to vector<17x128xf32>
    %21 = arith.mulf %16, %20 : vector<17x128xf32>
    %22 = vector.broadcast %2 : vector<1x128xf32> to vector<17x128xf32>
    %23 = arith.mulf %21, %22 : vector<17x128xf32>
    %24 = vector.broadcast %3 : vector<1x128xf32> to vector<17x128xf32>
    %25 = arith.addf %23, %24 : vector<17x128xf32>
    %26 = arith.truncf %25 : vector<17x128xf32> to vector<17x128xbf16>
    %c0_10 = arith.constant 0 : index
    %c0_11 = arith.constant 0 : index
    %27 = vector.load %arg4[%c0_10, %c0_11] : memref<128x384xf32, #tpu.memory_space<vmem>>, vector<128x384xf32>
    %28 = arith.truncf %27 : vector<128x384xf32> to vector<128x384xbf16>
    %cst_12 = arith.constant dense<0.000000e+00> : vector<17x384xf32>
    %29 = tpu.matmul %26, %28, %cst_12 {dimension_numbers = #tpu.dot_dimension_numbers<[1], [0], [0], [1], [0, 0, 1, 1], [], []>} : vector<17x128xbf16>, vector<128x384xbf16>, vector<17x384xf32> -> vector<17x384xf32>
    %c0_13 = arith.constant 0 : index
    %c0_14 = arith.constant 0 : index
    %30 = vector.load %arg5[%c0_13, %c0_14] : memref<1x384xf32, #tpu.memory_space<vmem>>, vector<1x384xf32>
    %31 = vector.broadcast %30 : vector<1x384xf32> to vector<17x384xf32>
    %32 = arith.addf %29, %31 : vector<17x384xf32>
    %c0_15 = arith.constant 0 : index
    %c0_16 = arith.constant 0 : index
    %c0_17 = arith.constant 0 : index
    %33 = vector.load %arg6[%c0_15, %c0_16, %c0_17] : memref<1x17x384xf32, #tpu.memory_space<vmem>>, vector<1x17x384xf32>
    %34 = vector.shape_cast %33 : vector<1x17x384xf32> to vector<17x384xf32>
    %35 = vector.shape_cast %32 : vector<17x384xf32> to vector<1x17x384xf32>
    tpu.vector_store %arg6[%c0_15, %c0_16, %c0_17], %35 {strides = array<i32>} : memref<1x17x384xf32, #tpu.memory_space<vmem>>, vector<1x17x384xf32>,
    return
  }
  func.func @transform_0(%arg0: i32) -> (i32, i32, i32) {
    %c0_i32 = arith.constant 0 : i32
    %c0_i32_0 = arith.constant 0 : i32
    %c0_i32_1 = arith.constant 0 : i32
    return %arg0, %c0_i32, %c0_i32_0 : i32, i32, i32
  }
  func.func @transform_1(%arg0: i32) -> (i32, i32) {
    %c0_i32 = arith.constant 0 : i32
    %c0_i32_0 = arith.constant 0 : i32
    %c0_i32_1 = arith.constant 0 : i32
    return %c0_i32, %c0_i32_0 : i32, i32
  }
  func.func @transform_2(%arg0: i32) -> (i32, i32) {
    %c0_i32 = arith.constant 0 : i32
    %c0_i32_0 = arith.constant 0 : i32
    %c0_i32_1 = arith.constant 0 : i32
    return %c0_i32, %c0_i32_0 : i32, i32
  }
  func.func @transform_3(%arg0: i32) -> (i32, i32) {
    %c0_i32 = arith.constant 0 : i32
    %c0_i32_0 = arith.constant 0 : i32
    %c0_i32_1 = arith.constant 0 : i32
    return %c0_i32, %c0_i32_0 : i32, i32
  }
  func.func @transform_4(%arg0: i32) -> (i32, i32) {
    %c0_i32 = arith.constant 0 : i32
    %c0_i32_0 = arith.constant 0 : i32
    %c0_i32_1 = arith.constant 0 : i32
    return %c0_i32, %c0_i32_0 : i32, i32
  }
  func.func @transform_5(%arg0: i32) -> (i32, i32, i32) {
    %c0_i32 = arith.constant 0 : i32
    %c0_i32_0 = arith.constant 0 : i32
    %c0_i32_1 = arith.constant 0 : i32
    return %arg0, %c0_i32, %c0_i32_0 : i32, i32, i32
  }
}

module attributes {stable_mosaic.version = 11 : i64} {
  func.func @_attention_kernel(%arg0: i32, %arg1: memref<1x4x17x32xf32, #tpu.memory_space<vmem>>, %arg2: memref<1x4x17x32xf32, #tpu.memory_space<vmem>>, %arg3: memref<1x4x17x32xf32, #tpu.memory_space<vmem>>, %arg4: memref<1x4x17x32xf32, #tpu.memory_space<vmem>>) attributes {dimension_semantics = [#tpu.dimension_semantics<parallel>], iteration_bounds = array<i64: 2>, scalar_prefetch = 0 : i64, scratch_operands = 0 : i64, tpu.core_type = #tpu.core_type<tc>, window_params = [{transform_indices = @transform_0, window_bounds = array<i64: 1, 4, 17, 32>}, {transform_indices = @transform_1, window_bounds = array<i64: 1, 4, 17, 32>}, {transform_indices = @transform_2, window_bounds = array<i64: 1, 4, 17, 32>}, {transform_indices = @transform_3, window_bounds = array<i64: 1, 4, 17, 32>}]} {
    %c0 = arith.constant 0 : index
    %c0_0 = arith.constant 0 : index
    %c0_1 = arith.constant 0 : index
    %c0_2 = arith.constant 0 : index
    %0 = vector.load %arg1[%c0, %c0_0, %c0_1, %c0_2] : memref<1x4x17x32xf32, #tpu.memory_space<vmem>>, vector<1x4x17x32xf32>
    %1 = vector.shape_cast %0 : vector<1x4x17x32xf32> to vector<4x17x32xf32>
    %2 = arith.truncf %1 : vector<4x17x32xf32> to vector<4x17x32xbf16>
    %c0_3 = arith.constant 0 : index
    %c0_4 = arith.constant 0 : index
    %c0_5 = arith.constant 0 : index
    %c0_6 = arith.constant 0 : index
    %3 = vector.load %arg2[%c0_3, %c0_4, %c0_5, %c0_6] : memref<1x4x17x32xf32, #tpu.memory_space<vmem>>, vector<1x4x17x32xf32>
    %4 = vector.shape_cast %3 : vector<1x4x17x32xf32> to vector<4x17x32xf32>
    %5 = arith.truncf %4 : vector<4x17x32xf32> to vector<4x17x32xbf16>
    %c0_7 = arith.constant 0 : index
    %c0_8 = arith.constant 0 : index
    %c0_9 = arith.constant 0 : index
    %c0_10 = arith.constant 0 : index
    %6 = vector.load %arg3[%c0_7, %c0_8, %c0_9, %c0_10] : memref<1x4x17x32xf32, #tpu.memory_space<vmem>>, vector<1x4x17x32xf32>
    %7 = vector.shape_cast %6 : vector<1x4x17x32xf32> to vector<4x17x32xf32>
    %8 = arith.truncf %7 : vector<4x17x32xf32> to vector<4x17x32xbf16>
    "tpu.trace_start"() <{level = 10 : i32, message = "hqd,hkd->hqk"}> : () -> ()
    %cst = arith.constant dense<0.000000e+00> : vector<4x17x17xf32>
    %9 = tpu.matmul %2, %5, %cst {dimension_numbers = #tpu.dot_dimension_numbers<[2], [2], [1], [1], [0, 0, 0, 1, 1, 1], [0], [0]>} : vector<4x17x32xbf16>, vector<4x17x32xbf16>, vector<4x17x17xf32> -> vector<4x17x17xf32>
    "tpu.trace_stop"() : () -> ()
    %cst_11 = arith.constant dense<0xFF800000> : vector<4x17xf32>
    %10 = vector.multi_reduction <maximumf>, %9, %cst_11 [2] : vector<4x17x17xf32> to vector<4x17xf32>
    %11 = vector.shape_cast %10 : vector<4x17xf32> to vector<4x17x1xf32>
    %12 = vector.broadcast %11 : vector<4x17x1xf32> to vector<4x17x17xf32>
    %13 = arith.subf %9, %12 : vector<4x17x17xf32>
    %14 = math.exp %13 : vector<4x17x17xf32>
    %cst_12 = arith.constant dense<0.000000e+00> : vector<4x17xf32>
    %15 = vector.multi_reduction <add>, %14, %cst_12 [2] : vector<4x17x17xf32> to vector<4x17xf32>
    %16 = vector.shape_cast %15 : vector<4x17xf32> to vector<4x17x1xf32>
    %17 = tpu.reciprocal %16 {approx = true} : vector<4x17x1xf32> -> vector<4x17x1xf32>
    %18 = vector.broadcast %17 : vector<4x17x1xf32> to vector<4x17x17xf32>
    %19 = arith.mulf %14, %18 : vector<4x17x17xf32>
    %20 = arith.truncf %19 : vector<4x17x17xf32> to vector<4x17x17xbf16>
    "tpu.trace_start"() <{level = 10 : i32, message = "hqk,hkd->hqd"}> : () -> ()
    %cst_13 = arith.constant dense<0.000000e+00> : vector<4x17x32xf32>
    %21 = tpu.matmul %20, %8, %cst_13 {dimension_numbers = #tpu.dot_dimension_numbers<[2], [1], [1], [2], [0, 0, 0, 1, 1, 2], [0], [0]>} : vector<4x17x17xbf16>, vector<4x17x32xbf16>, vector<4x17x32xf32> -> vector<4x17x32xf32>
    "tpu.trace_stop"() : () -> ()
    %c0_14 = arith.constant 0 : index
    %c0_15 = arith.constant 0 : index
    %c0_16 = arith.constant 0 : index
    %c0_17 = arith.constant 0 : index
    %22 = vector.load %arg4[%c0_14, %c0_15, %c0_16, %c0_17] : memref<1x4x17x32xf32, #tpu.memory_space<vmem>>, vector<1x4x17x32xf32>
    %23 = vector.shape_cast %22 : vector<1x4x17x32xf32> to vector<4x17x32xf32>
    %24 = vector.shape_cast %21 : vector<4x17x32xf32> to vector<1x4x17x32xf32>
    tpu.vector_store %arg4[%c0_14, %c0_15, %c0_16, %c0_17], %24 {strides = array<i32>} : memref<1x4x17x32xf32, #tpu.memory_space<vmem>>, vector<1x4x17x32xf32>,
    return
  }
  func.func @transform_0(%arg0: i32) -> (i32, i32, i32, i32) {
    %c0_i32 = arith.constant 0 : i32
    %c0_i32_0 = arith.constant 0 : i32
    %c0_i32_1 = arith.constant 0 : i32
    %c0_i32_2 = arith.constant 0 : i32
    return %arg0, %c0_i32, %c0_i32_0, %c0_i32_1 : i32, i32, i32, i32
  }
  func.func @transform_1(%arg0: i32) -> (i32, i32, i32, i32) {
    %c0_i32 = arith.constant 0 : i32
    %c0_i32_0 = arith.constant 0 : i32
    %c0_i32_1 = arith.constant 0 : i32
    %c0_i32_2 = arith.constant 0 : i32
    return %arg0, %c0_i32, %c0_i32_0, %c0_i32_1 : i32, i32, i32, i32
  }
  func.func @transform_2(%arg0: i32) -> (i32, i32, i32, i32) {
    %c0_i32 = arith.constant 0 : i32
    %c0_i32_0 = arith.constant 0 : i32
    %c0_i32_1 = arith.constant 0 : i32
    %c0_i32_2 = arith.constant 0 : i32
    return %arg0, %c0_i32, %c0_i32_0, %c0_i32_1 : i32, i32, i32, i32
  }
  func.func @transform_3(%arg0: i32) -> (i32, i32, i32, i32) {
    %c0_i32 = arith.constant 0 : i32
    %c0_i32_0 = arith.constant 0 : i32
    %c0_i32_1 = arith.constant 0 : i32
    %c0_i32_2 = arith.constant 0 : i32
    return %arg0, %c0_i32, %c0_i32_0, %c0_i32_1 : i32, i32, i32, i32
  }
}

module attributes {stable_mosaic.version = 11 : i64} {
  func.func @_ln_mlp_res_kernel(%arg0: i32, %arg1: memref<1x17x128xf32, #tpu.memory_space<vmem>>, %arg2: memref<1x128xf32, #tpu.memory_space<vmem>>, %arg3: memref<1x128xf32, #tpu.memory_space<vmem>>, %arg4: memref<128x256xf32, #tpu.memory_space<vmem>>, %arg5: memref<1x256xf32, #tpu.memory_space<vmem>>, %arg6: memref<256x128xf32, #tpu.memory_space<vmem>>, %arg7: memref<1x128xf32, #tpu.memory_space<vmem>>, %arg8: memref<1x17x128xf32, #tpu.memory_space<vmem>>) attributes {dimension_semantics = [#tpu.dimension_semantics<parallel>], iteration_bounds = array<i64: 2>, scalar_prefetch = 0 : i64, scratch_operands = 0 : i64, tpu.core_type = #tpu.core_type<tc>, window_params = [{transform_indices = @transform_0, window_bounds = array<i64: 1, 17, 128>}, {pipeline_mode = #tpu.pipeline_mode<synchronous>, transform_indices = @transform_1, window_bounds = array<i64: 1, 128>}, {pipeline_mode = #tpu.pipeline_mode<synchronous>, transform_indices = @transform_2, window_bounds = array<i64: 1, 128>}, {pipeline_mode = #tpu.pipeline_mode<synchronous>, transform_indices = @transform_3, window_bounds = array<i64: 128, 256>}, {pipeline_mode = #tpu.pipeline_mode<synchronous>, transform_indices = @transform_4, window_bounds = array<i64: 1, 256>}, {pipeline_mode = #tpu.pipeline_mode<synchronous>, transform_indices = @transform_5, window_bounds = array<i64: 256, 128>}, {pipeline_mode = #tpu.pipeline_mode<synchronous>, transform_indices = @transform_6, window_bounds = array<i64: 1, 128>}, {transform_indices = @transform_7, window_bounds = array<i64: 1, 17, 128>}]} {
    %c0 = arith.constant 0 : index
    %c0_0 = arith.constant 0 : index
    %c0_1 = arith.constant 0 : index
    %0 = vector.load %arg1[%c0, %c0_0, %c0_1] : memref<1x17x128xf32, #tpu.memory_space<vmem>>, vector<1x17x128xf32>
    %1 = vector.shape_cast %0 : vector<1x17x128xf32> to vector<17x128xf32>
    %c0_2 = arith.constant 0 : index
    %c0_3 = arith.constant 0 : index
    %2 = vector.load %arg2[%c0_2, %c0_3] : memref<1x128xf32, #tpu.memory_space<vmem>>, vector<1x128xf32>
    %c0_4 = arith.constant 0 : index
    %c0_5 = arith.constant 0 : index
    %3 = vector.load %arg3[%c0_4, %c0_5] : memref<1x128xf32, #tpu.memory_space<vmem>>, vector<1x128xf32>
    %cst = arith.constant dense<0.000000e+00> : vector<17xf32>
    %4 = vector.multi_reduction <add>, %1, %cst [1] : vector<17x128xf32> to vector<17xf32>
    %5 = vector.shape_cast %4 : vector<17xf32> to vector<17x1xf32>
    %cst_6 = arith.constant 1.280000e+02 : f32
    %6 = vector.broadcast %cst_6 : f32 to vector<17x1xf32>
    %7 = arith.divf %5, %6 : vector<17x1xf32>
    %8 = vector.broadcast %7 : vector<17x1xf32> to vector<17x128xf32>
    %9 = arith.subf %1, %8 : vector<17x128xf32>
    %10 = arith.mulf %9, %9 : vector<17x128xf32>
    %cst_7 = arith.constant dense<0.000000e+00> : vector<17xf32>
    %11 = vector.multi_reduction <add>, %10, %cst_7 [1] : vector<17x128xf32> to vector<17xf32>
    %12 = vector.shape_cast %11 : vector<17xf32> to vector<17x1xf32>
    %cst_8 = arith.constant 1.280000e+02 : f32
    %13 = vector.broadcast %cst_8 : f32 to vector<17x1xf32>
    %14 = arith.divf %12, %13 : vector<17x1xf32>
    %15 = vector.broadcast %7 : vector<17x1xf32> to vector<17x128xf32>
    %16 = arith.subf %1, %15 : vector<17x128xf32>
    %cst_9 = arith.constant 9.99999974E-6 : f32
    %17 = vector.broadcast %cst_9 : f32 to vector<17x1xf32>
    %18 = arith.addf %14, %17 : vector<17x1xf32>
    %19 = math.rsqrt %18 : vector<17x1xf32>
    %20 = vector.broadcast %19 : vector<17x1xf32> to vector<17x128xf32>
    %21 = arith.mulf %16, %20 : vector<17x128xf32>
    %22 = vector.broadcast %2 : vector<1x128xf32> to vector<17x128xf32>
    %23 = arith.mulf %21, %22 : vector<17x128xf32>
    %24 = vector.broadcast %3 : vector<1x128xf32> to vector<17x128xf32>
    %25 = arith.addf %23, %24 : vector<17x128xf32>
    %26 = arith.truncf %25 : vector<17x128xf32> to vector<17x128xbf16>
    %c0_10 = arith.constant 0 : index
    %c0_11 = arith.constant 0 : index
    %27 = vector.load %arg4[%c0_10, %c0_11] : memref<128x256xf32, #tpu.memory_space<vmem>>, vector<128x256xf32>
    %28 = arith.truncf %27 : vector<128x256xf32> to vector<128x256xbf16>
    %cst_12 = arith.constant dense<0.000000e+00> : vector<17x256xf32>
    %29 = tpu.matmul %26, %28, %cst_12 {dimension_numbers = #tpu.dot_dimension_numbers<[1], [0], [0], [1], [0, 0, 1, 1], [], []>} : vector<17x128xbf16>, vector<128x256xbf16>, vector<17x256xf32> -> vector<17x256xf32>
    %c0_13 = arith.constant 0 : index
    %c0_14 = arith.constant 0 : index
    %30 = vector.load %arg5[%c0_13, %c0_14] : memref<1x256xf32, #tpu.memory_space<vmem>>, vector<1x256xf32>
    %31 = vector.broadcast %30 : vector<1x256xf32> to vector<17x256xf32>
    %32 = arith.addf %29, %31 : vector<17x256xf32>
    %cst_15 = arith.constant 1.702000e+00 : f32
    %33 = vector.broadcast %cst_15 : f32 to vector<17x256xf32>
    %34 = arith.mulf %33, %32 : vector<17x256xf32>
    %35 = arith.negf %34 : vector<17x256xf32>
    %36 = math.exp %35 : vector<17x256xf32>
    %cst_16 = arith.constant 1.000000e+00 : f32
    %37 = vector.broadcast %cst_16 : f32 to vector<17x256xf32>
    %38 = arith.addf %37, %36 : vector<17x256xf32>
    %39 = arith.divf %37, %38 : vector<17x256xf32>
    %40 = arith.mulf %32, %39 : vector<17x256xf32>
    %41 = arith.truncf %40 : vector<17x256xf32> to vector<17x256xbf16>
    %c0_17 = arith.constant 0 : index
    %c0_18 = arith.constant 0 : index
    %42 = vector.load %arg6[%c0_17, %c0_18] : memref<256x128xf32, #tpu.memory_space<vmem>>, vector<256x128xf32>
    %43 = arith.truncf %42 : vector<256x128xf32> to vector<256x128xbf16>
    %cst_19 = arith.constant dense<0.000000e+00> : vector<17x128xf32>
    %44 = tpu.matmul %41, %43, %cst_19 {dimension_numbers = #tpu.dot_dimension_numbers<[1], [0], [0], [1], [0, 0, 1, 1], [], []>} : vector<17x256xbf16>, vector<256x128xbf16>, vector<17x128xf32> -> vector<17x128xf32>
    %c0_20 = arith.constant 0 : index
    %c0_21 = arith.constant 0 : index
    %45 = vector.load %arg7[%c0_20, %c0_21] : memref<1x128xf32, #tpu.memory_space<vmem>>, vector<1x128xf32>
    %46 = vector.broadcast %45 : vector<1x128xf32> to vector<17x128xf32>
    %47 = arith.addf %44, %46 : vector<17x128xf32>
    %48 = arith.addf %1, %47 : vector<17x128xf32>
    %c0_22 = arith.constant 0 : index
    %c0_23 = arith.constant 0 : index
    %c0_24 = arith.constant 0 : index
    %49 = vector.load %arg8[%c0_22, %c0_23, %c0_24] : memref<1x17x128xf32, #tpu.memory_space<vmem>>, vector<1x17x128xf32>
    %50 = vector.shape_cast %49 : vector<1x17x128xf32> to vector<17x128xf32>
    %51 = vector.shape_cast %48 : vector<17x128xf32> to vector<1x17x128xf32>
    tpu.vector_store %arg8[%c0_22, %c0_23, %c0_24], %51 {strides = array<i32>} : memref<1x17x128xf32, #tpu.memory_space<vmem>>, vector<1x17x128xf32>,
    return
  }
  func.func @transform_0(%arg0: i32) -> (i32, i32, i32) {
    %c0_i32 = arith.constant 0 : i32
    %c0_i32_0 = arith.constant 0 : i32
    %c0_i32_1 = arith.constant 0 : i32
    return %arg0, %c0_i32, %c0_i32_0 : i32, i32, i32
  }
  func.func @transform_1(%arg0: i32) -> (i32, i32) {
    %c0_i32 = arith.constant 0 : i32
    %c0_i32_0 = arith.constant 0 : i32
    %c0_i32_1 = arith.constant 0 : i32
    return %c0_i32, %c0_i32_0 : i32, i32
  }
  func.func @transform_2(%arg0: i32) -> (i32, i32) {
    %c0_i32 = arith.constant 0 : i32
    %c0_i32_0 = arith.constant 0 : i32
    %c0_i32_1 = arith.constant 0 : i32
    return %c0_i32, %c0_i32_0 : i32, i32
  }
  func.func @transform_3(%arg0: i32) -> (i32, i32) {
    %c0_i32 = arith.constant 0 : i32
    %c0_i32_0 = arith.constant 0 : i32
    %c0_i32_1 = arith.constant 0 : i32
    return %c0_i32, %c0_i32_0 : i32, i32
  }
  func.func @transform_4(%arg0: i32) -> (i32, i32) {
    %c0_i32 = arith.constant 0 : i32
    %c0_i32_0 = arith.constant 0 : i32
    %c0_i32_1 = arith.constant 0 : i32
    return %c0_i32, %c0_i32_0 : i32, i32
  }
  func.func @transform_5(%arg0: i32) -> (i32, i32) {
    %c0_i32 = arith.constant 0 : i32
    %c0_i32_0 = arith.constant 0 : i32
    %c0_i32_1 = arith.constant 0 : i32
    return %c0_i32, %c0_i32_0 : i32, i32
  }
  func.func @transform_6(%arg0: i32) -> (i32, i32) {
    %c0_i32 = arith.constant 0 : i32
    %c0_i32_0 = arith.constant 0 : i32
    %c0_i32_1 = arith.constant 0 : i32
    return %c0_i32, %c0_i32_0 : i32, i32
  }
  func.func @transform_7(%arg0: i32) -> (i32, i32, i32) {
    %c0_i32 = arith.constant 0 : i32
    %c0_i32_0 = arith.constant 0 : i32
    %c0_i32_1 = arith.constant 0 : i32
    return %arg0, %c0_i32, %c0_i32_0 : i32, i32, i32
  }
}

module attributes {stable_mosaic.version = 11 : i64} {
  func.func @_proj_res_kernel(%arg0: i32, %arg1: memref<1x17x128xf32, #tpu.memory_space<vmem>>, %arg2: memref<1x17x128xf32, #tpu.memory_space<vmem>>, %arg3: memref<128x128xf32, #tpu.memory_space<vmem>>, %arg4: memref<1x128xf32, #tpu.memory_space<vmem>>, %arg5: memref<1x17x128xf32, #tpu.memory_space<vmem>>) attributes {dimension_semantics = [#tpu.dimension_semantics<parallel>], iteration_bounds = array<i64: 2>, scalar_prefetch = 0 : i64, scratch_operands = 0 : i64, tpu.core_type = #tpu.core_type<tc>, window_params = [{transform_indices = @transform_0, window_bounds = array<i64: 1, 17, 128>}, {transform_indices = @transform_1, window_bounds = array<i64: 1, 17, 128>}, {pipeline_mode = #tpu.pipeline_mode<synchronous>, transform_indices = @transform_2, window_bounds = array<i64: 128, 128>}, {pipeline_mode = #tpu.pipeline_mode<synchronous>, transform_indices = @transform_3, window_bounds = array<i64: 1, 128>}, {transform_indices = @transform_4, window_bounds = array<i64: 1, 17, 128>}]} {
    %c0 = arith.constant 0 : index
    %c0_0 = arith.constant 0 : index
    %c0_1 = arith.constant 0 : index
    %0 = vector.load %arg1[%c0, %c0_0, %c0_1] : memref<1x17x128xf32, #tpu.memory_space<vmem>>, vector<1x17x128xf32>
    %1 = vector.shape_cast %0 : vector<1x17x128xf32> to vector<17x128xf32>
    %2 = arith.truncf %1 : vector<17x128xf32> to vector<17x128xbf16>
    %c0_2 = arith.constant 0 : index
    %c0_3 = arith.constant 0 : index
    %3 = vector.load %arg3[%c0_2, %c0_3] : memref<128x128xf32, #tpu.memory_space<vmem>>, vector<128x128xf32>
    %4 = arith.truncf %3 : vector<128x128xf32> to vector<128x128xbf16>
    %cst = arith.constant dense<0.000000e+00> : vector<17x128xf32>
    %5 = tpu.matmul %2, %4, %cst {dimension_numbers = #tpu.dot_dimension_numbers<[1], [0], [0], [1], [0, 0, 1, 1], [], []>} : vector<17x128xbf16>, vector<128x128xbf16>, vector<17x128xf32> -> vector<17x128xf32>
    %c0_4 = arith.constant 0 : index
    %c0_5 = arith.constant 0 : index
    %6 = vector.load %arg4[%c0_4, %c0_5] : memref<1x128xf32, #tpu.memory_space<vmem>>, vector<1x128xf32>
    %7 = vector.broadcast %6 : vector<1x128xf32> to vector<17x128xf32>
    %8 = arith.addf %5, %7 : vector<17x128xf32>
    %c0_6 = arith.constant 0 : index
    %c0_7 = arith.constant 0 : index
    %c0_8 = arith.constant 0 : index
    %9 = vector.load %arg2[%c0_6, %c0_7, %c0_8] : memref<1x17x128xf32, #tpu.memory_space<vmem>>, vector<1x17x128xf32>
    %10 = vector.shape_cast %9 : vector<1x17x128xf32> to vector<17x128xf32>
    %11 = arith.addf %8, %10 : vector<17x128xf32>
    %c0_9 = arith.constant 0 : index
    %c0_10 = arith.constant 0 : index
    %c0_11 = arith.constant 0 : index
    %12 = vector.load %arg5[%c0_9, %c0_10, %c0_11] : memref<1x17x128xf32, #tpu.memory_space<vmem>>, vector<1x17x128xf32>
    %13 = vector.shape_cast %12 : vector<1x17x128xf32> to vector<17x128xf32>
    %14 = vector.shape_cast %11 : vector<17x128xf32> to vector<1x17x128xf32>
    tpu.vector_store %arg5[%c0_9, %c0_10, %c0_11], %14 {strides = array<i32>} : memref<1x17x128xf32, #tpu.memory_space<vmem>>, vector<1x17x128xf32>,
    return
  }
  func.func @transform_0(%arg0: i32) -> (i32, i32, i32) {
    %c0_i32 = arith.constant 0 : i32
    %c0_i32_0 = arith.constant 0 : i32
    %c0_i32_1 = arith.constant 0 : i32
    return %arg0, %c0_i32, %c0_i32_0 : i32, i32, i32
  }
  func.func @transform_1(%arg0: i32) -> (i32, i32, i32) {
    %c0_i32 = arith.constant 0 : i32
    %c0_i32_0 = arith.constant 0 : i32
    %c0_i32_1 = arith.constant 0 : i32
    return %arg0, %c0_i32, %c0_i32_0 : i32, i32, i32
  }
  func.func @transform_2(%arg0: i32) -> (i32, i32) {
    %c0_i32 = arith.constant 0 : i32
    %c0_i32_0 = arith.constant 0 : i32
    %c0_i32_1 = arith.constant 0 : i32
    return %c0_i32, %c0_i32_0 : i32, i32
  }
  func.func @transform_3(%arg0: i32) -> (i32, i32) {
    %c0_i32 = arith.constant 0 : i32
    %c0_i32_0 = arith.constant 0 : i32
    %c0_i32_1 = arith.constant 0 : i32
    return %c0_i32, %c0_i32_0 : i32, i32
  }
  func.func @transform_4(%arg0: i32) -> (i32, i32, i32) {
    %c0_i32 = arith.constant 0 : i32
    %c0_i32_0 = arith.constant 0 : i32
    %c0_i32_1 = arith.constant 0 : i32
    return %arg0, %c0_i32, %c0_i32_0 : i32, i32, i32
  }
}

module attributes {stable_mosaic.version = 11 : i64} {
  func.func @_ln_proj_kernel(%arg0: memref<2x128xf32, #tpu.memory_space<vmem>>, %arg1: memref<1x128xf32, #tpu.memory_space<vmem>>, %arg2: memref<1x128xf32, #tpu.memory_space<vmem>>, %arg3: memref<128x64xf32, #tpu.memory_space<vmem>>, %arg4: memref<2x128xf32, #tpu.memory_space<vmem>>, %arg5: memref<2x64xf32, #tpu.memory_space<vmem>>) attributes {dimension_semantics = [], scalar_prefetch = 0 : i64, scratch_operands = 0 : i64, tpu.core_type = #tpu.core_type<tc>} {
    %c0 = arith.constant 0 : index
    %c0_0 = arith.constant 0 : index
    %0 = vector.load %arg0[%c0, %c0_0] : memref<2x128xf32, #tpu.memory_space<vmem>>, vector<2x128xf32>
    %c0_1 = arith.constant 0 : index
    %c0_2 = arith.constant 0 : index
    %1 = vector.load %arg1[%c0_1, %c0_2] : memref<1x128xf32, #tpu.memory_space<vmem>>, vector<1x128xf32>
    %c0_3 = arith.constant 0 : index
    %c0_4 = arith.constant 0 : index
    %2 = vector.load %arg2[%c0_3, %c0_4] : memref<1x128xf32, #tpu.memory_space<vmem>>, vector<1x128xf32>
    %cst = arith.constant dense<0.000000e+00> : vector<2xf32>
    %3 = vector.multi_reduction <add>, %0, %cst [1] : vector<2x128xf32> to vector<2xf32>
    %4 = vector.shape_cast %3 : vector<2xf32> to vector<2x1xf32>
    %cst_5 = arith.constant 1.280000e+02 : f32
    %5 = vector.broadcast %cst_5 : f32 to vector<2x1xf32>
    %6 = arith.divf %4, %5 : vector<2x1xf32>
    %7 = vector.broadcast %6 : vector<2x1xf32> to vector<2x128xf32>
    %8 = arith.subf %0, %7 : vector<2x128xf32>
    %9 = arith.mulf %8, %8 : vector<2x128xf32>
    %cst_6 = arith.constant dense<0.000000e+00> : vector<2xf32>
    %10 = vector.multi_reduction <add>, %9, %cst_6 [1] : vector<2x128xf32> to vector<2xf32>
    %11 = vector.shape_cast %10 : vector<2xf32> to vector<2x1xf32>
    %cst_7 = arith.constant 1.280000e+02 : f32
    %12 = vector.broadcast %cst_7 : f32 to vector<2x1xf32>
    %13 = arith.divf %11, %12 : vector<2x1xf32>
    %14 = vector.broadcast %6 : vector<2x1xf32> to vector<2x128xf32>
    %15 = arith.subf %0, %14 : vector<2x128xf32>
    %cst_8 = arith.constant 9.99999974E-6 : f32
    %16 = vector.broadcast %cst_8 : f32 to vector<2x1xf32>
    %17 = arith.addf %13, %16 : vector<2x1xf32>
    %18 = math.rsqrt %17 : vector<2x1xf32>
    %19 = vector.broadcast %18 : vector<2x1xf32> to vector<2x128xf32>
    %20 = arith.mulf %15, %19 : vector<2x128xf32>
    %21 = vector.broadcast %1 : vector<1x128xf32> to vector<2x128xf32>
    %22 = arith.mulf %20, %21 : vector<2x128xf32>
    %23 = vector.broadcast %2 : vector<1x128xf32> to vector<2x128xf32>
    %24 = arith.addf %22, %23 : vector<2x128xf32>
    %c0_9 = arith.constant 0 : index
    %c0_10 = arith.constant 0 : index
    %25 = vector.load %arg4[%c0_9, %c0_10] : memref<2x128xf32, #tpu.memory_space<vmem>>, vector<2x128xf32>
    tpu.vector_store %arg4[%c0_9, %c0_10], %24 {strides = array<i32>} : memref<2x128xf32, #tpu.memory_space<vmem>>, vector<2x128xf32>,
    %26 = arith.truncf %24 : vector<2x128xf32> to vector<2x128xbf16>
    %c0_11 = arith.constant 0 : index
    %c0_12 = arith.constant 0 : index
    %27 = vector.load %arg3[%c0_11, %c0_12] : memref<128x64xf32, #tpu.memory_space<vmem>>, vector<128x64xf32>
    %28 = arith.truncf %27 : vector<128x64xf32> to vector<128x64xbf16>
    %cst_13 = arith.constant dense<0.000000e+00> : vector<2x64xf32>
    %29 = tpu.matmul %26, %28, %cst_13 {dimension_numbers = #tpu.dot_dimension_numbers<[1], [0], [0], [1], [0, 0, 1, 1], [], []>} : vector<2x128xbf16>, vector<128x64xbf16>, vector<2x64xf32> -> vector<2x64xf32>
    %c0_14 = arith.constant 0 : index
    %c0_15 = arith.constant 0 : index
    %30 = vector.load %arg5[%c0_14, %c0_15] : memref<2x64xf32, #tpu.memory_space<vmem>>, vector<2x64xf32>
    tpu.vector_store %arg5[%c0_14, %c0_15], %29 {strides = array<i32>} : memref<2x64xf32, #tpu.memory_space<vmem>>, vector<2x64xf32>,
    return
  }
}

module attributes {stable_mosaic.version = 11 : i64} {
  func.func @_ln_qkv_kernel(%arg0: i32, %arg1: memref<1x8x128xf32, #tpu.memory_space<vmem>>, %arg2: memref<1x128xf32, #tpu.memory_space<vmem>>, %arg3: memref<1x128xf32, #tpu.memory_space<vmem>>, %arg4: memref<128x384xf32, #tpu.memory_space<vmem>>, %arg5: memref<1x384xf32, #tpu.memory_space<vmem>>, %arg6: memref<1x8x384xf32, #tpu.memory_space<vmem>>) attributes {dimension_semantics = [#tpu.dimension_semantics<parallel>], iteration_bounds = array<i64: 2>, scalar_prefetch = 0 : i64, scratch_operands = 0 : i64, tpu.core_type = #tpu.core_type<tc>, window_params = [{transform_indices = @transform_0, window_bounds = array<i64: 1, 8, 128>}, {pipeline_mode = #tpu.pipeline_mode<synchronous>, transform_indices = @transform_1, window_bounds = array<i64: 1, 128>}, {pipeline_mode = #tpu.pipeline_mode<synchronous>, transform_indices = @transform_2, window_bounds = array<i64: 1, 128>}, {pipeline_mode = #tpu.pipeline_mode<synchronous>, transform_indices = @transform_3, window_bounds = array<i64: 128, 384>}, {pipeline_mode = #tpu.pipeline_mode<synchronous>, transform_indices = @transform_4, window_bounds = array<i64: 1, 384>}, {transform_indices = @transform_5, window_bounds = array<i64: 1, 8, 384>}]} {
    %c0 = arith.constant 0 : index
    %c0_0 = arith.constant 0 : index
    %c0_1 = arith.constant 0 : index
    %0 = vector.load %arg1[%c0, %c0_0, %c0_1] : memref<1x8x128xf32, #tpu.memory_space<vmem>>, vector<1x8x128xf32>
    %1 = vector.shape_cast %0 : vector<1x8x128xf32> to vector<8x128xf32>
    %c0_2 = arith.constant 0 : index
    %c0_3 = arith.constant 0 : index
    %2 = vector.load %arg2[%c0_2, %c0_3] : memref<1x128xf32, #tpu.memory_space<vmem>>, vector<1x128xf32>
    %c0_4 = arith.constant 0 : index
    %c0_5 = arith.constant 0 : index
    %3 = vector.load %arg3[%c0_4, %c0_5] : memref<1x128xf32, #tpu.memory_space<vmem>>, vector<1x128xf32>
    %cst = arith.constant dense<0.000000e+00> : vector<8xf32>
    %4 = vector.multi_reduction <add>, %1, %cst [1] : vector<8x128xf32> to vector<8xf32>
    %5 = vector.shape_cast %4 : vector<8xf32> to vector<8x1xf32>
    %cst_6 = arith.constant 1.280000e+02 : f32
    %6 = vector.broadcast %cst_6 : f32 to vector<8x1xf32>
    %7 = arith.divf %5, %6 : vector<8x1xf32>
    %8 = vector.broadcast %7 : vector<8x1xf32> to vector<8x128xf32>
    %9 = arith.subf %1, %8 : vector<8x128xf32>
    %10 = arith.mulf %9, %9 : vector<8x128xf32>
    %cst_7 = arith.constant dense<0.000000e+00> : vector<8xf32>
    %11 = vector.multi_reduction <add>, %10, %cst_7 [1] : vector<8x128xf32> to vector<8xf32>
    %12 = vector.shape_cast %11 : vector<8xf32> to vector<8x1xf32>
    %cst_8 = arith.constant 1.280000e+02 : f32
    %13 = vector.broadcast %cst_8 : f32 to vector<8x1xf32>
    %14 = arith.divf %12, %13 : vector<8x1xf32>
    %15 = vector.broadcast %7 : vector<8x1xf32> to vector<8x128xf32>
    %16 = arith.subf %1, %15 : vector<8x128xf32>
    %cst_9 = arith.constant 9.99999974E-6 : f32
    %17 = vector.broadcast %cst_9 : f32 to vector<8x1xf32>
    %18 = arith.addf %14, %17 : vector<8x1xf32>
    %19 = math.rsqrt %18 : vector<8x1xf32>
    %20 = vector.broadcast %19 : vector<8x1xf32> to vector<8x128xf32>
    %21 = arith.mulf %16, %20 : vector<8x128xf32>
    %22 = vector.broadcast %2 : vector<1x128xf32> to vector<8x128xf32>
    %23 = arith.mulf %21, %22 : vector<8x128xf32>
    %24 = vector.broadcast %3 : vector<1x128xf32> to vector<8x128xf32>
    %25 = arith.addf %23, %24 : vector<8x128xf32>
    %26 = arith.truncf %25 : vector<8x128xf32> to vector<8x128xbf16>
    %c0_10 = arith.constant 0 : index
    %c0_11 = arith.constant 0 : index
    %27 = vector.load %arg4[%c0_10, %c0_11] : memref<128x384xf32, #tpu.memory_space<vmem>>, vector<128x384xf32>
    %28 = arith.truncf %27 : vector<128x384xf32> to vector<128x384xbf16>
    %cst_12 = arith.constant dense<0.000000e+00> : vector<8x384xf32>
    %29 = tpu.matmul %26, %28, %cst_12 {dimension_numbers = #tpu.dot_dimension_numbers<[1], [0], [0], [1], [0, 0, 1, 1], [], []>} : vector<8x128xbf16>, vector<128x384xbf16>, vector<8x384xf32> -> vector<8x384xf32>
    %c0_13 = arith.constant 0 : index
    %c0_14 = arith.constant 0 : index
    %30 = vector.load %arg5[%c0_13, %c0_14] : memref<1x384xf32, #tpu.memory_space<vmem>>, vector<1x384xf32>
    %31 = vector.broadcast %30 : vector<1x384xf32> to vector<8x384xf32>
    %32 = arith.addf %29, %31 : vector<8x384xf32>
    %c0_15 = arith.constant 0 : index
    %c0_16 = arith.constant 0 : index
    %c0_17 = arith.constant 0 : index
    %33 = vector.load %arg6[%c0_15, %c0_16, %c0_17] : memref<1x8x384xf32, #tpu.memory_space<vmem>>, vector<1x8x384xf32>
    %34 = vector.shape_cast %33 : vector<1x8x384xf32> to vector<8x384xf32>
    %35 = vector.shape_cast %32 : vector<8x384xf32> to vector<1x8x384xf32>
    tpu.vector_store %arg6[%c0_15, %c0_16, %c0_17], %35 {strides = array<i32>} : memref<1x8x384xf32, #tpu.memory_space<vmem>>, vector<1x8x384xf32>,
    return
  }
  func.func @transform_0(%arg0: i32) -> (i32, i32, i32) {
    %c0_i32 = arith.constant 0 : i32
    %c0_i32_0 = arith.constant 0 : i32
    %c0_i32_1 = arith.constant 0 : i32
    return %arg0, %c0_i32, %c0_i32_0 : i32, i32, i32
  }
  func.func @transform_1(%arg0: i32) -> (i32, i32) {
    %c0_i32 = arith.constant 0 : i32
    %c0_i32_0 = arith.constant 0 : i32
    %c0_i32_1 = arith.constant 0 : i32
    return %c0_i32, %c0_i32_0 : i32, i32
  }
  func.func @transform_2(%arg0: i32) -> (i32, i32) {
    %c0_i32 = arith.constant 0 : i32
    %c0_i32_0 = arith.constant 0 : i32
    %c0_i32_1 = arith.constant 0 : i32
    return %c0_i32, %c0_i32_0 : i32, i32
  }
  func.func @transform_3(%arg0: i32) -> (i32, i32) {
    %c0_i32 = arith.constant 0 : i32
    %c0_i32_0 = arith.constant 0 : i32
    %c0_i32_1 = arith.constant 0 : i32
    return %c0_i32, %c0_i32_0 : i32, i32
  }
  func.func @transform_4(%arg0: i32) -> (i32, i32) {
    %c0_i32 = arith.constant 0 : i32
    %c0_i32_0 = arith.constant 0 : i32
    %c0_i32_1 = arith.constant 0 : i32
    return %c0_i32, %c0_i32_0 : i32, i32
  }
  func.func @transform_5(%arg0: i32) -> (i32, i32, i32) {
    %c0_i32 = arith.constant 0 : i32
    %c0_i32_0 = arith.constant 0 : i32
    %c0_i32_1 = arith.constant 0 : i32
    return %arg0, %c0_i32, %c0_i32_0 : i32, i32, i32
  }
}

module attributes {stable_mosaic.version = 11 : i64} {
  func.func @_attention_kernel(%arg0: i32, %arg1: memref<1x4x8x32xf32, #tpu.memory_space<vmem>>, %arg2: memref<1x4x8x32xf32, #tpu.memory_space<vmem>>, %arg3: memref<1x4x8x32xf32, #tpu.memory_space<vmem>>, %arg4: memref<1x4x8x32xf32, #tpu.memory_space<vmem>>) attributes {dimension_semantics = [#tpu.dimension_semantics<parallel>], iteration_bounds = array<i64: 2>, scalar_prefetch = 0 : i64, scratch_operands = 0 : i64, tpu.core_type = #tpu.core_type<tc>, window_params = [{transform_indices = @transform_0, window_bounds = array<i64: 1, 4, 8, 32>}, {transform_indices = @transform_1, window_bounds = array<i64: 1, 4, 8, 32>}, {transform_indices = @transform_2, window_bounds = array<i64: 1, 4, 8, 32>}, {transform_indices = @transform_3, window_bounds = array<i64: 1, 4, 8, 32>}]} {
    %c0 = arith.constant 0 : index
    %c0_0 = arith.constant 0 : index
    %c0_1 = arith.constant 0 : index
    %c0_2 = arith.constant 0 : index
    %0 = vector.load %arg1[%c0, %c0_0, %c0_1, %c0_2] : memref<1x4x8x32xf32, #tpu.memory_space<vmem>>, vector<1x4x8x32xf32>
    %1 = vector.shape_cast %0 : vector<1x4x8x32xf32> to vector<4x8x32xf32>
    %2 = arith.truncf %1 : vector<4x8x32xf32> to vector<4x8x32xbf16>
    %c0_3 = arith.constant 0 : index
    %c0_4 = arith.constant 0 : index
    %c0_5 = arith.constant 0 : index
    %c0_6 = arith.constant 0 : index
    %3 = vector.load %arg2[%c0_3, %c0_4, %c0_5, %c0_6] : memref<1x4x8x32xf32, #tpu.memory_space<vmem>>, vector<1x4x8x32xf32>
    %4 = vector.shape_cast %3 : vector<1x4x8x32xf32> to vector<4x8x32xf32>
    %5 = arith.truncf %4 : vector<4x8x32xf32> to vector<4x8x32xbf16>
    %c0_7 = arith.constant 0 : index
    %c0_8 = arith.constant 0 : index
    %c0_9 = arith.constant 0 : index
    %c0_10 = arith.constant 0 : index
    %6 = vector.load %arg3[%c0_7, %c0_8, %c0_9, %c0_10] : memref<1x4x8x32xf32, #tpu.memory_space<vmem>>, vector<1x4x8x32xf32>
    %7 = vector.shape_cast %6 : vector<1x4x8x32xf32> to vector<4x8x32xf32>
    %8 = arith.truncf %7 : vector<4x8x32xf32> to vector<4x8x32xbf16>
    "tpu.trace_start"() <{level = 10 : i32, message = "hqd,hkd->hqk"}> : () -> ()
    %cst = arith.constant dense<0.000000e+00> : vector<4x8x8xf32>
    %9 = tpu.matmul %2, %5, %cst {dimension_numbers = #tpu.dot_dimension_numbers<[2], [2], [1], [1], [0, 0, 0, 1, 1, 1], [0], [0]>} : vector<4x8x32xbf16>, vector<4x8x32xbf16>, vector<4x8x8xf32> -> vector<4x8x8xf32>
    "tpu.trace_stop"() : () -> ()
    %10 = tpu.iota {dimensions = array<i32: 1>} : vector<4x8x8xi32>
    %11 = tpu.iota {dimensions = array<i32: 2>} : vector<4x8x8xi32>
    %12 = arith.cmpi sle, %11, %10 : vector<4x8x8xi32>
    %cst_11 = arith.constant -1.000000e+09 : f32
    %13 = vector.broadcast %cst_11 : f32 to vector<4x8x8xf32>
    %14 = arith.select %12, %9, %13 : vector<4x8x8xi1>, vector<4x8x8xf32>
    %cst_12 = arith.constant dense<0xFF800000> : vector<4x8xf32>
    %15 = vector.multi_reduction <maximumf>, %14, %cst_12 [2] : vector<4x8x8xf32> to vector<4x8xf32>
    %16 = vector.shape_cast %15 : vector<4x8xf32> to vector<4x8x1xf32>
    %17 = vector.broadcast %16 : vector<4x8x1xf32> to vector<4x8x8xf32>
    %18 = arith.subf %14, %17 : vector<4x8x8xf32>
    %19 = math.exp %18 : vector<4x8x8xf32>
    %cst_13 = arith.constant dense<0.000000e+00> : vector<4x8xf32>
    %20 = vector.multi_reduction <add>, %19, %cst_13 [2] : vector<4x8x8xf32> to vector<4x8xf32>
    %21 = vector.shape_cast %20 : vector<4x8xf32> to vector<4x8x1xf32>
    %22 = tpu.reciprocal %21 {approx = true} : vector<4x8x1xf32> -> vector<4x8x1xf32>
    %23 = vector.broadcast %22 : vector<4x8x1xf32> to vector<4x8x8xf32>
    %24 = arith.mulf %19, %23 : vector<4x8x8xf32>
    %25 = arith.truncf %24 : vector<4x8x8xf32> to vector<4x8x8xbf16>
    "tpu.trace_start"() <{level = 10 : i32, message = "hqk,hkd->hqd"}> : () -> ()
    %cst_14 = arith.constant dense<0.000000e+00> : vector<4x8x32xf32>
    %26 = tpu.matmul %25, %8, %cst_14 {dimension_numbers = #tpu.dot_dimension_numbers<[2], [1], [1], [2], [0, 0, 0, 1, 1, 2], [0], [0]>} : vector<4x8x8xbf16>, vector<4x8x32xbf16>, vector<4x8x32xf32> -> vector<4x8x32xf32>
    "tpu.trace_stop"() : () -> ()
    %c0_15 = arith.constant 0 : index
    %c0_16 = arith.constant 0 : index
    %c0_17 = arith.constant 0 : index
    %c0_18 = arith.constant 0 : index
    %27 = vector.load %arg4[%c0_15, %c0_16, %c0_17, %c0_18] : memref<1x4x8x32xf32, #tpu.memory_space<vmem>>, vector<1x4x8x32xf32>
    %28 = vector.shape_cast %27 : vector<1x4x8x32xf32> to vector<4x8x32xf32>
    %29 = vector.shape_cast %26 : vector<4x8x32xf32> to vector<1x4x8x32xf32>
    tpu.vector_store %arg4[%c0_15, %c0_16, %c0_17, %c0_18], %29 {strides = array<i32>} : memref<1x4x8x32xf32, #tpu.memory_space<vmem>>, vector<1x4x8x32xf32>,
    return
  }
  func.func @transform_0(%arg0: i32) -> (i32, i32, i32, i32) {
    %c0_i32 = arith.constant 0 : i32
    %c0_i32_0 = arith.constant 0 : i32
    %c0_i32_1 = arith.constant 0 : i32
    %c0_i32_2 = arith.constant 0 : i32
    return %arg0, %c0_i32, %c0_i32_0, %c0_i32_1 : i32, i32, i32, i32
  }
  func.func @transform_1(%arg0: i32) -> (i32, i32, i32, i32) {
    %c0_i32 = arith.constant 0 : i32
    %c0_i32_0 = arith.constant 0 : i32
    %c0_i32_1 = arith.constant 0 : i32
    %c0_i32_2 = arith.constant 0 : i32
    return %arg0, %c0_i32, %c0_i32_0, %c0_i32_1 : i32, i32, i32, i32
  }
  func.func @transform_2(%arg0: i32) -> (i32, i32, i32, i32) {
    %c0_i32 = arith.constant 0 : i32
    %c0_i32_0 = arith.constant 0 : i32
    %c0_i32_1 = arith.constant 0 : i32
    %c0_i32_2 = arith.constant 0 : i32
    return %arg0, %c0_i32, %c0_i32_0, %c0_i32_1 : i32, i32, i32, i32
  }
  func.func @transform_3(%arg0: i32) -> (i32, i32, i32, i32) {
    %c0_i32 = arith.constant 0 : i32
    %c0_i32_0 = arith.constant 0 : i32
    %c0_i32_1 = arith.constant 0 : i32
    %c0_i32_2 = arith.constant 0 : i32
    return %arg0, %c0_i32, %c0_i32_0, %c0_i32_1 : i32, i32, i32, i32
  }
}

module attributes {stable_mosaic.version = 11 : i64} {
  func.func @_ln_mlp_res_kernel(%arg0: i32, %arg1: memref<1x8x128xf32, #tpu.memory_space<vmem>>, %arg2: memref<1x128xf32, #tpu.memory_space<vmem>>, %arg3: memref<1x128xf32, #tpu.memory_space<vmem>>, %arg4: memref<128x256xf32, #tpu.memory_space<vmem>>, %arg5: memref<1x256xf32, #tpu.memory_space<vmem>>, %arg6: memref<256x128xf32, #tpu.memory_space<vmem>>, %arg7: memref<1x128xf32, #tpu.memory_space<vmem>>, %arg8: memref<1x8x128xf32, #tpu.memory_space<vmem>>) attributes {dimension_semantics = [#tpu.dimension_semantics<parallel>], iteration_bounds = array<i64: 2>, scalar_prefetch = 0 : i64, scratch_operands = 0 : i64, tpu.core_type = #tpu.core_type<tc>, window_params = [{transform_indices = @transform_0, window_bounds = array<i64: 1, 8, 128>}, {pipeline_mode = #tpu.pipeline_mode<synchronous>, transform_indices = @transform_1, window_bounds = array<i64: 1, 128>}, {pipeline_mode = #tpu.pipeline_mode<synchronous>, transform_indices = @transform_2, window_bounds = array<i64: 1, 128>}, {pipeline_mode = #tpu.pipeline_mode<synchronous>, transform_indices = @transform_3, window_bounds = array<i64: 128, 256>}, {pipeline_mode = #tpu.pipeline_mode<synchronous>, transform_indices = @transform_4, window_bounds = array<i64: 1, 256>}, {pipeline_mode = #tpu.pipeline_mode<synchronous>, transform_indices = @transform_5, window_bounds = array<i64: 256, 128>}, {pipeline_mode = #tpu.pipeline_mode<synchronous>, transform_indices = @transform_6, window_bounds = array<i64: 1, 128>}, {transform_indices = @transform_7, window_bounds = array<i64: 1, 8, 128>}]} {
    %c0 = arith.constant 0 : index
    %c0_0 = arith.constant 0 : index
    %c0_1 = arith.constant 0 : index
    %0 = vector.load %arg1[%c0, %c0_0, %c0_1] : memref<1x8x128xf32, #tpu.memory_space<vmem>>, vector<1x8x128xf32>
    %1 = vector.shape_cast %0 : vector<1x8x128xf32> to vector<8x128xf32>
    %c0_2 = arith.constant 0 : index
    %c0_3 = arith.constant 0 : index
    %2 = vector.load %arg2[%c0_2, %c0_3] : memref<1x128xf32, #tpu.memory_space<vmem>>, vector<1x128xf32>
    %c0_4 = arith.constant 0 : index
    %c0_5 = arith.constant 0 : index
    %3 = vector.load %arg3[%c0_4, %c0_5] : memref<1x128xf32, #tpu.memory_space<vmem>>, vector<1x128xf32>
    %cst = arith.constant dense<0.000000e+00> : vector<8xf32>
    %4 = vector.multi_reduction <add>, %1, %cst [1] : vector<8x128xf32> to vector<8xf32>
    %5 = vector.shape_cast %4 : vector<8xf32> to vector<8x1xf32>
    %cst_6 = arith.constant 1.280000e+02 : f32
    %6 = vector.broadcast %cst_6 : f32 to vector<8x1xf32>
    %7 = arith.divf %5, %6 : vector<8x1xf32>
    %8 = vector.broadcast %7 : vector<8x1xf32> to vector<8x128xf32>
    %9 = arith.subf %1, %8 : vector<8x128xf32>
    %10 = arith.mulf %9, %9 : vector<8x128xf32>
    %cst_7 = arith.constant dense<0.000000e+00> : vector<8xf32>
    %11 = vector.multi_reduction <add>, %10, %cst_7 [1] : vector<8x128xf32> to vector<8xf32>
    %12 = vector.shape_cast %11 : vector<8xf32> to vector<8x1xf32>
    %cst_8 = arith.constant 1.280000e+02 : f32
    %13 = vector.broadcast %cst_8 : f32 to vector<8x1xf32>
    %14 = arith.divf %12, %13 : vector<8x1xf32>
    %15 = vector.broadcast %7 : vector<8x1xf32> to vector<8x128xf32>
    %16 = arith.subf %1, %15 : vector<8x128xf32>
    %cst_9 = arith.constant 9.99999974E-6 : f32
    %17 = vector.broadcast %cst_9 : f32 to vector<8x1xf32>
    %18 = arith.addf %14, %17 : vector<8x1xf32>
    %19 = math.rsqrt %18 : vector<8x1xf32>
    %20 = vector.broadcast %19 : vector<8x1xf32> to vector<8x128xf32>
    %21 = arith.mulf %16, %20 : vector<8x128xf32>
    %22 = vector.broadcast %2 : vector<1x128xf32> to vector<8x128xf32>
    %23 = arith.mulf %21, %22 : vector<8x128xf32>
    %24 = vector.broadcast %3 : vector<1x128xf32> to vector<8x128xf32>
    %25 = arith.addf %23, %24 : vector<8x128xf32>
    %26 = arith.truncf %25 : vector<8x128xf32> to vector<8x128xbf16>
    %c0_10 = arith.constant 0 : index
    %c0_11 = arith.constant 0 : index
    %27 = vector.load %arg4[%c0_10, %c0_11] : memref<128x256xf32, #tpu.memory_space<vmem>>, vector<128x256xf32>
    %28 = arith.truncf %27 : vector<128x256xf32> to vector<128x256xbf16>
    %cst_12 = arith.constant dense<0.000000e+00> : vector<8x256xf32>
    %29 = tpu.matmul %26, %28, %cst_12 {dimension_numbers = #tpu.dot_dimension_numbers<[1], [0], [0], [1], [0, 0, 1, 1], [], []>} : vector<8x128xbf16>, vector<128x256xbf16>, vector<8x256xf32> -> vector<8x256xf32>
    %c0_13 = arith.constant 0 : index
    %c0_14 = arith.constant 0 : index
    %30 = vector.load %arg5[%c0_13, %c0_14] : memref<1x256xf32, #tpu.memory_space<vmem>>, vector<1x256xf32>
    %31 = vector.broadcast %30 : vector<1x256xf32> to vector<8x256xf32>
    %32 = arith.addf %29, %31 : vector<8x256xf32>
    %cst_15 = arith.constant 1.702000e+00 : f32
    %33 = vector.broadcast %cst_15 : f32 to vector<8x256xf32>
    %34 = arith.mulf %33, %32 : vector<8x256xf32>
    %35 = arith.negf %34 : vector<8x256xf32>
    %36 = math.exp %35 : vector<8x256xf32>
    %cst_16 = arith.constant 1.000000e+00 : f32
    %37 = vector.broadcast %cst_16 : f32 to vector<8x256xf32>
    %38 = arith.addf %37, %36 : vector<8x256xf32>
    %39 = arith.divf %37, %38 : vector<8x256xf32>
    %40 = arith.mulf %32, %39 : vector<8x256xf32>
    %41 = arith.truncf %40 : vector<8x256xf32> to vector<8x256xbf16>
    %c0_17 = arith.constant 0 : index
    %c0_18 = arith.constant 0 : index
    %42 = vector.load %arg6[%c0_17, %c0_18] : memref<256x128xf32, #tpu.memory_space<vmem>>, vector<256x128xf32>
    %43 = arith.truncf %42 : vector<256x128xf32> to vector<256x128xbf16>
    %cst_19 = arith.constant dense<0.000000e+00> : vector<8x128xf32>
    %44 = tpu.matmul %41, %43, %cst_19 {dimension_numbers = #tpu.dot_dimension_numbers<[1], [0], [0], [1], [0, 0, 1, 1], [], []>} : vector<8x256xbf16>, vector<256x128xbf16>, vector<8x128xf32> -> vector<8x128xf32>
    %c0_20 = arith.constant 0 : index
    %c0_21 = arith.constant 0 : index
    %45 = vector.load %arg7[%c0_20, %c0_21] : memref<1x128xf32, #tpu.memory_space<vmem>>, vector<1x128xf32>
    %46 = vector.broadcast %45 : vector<1x128xf32> to vector<8x128xf32>
    %47 = arith.addf %44, %46 : vector<8x128xf32>
    %48 = arith.addf %1, %47 : vector<8x128xf32>
    %c0_22 = arith.constant 0 : index
    %c0_23 = arith.constant 0 : index
    %c0_24 = arith.constant 0 : index
    %49 = vector.load %arg8[%c0_22, %c0_23, %c0_24] : memref<1x8x128xf32, #tpu.memory_space<vmem>>, vector<1x8x128xf32>
    %50 = vector.shape_cast %49 : vector<1x8x128xf32> to vector<8x128xf32>
    %51 = vector.shape_cast %48 : vector<8x128xf32> to vector<1x8x128xf32>
    tpu.vector_store %arg8[%c0_22, %c0_23, %c0_24], %51 {strides = array<i32>} : memref<1x8x128xf32, #tpu.memory_space<vmem>>, vector<1x8x128xf32>,
    return
  }
  func.func @transform_0(%arg0: i32) -> (i32, i32, i32) {
    %c0_i32 = arith.constant 0 : i32
    %c0_i32_0 = arith.constant 0 : i32
    %c0_i32_1 = arith.constant 0 : i32
    return %arg0, %c0_i32, %c0_i32_0 : i32, i32, i32
  }
  func.func @transform_1(%arg0: i32) -> (i32, i32) {
    %c0_i32 = arith.constant 0 : i32
    %c0_i32_0 = arith.constant 0 : i32
    %c0_i32_1 = arith.constant 0 : i32
    return %c0_i32, %c0_i32_0 : i32, i32
  }
  func.func @transform_2(%arg0: i32) -> (i32, i32) {
    %c0_i32 = arith.constant 0 : i32
    %c0_i32_0 = arith.constant 0 : i32
    %c0_i32_1 = arith.constant 0 : i32
    return %c0_i32, %c0_i32_0 : i32, i32
  }
  func.func @transform_3(%arg0: i32) -> (i32, i32) {
    %c0_i32 = arith.constant 0 : i32
    %c0_i32_0 = arith.constant 0 : i32
    %c0_i32_1 = arith.constant 0 : i32
    return %c0_i32, %c0_i32_0 : i32, i32
  }
  func.func @transform_4(%arg0: i32) -> (i32, i32) {
    %c0_i32 = arith.constant 0 : i32
    %c0_i32_0 = arith.constant 0 : i32
    %c0_i32_1 = arith.constant 0 : i32
    return %c0_i32, %c0_i32_0 : i32, i32
  }
  func.func @transform_5(%arg0: i32) -> (i32, i32) {
    %c0_i32 = arith.constant 0 : i32
    %c0_i32_0 = arith.constant 0 : i32
    %c0_i32_1 = arith.constant 0 : i32
    return %c0_i32, %c0_i32_0 : i32, i32
  }
  func.func @transform_6(%arg0: i32) -> (i32, i32) {
    %c0_i32 = arith.constant 0 : i32
    %c0_i32_0 = arith.constant 0 : i32
    %c0_i32_1 = arith.constant 0 : i32
    return %c0_i32, %c0_i32_0 : i32, i32
  }
  func.func @transform_7(%arg0: i32) -> (i32, i32, i32) {
    %c0_i32 = arith.constant 0 : i32
    %c0_i32_0 = arith.constant 0 : i32
    %c0_i32_1 = arith.constant 0 : i32
    return %arg0, %c0_i32, %c0_i32_0 : i32, i32, i32
  }
}

module attributes {stable_mosaic.version = 11 : i64} {
  func.func @_proj_res_kernel(%arg0: i32, %arg1: memref<1x8x128xf32, #tpu.memory_space<vmem>>, %arg2: memref<1x8x128xf32, #tpu.memory_space<vmem>>, %arg3: memref<128x128xf32, #tpu.memory_space<vmem>>, %arg4: memref<1x128xf32, #tpu.memory_space<vmem>>, %arg5: memref<1x8x128xf32, #tpu.memory_space<vmem>>) attributes {dimension_semantics = [#tpu.dimension_semantics<parallel>], iteration_bounds = array<i64: 2>, scalar_prefetch = 0 : i64, scratch_operands = 0 : i64, tpu.core_type = #tpu.core_type<tc>, window_params = [{transform_indices = @transform_0, window_bounds = array<i64: 1, 8, 128>}, {transform_indices = @transform_1, window_bounds = array<i64: 1, 8, 128>}, {pipeline_mode = #tpu.pipeline_mode<synchronous>, transform_indices = @transform_2, window_bounds = array<i64: 128, 128>}, {pipeline_mode = #tpu.pipeline_mode<synchronous>, transform_indices = @transform_3, window_bounds = array<i64: 1, 128>}, {transform_indices = @transform_4, window_bounds = array<i64: 1, 8, 128>}]} {
    %c0 = arith.constant 0 : index
    %c0_0 = arith.constant 0 : index
    %c0_1 = arith.constant 0 : index
    %0 = vector.load %arg1[%c0, %c0_0, %c0_1] : memref<1x8x128xf32, #tpu.memory_space<vmem>>, vector<1x8x128xf32>
    %1 = vector.shape_cast %0 : vector<1x8x128xf32> to vector<8x128xf32>
    %2 = arith.truncf %1 : vector<8x128xf32> to vector<8x128xbf16>
    %c0_2 = arith.constant 0 : index
    %c0_3 = arith.constant 0 : index
    %3 = vector.load %arg3[%c0_2, %c0_3] : memref<128x128xf32, #tpu.memory_space<vmem>>, vector<128x128xf32>
    %4 = arith.truncf %3 : vector<128x128xf32> to vector<128x128xbf16>
    %cst = arith.constant dense<0.000000e+00> : vector<8x128xf32>
    %5 = tpu.matmul %2, %4, %cst {dimension_numbers = #tpu.dot_dimension_numbers<[1], [0], [0], [1], [0, 0, 1, 1], [], []>} : vector<8x128xbf16>, vector<128x128xbf16>, vector<8x128xf32> -> vector<8x128xf32>
    %c0_4 = arith.constant 0 : index
    %c0_5 = arith.constant 0 : index
    %6 = vector.load %arg4[%c0_4, %c0_5] : memref<1x128xf32, #tpu.memory_space<vmem>>, vector<1x128xf32>
    %7 = vector.broadcast %6 : vector<1x128xf32> to vector<8x128xf32>
    %8 = arith.addf %5, %7 : vector<8x128xf32>
    %c0_6 = arith.constant 0 : index
    %c0_7 = arith.constant 0 : index
    %c0_8 = arith.constant 0 : index
    %9 = vector.load %arg2[%c0_6, %c0_7, %c0_8] : memref<1x8x128xf32, #tpu.memory_space<vmem>>, vector<1x8x128xf32>
    %10 = vector.shape_cast %9 : vector<1x8x128xf32> to vector<8x128xf32>
    %11 = arith.addf %8, %10 : vector<8x128xf32>
    %c0_9 = arith.constant 0 : index
    %c0_10 = arith.constant 0 : index
    %c0_11 = arith.constant 0 : index
    %12 = vector.load %arg5[%c0_9, %c0_10, %c0_11] : memref<1x8x128xf32, #tpu.memory_space<vmem>>, vector<1x8x128xf32>
    %13 = vector.shape_cast %12 : vector<1x8x128xf32> to vector<8x128xf32>
    %14 = vector.shape_cast %11 : vector<8x128xf32> to vector<1x8x128xf32>
    tpu.vector_store %arg5[%c0_9, %c0_10, %c0_11], %14 {strides = array<i32>} : memref<1x8x128xf32, #tpu.memory_space<vmem>>, vector<1x8x128xf32>,
    return
  }
  func.func @transform_0(%arg0: i32) -> (i32, i32, i32) {
    %c0_i32 = arith.constant 0 : i32
    %c0_i32_0 = arith.constant 0 : i32
    %c0_i32_1 = arith.constant 0 : i32
    return %arg0, %c0_i32, %c0_i32_0 : i32, i32, i32
  }
  func.func @transform_1(%arg0: i32) -> (i32, i32, i32) {
    %c0_i32 = arith.constant 0 : i32
    %c0_i32_0 = arith.constant 0 : i32
    %c0_i32_1 = arith.constant 0 : i32
    return %arg0, %c0_i32, %c0_i32_0 : i32, i32, i32
  }
  func.func @transform_2(%arg0: i32) -> (i32, i32) {
    %c0_i32 = arith.constant 0 : i32
    %c0_i32_0 = arith.constant 0 : i32
    %c0_i32_1 = arith.constant 0 : i32
    return %c0_i32, %c0_i32_0 : i32, i32
  }
  func.func @transform_3(%arg0: i32) -> (i32, i32) {
    %c0_i32 = arith.constant 0 : i32
    %c0_i32_0 = arith.constant 0 : i32
    %c0_i32_1 = arith.constant 0 : i32
    return %c0_i32, %c0_i32_0 : i32, i32
  }
  func.func @transform_4(%arg0: i32) -> (i32, i32, i32) {
    %c0_i32 = arith.constant 0 : i32
    %c0_i32_0 = arith.constant 0 : i32
    %c0_i32_1 = arith.constant 0 : i32
    return %arg0, %c0_i32, %c0_i32_0 : i32, i32, i32
  }
}

module attributes {stable_mosaic.version = 11 : i64} {
  func.func @_layernorm_kernel(%arg0: memref<16x128xf32, #tpu.memory_space<vmem>>, %arg1: memref<1x128xf32, #tpu.memory_space<vmem>>, %arg2: memref<1x128xf32, #tpu.memory_space<vmem>>, %arg3: memref<16x128xf32, #tpu.memory_space<vmem>>) attributes {dimension_semantics = [], scalar_prefetch = 0 : i64, scratch_operands = 0 : i64, tpu.core_type = #tpu.core_type<tc>} {
    %c0 = arith.constant 0 : index
    %c0_0 = arith.constant 0 : index
    %0 = vector.load %arg0[%c0, %c0_0] : memref<16x128xf32, #tpu.memory_space<vmem>>, vector<16x128xf32>
    %c0_1 = arith.constant 0 : index
    %c0_2 = arith.constant 0 : index
    %1 = vector.load %arg1[%c0_1, %c0_2] : memref<1x128xf32, #tpu.memory_space<vmem>>, vector<1x128xf32>
    %c0_3 = arith.constant 0 : index
    %c0_4 = arith.constant 0 : index
    %2 = vector.load %arg2[%c0_3, %c0_4] : memref<1x128xf32, #tpu.memory_space<vmem>>, vector<1x128xf32>
    %cst = arith.constant dense<0.000000e+00> : vector<16xf32>
    %3 = vector.multi_reduction <add>, %0, %cst [1] : vector<16x128xf32> to vector<16xf32>
    %4 = vector.shape_cast %3 : vector<16xf32> to vector<16x1xf32>
    %cst_5 = arith.constant 1.280000e+02 : f32
    %5 = vector.broadcast %cst_5 : f32 to vector<16x1xf32>
    %6 = arith.divf %4, %5 : vector<16x1xf32>
    %7 = vector.broadcast %6 : vector<16x1xf32> to vector<16x128xf32>
    %8 = arith.subf %0, %7 : vector<16x128xf32>
    %9 = arith.mulf %8, %8 : vector<16x128xf32>
    %cst_6 = arith.constant dense<0.000000e+00> : vector<16xf32>
    %10 = vector.multi_reduction <add>, %9, %cst_6 [1] : vector<16x128xf32> to vector<16xf32>
    %11 = vector.shape_cast %10 : vector<16xf32> to vector<16x1xf32>
    %cst_7 = arith.constant 1.280000e+02 : f32
    %12 = vector.broadcast %cst_7 : f32 to vector<16x1xf32>
    %13 = arith.divf %11, %12 : vector<16x1xf32>
    %14 = vector.broadcast %6 : vector<16x1xf32> to vector<16x128xf32>
    %15 = arith.subf %0, %14 : vector<16x128xf32>
    %cst_8 = arith.constant 9.99999974E-6 : f32
    %16 = vector.broadcast %cst_8 : f32 to vector<16x1xf32>
    %17 = arith.addf %13, %16 : vector<16x1xf32>
    %18 = math.rsqrt %17 : vector<16x1xf32>
    %19 = vector.broadcast %18 : vector<16x1xf32> to vector<16x128xf32>
    %20 = arith.mulf %15, %19 : vector<16x128xf32>
    %21 = vector.broadcast %1 : vector<1x128xf32> to vector<16x128xf32>
    %22 = arith.mulf %20, %21 : vector<16x128xf32>
    %23 = vector.broadcast %2 : vector<1x128xf32> to vector<16x128xf32>
    %24 = arith.addf %22, %23 : vector<16x128xf32>
    %c0_9 = arith.constant 0 : index
    %c0_10 = arith.constant 0 : index
    %25 = vector.load %arg3[%c0_9, %c0_10] : memref<16x128xf32, #tpu.memory_space<vmem>>, vector<16x128xf32>
    tpu.vector_store %arg3[%c0_9, %c0_10], %24 {strides = array<i32>} : memref<16x128xf32, #tpu.memory_space<vmem>>, vector<16x128xf32>,
    return
  }
}

module attributes {stable_mosaic.version = 11 : i64} {
  func.func @_linear_kernel(%arg0: memref<2x128xf32, #tpu.memory_space<vmem>>, %arg1: memref<128x64xf32, #tpu.memory_space<vmem>>, %arg2: memref<2x64xf32, #tpu.memory_space<vmem>>) attributes {dimension_semantics = [], scalar_prefetch = 0 : i64, scratch_operands = 0 : i64, tpu.core_type = #tpu.core_type<tc>} {
    %c0 = arith.constant 0 : index
    %c0_0 = arith.constant 0 : index
    %0 = vector.load %arg0[%c0, %c0_0] : memref<2x128xf32, #tpu.memory_space<vmem>>, vector<2x128xf32>
    %1 = arith.truncf %0 : vector<2x128xf32> to vector<2x128xbf16>
    %c0_1 = arith.constant 0 : index
    %c0_2 = arith.constant 0 : index
    %2 = vector.load %arg1[%c0_1, %c0_2] : memref<128x64xf32, #tpu.memory_space<vmem>>, vector<128x64xf32>
    %3 = arith.truncf %2 : vector<128x64xf32> to vector<128x64xbf16>
    %cst = arith.constant dense<0.000000e+00> : vector<2x64xf32>
    %4 = tpu.matmul %1, %3, %cst {dimension_numbers = #tpu.dot_dimension_numbers<[1], [0], [0], [1], [0, 0, 1, 1], [], []>} : vector<2x128xbf16>, vector<128x64xbf16>, vector<2x64xf32> -> vector<2x64xf32>
    %c0_3 = arith.constant 0 : index
    %c0_4 = arith.constant 0 : index
    %5 = vector.load %arg2[%c0_3, %c0_4] : memref<2x64xf32, #tpu.memory_space<vmem>>, vector<2x64xf32>
    tpu.vector_store %arg2[%c0_3, %c0_4], %4 {strides = array<i32>} : memref<2x64xf32, #tpu.memory_space<vmem>>, vector<2x64xf32>,
    return
  }
}

</mosaic_0001>

<bundles_post_ra>
// kernel: clip_encoder_forward.21
= control target key start
LH: loop header
LB: loop body
LE: loop exit
PB: predicated region body
PF: predicated region fallthrough
CT: control target
= control target key end

     0   :  { %vm67_vm0 = vcmask 523264   ;;  %s264_s1 = inlined_call_operand.vmem [shape: f32[192,128], index: 1, kind: input, shape index: {}]   ;;  %s265_s0 = inlined_call_operand.vmem [shape: f32[32,192], index: 0, kind: input, shape index: {}]   ;;  %s266_s2 = inlined_call_operand.vmem [shape: f32[1,128], index: 2, kind: input, shape index: {}]   ;;  %s267_s3 = inlined_call_operand.vmem [shape: f32[32,128], index: 3, kind: output, shape index: {}]  }
   0x1   :  { %v41_v0 = vld [vmem:[%s264_s1 + $0x70] sm:$0xff]  ;;  %v42_v1 = vld [vmem:[%s264_s1 + $0x78] sm:$0xff]  ;;  %v39_v5 = vld [vmem:[%s264_s1 + $0x60] sm:$0xff] }
   0x2   :  { %v49_v2 = vld [vmem:[%s264_s1 + $0xb0] sm:$0xff]  ;;  %v58_v3 = vpack.c.bf16 %v42_v1, %v41_v0  ;;  %v50_v4 = vld [vmem:[%s264_s1 + $0xb8] sm:$0xff]  ;;  %v40_v6 = vld [vmem:[%s264_s1 + $0x68] sm:$0xff] }
   0x3   :  { %v62_v7 = vpack.c.bf16 %v50_v4, %v49_v2  ;;  %v47_v8 = vld [vmem:[%s264_s1 + $0xa0] sm:$0xff]  ;;  %v48_v9 = vld [vmem:[%s264_s1 + $0xa8] sm:$0xff]  ;;  %v57_v10 = vpack.c.bf16 %v40_v6, %v39_v5  ;;  %v37_v12 = vld [vmem:[%s264_s1 + $0x50] sm:$0xff] }
   0x4   :  { %74 = vmatpush.bf16.msra.mxu0 %v58_v3  ;;  %122 = vmatpush.bf16.msra.mxu2 %v58_v3  ;;  %v61_v11 = vpack.c.bf16 %v48_v9, %v47_v8  ;;  %v38_v13 = vld [vmem:[%s264_s1 + $0x58] sm:$0xff]  ;;  %v45_v14 = vld [vmem:[%s264_s1 + $0x90] sm:$0xff]  ;;  %v35_v18 = vld [vmem:[%s264_s1 + $0x40] sm:$0xff] }
   0x5   :  { %97 = vmatpush.bf16.msra.mxu1 %v62_v7  ;;  %v46_v15 = vld [vmem:[%s264_s1 + $0x98] sm:$0xff]  ;;  %v56_v16 = vpack.c.bf16 %v38_v13, %v37_v12  ;;  %v36_v19 = vld [vmem:[%s264_s1 + $0x48] sm:$0xff]  ;;  %v43_v20 = vld [vmem:[%s264_s1 + $0x80] sm:$0xff] }
   0x6   :  { %v60_v17 = vpack.c.bf16 %v46_v15, %v45_v14  ;;  %v44_v21 = vld [vmem:[%s264_s1 + $0x88] sm:$0xff]  ;;  %v55_v22 = vpack.c.bf16 %v36_v19, %v35_v18  ;;  %v18_v25 = vld [vmem:[%s265_s0 + $0x18] sm:$0xff]  ;;  %v33_v26 = vld [vmem:[%s264_s1 + $0x30] sm:$0xff] }
   0x7   :  { %v16_v23 = vld [vmem:[%s265_s0 + $0x8] sm:$0xff]  ;;  %v59_v24 = vpack.c.bf16 %v44_v21, %v43_v20  ;;  %v34_v27 = vld [vmem:[%s264_s1 + $0x38] sm:$0xff]  ;;  %v31_v30 = vld [vmem:[%s264_s1 + $0x20] sm:$0xff] }
   0x8   :  { %75 = vmatpush.bf16.msra.mxu0 %v57_v10  ;;  %123 = vmatpush.bf16.msra.mxu2 %v57_v10  ;;  %v24_v28 = vpack.c.bf16 %v18_v25, %v16_v23  ;;  %v54_v29 = vpack.c.bf16 %v34_v27, %v33_v26  ;;  %v32_v31 = vld [vmem:[%s264_s1 + $0x28] sm:$0xff]  ;;  %v29_v33 = vld [vmem:[%s264_s1 + $0x10] sm:$0xff]  ;;  %v30_v34 = vld [vmem:[%s264_s1 + $0x18] sm:$0xff] }
   0x9   :  { %98 = vmatpush.bf16.msra.mxu1 %v61_v11  ;;  %v53_v32 = vpack.c.bf16 %v32_v31, %v31_v30  ;;  %v52_v35 = vpack.c.bf16 %v30_v34, %v29_v33  ;;  %v27_v36 = vld [vmem:[%s264_s1] sm:$0xff]  ;;  %v28_v37 = vld [vmem:[%s264_s1 + $0x8] sm:$0xff]  ;;  %v17_v40 = vld [vmem:[%s265_s0 + $0x10] sm:$0xff] }
   0xa   :  { %v51_v38 = vpack.c.bf16 %v28_v37, %v27_v36  ;;  %v15_v39 = vld [vmem:[%s265_s0] sm:$0xff]  ;;  %v21_v42 = vld [vmem:[%s265_s0 + $0x30] sm:$0xff]  ;;  %v20_v43 = vld [vmem:[%s265_s0 + $0x28] sm:$0xff] }
   0xb   :  { %v19_v41 = vld [vmem:[%s265_s0 + $0x20] sm:$0xff]  ;;  %v22_v44 = vld [vmem:[%s265_s0 + $0x38] sm:$0xff]  ;;  %v23_v45 = vpack.c.bf16 %v17_v40, %v15_v39 }
   0xc   :  { %76 = vmatpush.bf16.msra.mxu0 %v56_v16  ;;  %124 = vmatpush.bf16.msra.mxu2 %v56_v16  ;;  %v25_v46 = vpack.c.bf16 %v21_v42, %v19_v41  ;;  %v26_v47 = vpack.c.bf16 %v22_v44, %v20_v43  ;;  %v130_v50 = vld [vmem:[%s266_s2] ss:$0 sm:$0xff] }
   0xd   :  { %99 = vmatpush.bf16.msra.mxu1 %v60_v17 }
  0x10   :  { %77 = vmatpush.bf16.msra.mxu0 %v55_v22  ;;  %125 = vmatpush.bf16.msra.mxu2 %v55_v22 }
  0x11   :  { %100 = vmatpush.bf16.msra.mxu1 %v59_v24 }
  0x14   :  { %120 = vmatmul.msk.bf16.vlgmr.msra.gmra.mxu1 %vm67_vm0, %v24_v28  ;;  %78 = vmatpush.bf16.msra.mxu0 %v54_v29 }
  0x15   :  { %126 = vmatpush.bf16.msra.mxu2 %v54_v29 }
  0x18   :  { %79 = vmatpush.bf16.msra.mxu0 %v53_v32 }
  0x19   :  { %127 = vmatpush.bf16.msra.mxu2 %v53_v32 }
  0x1c   :  { %80 = vmatpush.bf16.msra.mxu0 %v52_v35 }
  0x1d   :  { %128 = vmatpush.bf16.msra.mxu2 %v52_v35 }
  0x20   :  { %81 = vmatpush.bf16.msra.mxu0 %v51_v38 }
  0x21   :  { %129 = vmatpush.bf16.msra.mxu2 %v51_v38 }
  0x23   :  { %82 = vmatmul.bf16.vlgmr.msra.gmra.mxu0 %v23_v45 }
  0x24   :  { %87 = vmatmul.bf16.vlgmr.msra.gmra.mxu2 %v25_v46  ;;  %121 = vmatmul.msk.bf16.gmra.mxu1 %vm67_vm0, %v26_v47 }
  0x91   :  { %v102_v48 = vpop.f32.mrf.mxu1 }
  0x99   :  { %v104_v49 = vpop.f32.mrf.mxu1 }
  0xa0   :  { %v83_v51 = vpop.f32.mrf.mxu0 }
  0xa1   :  { %v84_v52 = vadd.f32 %v130_v50, %v83_v51  ;;  %v107_v54 = vpop.f32.mrf.mxu1 }
  0xa3   :  { %v103_v53 = vadd.f32 %v102_v48, %v84_v52 }
  0xa5   :  { %112 = vst [vmem:[%s267_s3] sm:$0xff] %v103_v53 }
  0xa7   :  { %v88_v55 = vpop.f32.mrf.mxu2 }
  0xa8   :  { %v89_v56 = vadd.f32 %v130_v50, %v88_v55  ;;  %v85_v57 = vpop.f32.mrf.mxu0 }
  0xa9   :  { %v86_v58 = vadd.f32 %v130_v50, %v85_v57  ;;  %v109_v63 = vpop.f32.mrf.mxu1 }
  0xaa   :  { %v108_v59 = vadd.f32 %v107_v54, %v89_v56 }
  0xab   :  { %v105_v60 = vadd.f32 %v104_v49, %v86_v58 }
  0xac   :  { %114 = vst [vmem:[%s267_s3 + $0x10] sm:$0xff] %v108_v59 }
  0xad   :  { %113 = vst [vmem:[%s267_s3 + $0x8] sm:$0xff] %v105_v60 }
  0xaf   :  { %v90_v61 = vpop.f32.mrf.mxu2 }
  0xb0   :  { %v91_v62 = vadd.f32 %v130_v50, %v90_v61 }
  0xb2   :  { %v110_v0 = vadd.f32 %v109_v63, %v91_v62 }
  0xb4   :  { %115 = vst [vmem:[%s267_s3 + $0x18] sm:$0xff] %v110_v0 }

// kernel: clip_encoder_forward.22
= control target key start
LH: loop header
LB: loop body
LE: loop exit
PB: predicated region body
PF: predicated region fallthrough
CT: control target
= control target key end

     0   :  { %vm29_vm0 = vcmask 1041408   ;;  %v171_v6 = vmov 128.0   ;;  %s250_s0 = inlined_call_operand.vmem [shape: f32[34,128], index: 0, kind: input, shape index: {}]   ;;  %s251_s1 = inlined_call_operand.vmem [shape: f32[1,128], index: 1, kind: input, shape index: {}]   ;;  %s252_s2 = inlined_call_operand.vmem [shape: f32[1,128], index: 2, kind: input, shape index: {}]   ;;  %s253_s3 = inlined_call_operand.vmem [shape: f32[34,128], index: 3, kind: output, shape index: {}]  }
   0x1   :  { %v15_v0 = vld [vmem:[%s250_s0 + $0x8] sm:$0xff]  ;;  %v18_v1 = vld [vmem:[%s250_s0 + $0x20] sm:$0x3]  ;;  %v17_v3 = vld [vmem:[%s250_s0 + $0x18] sm:$0xff]  ;;  %159 = vrcp.f32 %v171_v6 }
   0x2   :  { %23 = vadd.xlane.f32.xlu1 %v15_v0  ;;  %v30_v2 = vsel %vm29_vm0, %v18_v1, 0.0  ;;  %27 = vadd.xlane.f32.xlu2 %v17_v3  ;;  %v16_v4 = vld [vmem:[%s250_s0 + $0x10] sm:$0xff]  ;;  %v14_v5 = vld [vmem:[%s250_s0] sm:$0xff] }
   0x3   :  { %31 = vadd.xlane.f32.xlu0 %v30_v2  ;;  %v157_v59 = vld [vmem:[%s251_s1] ss:$0 sm:$0xff] }
   0x7   :  { %v160_v7 = vpop.eup %159 }
   0x8   :  { %v34_v8 = vmul.f32 128.0, %v160_v7  ;;  %vm38_vm1 = vweird.f32 %v160_v7 }
   0xa   :  { %25 = vadd.xlane.f32.xlu1 %v16_v4  ;;  %v35_v9 = vsub.f32 1.0, %v34_v8 }
   0xb   :  { %21 = vadd.xlane.f32.xlu0 %v14_v5 }
   0xc   :  { %v36_v10 = vmul.f32 %v160_v7, %v35_v9 }
   0xe   :  { %v37_v11 = vadd.f32 %v160_v7, %v36_v10 }
  0x10   :  { %v39_v12 = vsel %vm38_vm1, %v160_v7, %v37_v11 }
  0x75   :  { %v24_v13 = vpop.xlane.xlu1 %23  ;;  %v28_v23 = vpop.xlane.xlu2 %27 }
  0x76   :  { %v41_v14 = vmul.f32 %v39_v12, %v24_v13  ;;  %v32_v15 = vpop.xlane.xlu0 %31  ;;  %v43_v28 = vmul.f32 %v39_v12, %v28_v23 }
  0x77   :  { %v44_v16 = vmul.f32 %v39_v12, %v32_v15 }
  0x78   :  { %v46_v17 = vsub.f32 %v15_v0, %v41_v14  ;;  %v221_v32 = vsub.f32 %v17_v3, %v43_v28  ;;  %v158_v0 = vld [vmem:[%s252_s2] ss:$0 sm:$0xff] }
  0x79   :  { %v208_v19 = vsub.f32 %v18_v1, %v44_v16 }
  0x7a   :  { %v51_v18 = vmul.f32 %v46_v17, %v46_v17  ;;  %v53_v33 = vmul.f32 %v221_v32, %v221_v32 }
  0x7b   :  { %v54_v25 = vmul.f32 %v208_v19, %v208_v19 }
  0x7c   :  { %57 = vadd.xlane.f32.xlu0 %v51_v18 }
  0x7d   :  { %v26_v20 = vpop.xlane.xlu1 %25  ;;  %v63_v30 = vsel %vm29_vm0, %v54_v25, 0.0 }
  0x7e   :  { %v42_v21 = vmul.f32 %v39_v12, %v26_v20  ;;  %v22_v22 = vpop.xlane.xlu0 %21 }
  0x7f   :  { %v40_v24 = vmul.f32 %v39_v12, %v22_v22 }
  0x80   :  { %v212_v26 = vsub.f32 %v16_v4, %v42_v21 }
  0x81   :  { %v214_v27 = vsub.f32 %v14_v5, %v40_v24 }
  0x82   :  { %v52_v29 = vmul.f32 %v212_v26, %v212_v26 }
  0x83   :  { %v50_v31 = vmul.f32 %v214_v27, %v214_v27 }
  0x84   :  { %59 = vadd.xlane.f32.xlu1 %v52_v29  ;;  %64 = vadd.xlane.f32.xlu0 %v63_v30 }
  0x85   :  { %55 = vadd.xlane.f32.xlu2 %v50_v31 }
  0x8d   :  { %61 = vadd.xlane.f32.xlu2 %v53_v33 }
  0xef   :  { %v58_v34 = vpop.xlane.xlu0 %57 }
  0xf0   :  { %v67_v35 = vmul.f32 %v58_v34, %v39_v12 }
  0xf2   :  { %v72_v36 = vadd.f32 1e-05, %v67_v35 }
  0xf4   :  { %161 = vrsqrt.f32 %v72_v36  ;;  %vm92_vm2 = vweird.f32 %v72_v36 }
  0xf7   :  { %v60_v37 = vpop.xlane.xlu1 %59  ;;  %v65_v38 = vpop.xlane.xlu0 %64 }
  0xf8   :  { %v68_v39 = vmul.f32 %v60_v37, %v39_v12  ;;  %v70_v40 = vmul.f32 %v65_v38, %v39_v12  ;;  %v56_v41 = vpop.xlane.xlu2 %55 }
  0xf9   :  { %v66_v42 = vmul.f32 %v56_v41, %v39_v12 }
  0xfa   :  { %v162_v43 = vpop.eup %161  ;;  %v73_v44 = vadd.f32 1e-05, %v68_v39  ;;  %v75_v45 = vadd.f32 1e-05, %v70_v40 }
  0xfb   :  { %v87_v46 = vmul.f32 %v162_v43, %v72_v36  ;;  %v71_v47 = vadd.f32 1e-05, %v66_v42  ;;  %vm93_vm3 = vweird.f32 %v162_v43 }
  0xfc   :  { %163 = vrsqrt.f32 %v73_v44  ;;  %vm94_vm4 = vmor %vm92_vm2, %vm93_vm3  ;;  %vm102_vm5 = vweird.f32 %v73_v44  ;;  %vm122_vm10 = vweird.f32 %v75_v45 }
  0xfd   :  { %v88_v48 = vmul.f32 %v162_v43, %v87_v46  ;;  %165 = vrsqrt.f32 %v75_v45  ;;  %vm82_vm12 = vweird.f32 %v71_v47 }
  0xfe   :  { %167 = vrsqrt.f32 %v71_v47 }
  0xff   :  { %v89_v49 = vmul.f32 0.5, %v88_v48 }
 0x100   :  { %v62_v50 = vpop.xlane.xlu2 %61 }
 0x101   :  { %v90_v51 = vsub.f32 1.5, %v89_v49  ;;  %v69_v52 = vmul.f32 %v62_v50, %v39_v12 }
 0x102   :  { %v164_v53 = vpop.eup %163 }
 0x103   :  { %v166_v54 = vpop.eup %165  ;;  %v91_v55 = vmul.f32 %v162_v43, %v90_v51  ;;  %v97_v56 = vmul.f32 %v164_v53, %v73_v44  ;;  %v74_v57 = vadd.f32 1e-05, %v69_v52  ;;  %vm103_vm6 = vweird.f32 %v164_v53 }
 0x104   :  { %v168_v58 = vpop.eup %167  ;;  %v117_v60 = vmul.f32 %v166_v54, %v75_v45  ;;  %vm123_vm7 = vweird.f32 %v166_v54  ;;  %vm104_vm9 = vmor %vm102_vm5, %vm103_vm6 }
 0x105   :  { %v95_v61 = vsel %vm94_vm4, %v162_v43, %v91_v55  ;;  %v98_v62 = vmul.f32 %v164_v53, %v97_v56  ;;  %v77_v63 = vmul.f32 %v168_v58, %v71_v47  ;;  %169 = vrsqrt.f32 %v74_v57  ;;  %vm124_vm11 = vmor %vm122_vm10, %vm123_vm7 }
 0x106   :  { %v127_v1 = vmul.f32 %v95_v61, %v46_v17  ;;  %v118_v2 = vmul.f32 %v166_v54, %v117_v60  ;;  %vm83_vm8 = vweird.f32 %v168_v58  ;;  %vm112_vm15 = vweird.f32 %v74_v57 }
 0x107   :  { %v99_v3 = vmul.f32 0.5, %v98_v62  ;;  %v78_v4 = vmul.f32 %v168_v58, %v77_v63  ;;  %vm84_vm13 = vmor %vm82_vm12, %vm83_vm8 }
 0x108   :  { %v135_v5 = vmul.f32 %v157_v59, %v127_v1  ;;  %v119_v6 = vmul.f32 0.5, %v118_v2 }
 0x109   :  { %v100_v7 = vsub.f32 1.5, %v99_v3  ;;  %v79_v8 = vmul.f32 0.5, %v78_v4 }
 0x10a   :  { %v143_v9 = vadd.f32 %v158_v0, %v135_v5  ;;  %v120_v10 = vsub.f32 1.5, %v119_v6 }
 0x10b   :  { %v101_v11 = vmul.f32 %v164_v53, %v100_v7  ;;  %v80_v12 = vsub.f32 1.5, %v79_v8  ;;  %v170_v13 = vpop.eup %169 }
 0x10c   :  { %148 = vst [vmem:[%s253_s3 + $0x8] sm:$0xff] %v143_v9  ;;  %v121_v14 = vmul.f32 %v166_v54, %v120_v10  ;;  %v107_v17 = vmul.f32 %v170_v13, %v74_v57  ;;  %vm113_vm14 = vweird.f32 %v170_v13 }
 0x10d   :  { %v105_v15 = vsel %vm104_vm9, %v164_v53, %v101_v11  ;;  %v81_v16 = vmul.f32 %v168_v58, %v80_v12  ;;  %vm114_vm0 = vmor %vm112_vm15, %vm113_vm14 }
 0x10e   :  { %v128_v18 = vmul.f32 %v105_v15, %v212_v26  ;;  %v125_v20 = vsel %vm124_vm11, %v166_v54, %v121_v14  ;;  %v108_v23 = vmul.f32 %v170_v13, %v107_v17 }
 0x10f   :  { %v130_v21 = vmul.f32 %v125_v20, %v208_v19  ;;  %v85_v22 = vsel %vm84_vm13, %v168_v58, %v81_v16 }
 0x110   :  { %v136_v24 = vmul.f32 %v157_v59, %v128_v18  ;;  %v126_v25 = vmul.f32 %v85_v22, %v214_v27  ;;  %v109_v29 = vmul.f32 0.5, %v108_v23 }
 0x111   :  { %v138_v28 = vmul.f32 %v157_v59, %v130_v21 }
 0x112   :  { %v144_v30 = vadd.f32 %v158_v0, %v136_v24  ;;  %v134_v31 = vmul.f32 %v157_v59, %v126_v25  ;;  %v110_v34 = vsub.f32 1.5, %v109_v29 }
 0x113   :  { %v146_v33 = vadd.f32 %v158_v0, %v138_v28 }
 0x114   :  { %149 = vst [vmem:[%s253_s3 + $0x10] sm:$0xff] %v144_v30  ;;  %v142_v26 = vadd.f32 %v158_v0, %v134_v31  ;;  %v111_v19 = vmul.f32 %v170_v13, %v110_v34 }
 0x115   :  { %151 = vst [vmem:[%s253_s3 + $0x20] sm:$0x3] %v146_v33 }
 0x116   :  { %147 = vst [vmem:[%s253_s3] sm:$0xff] %v142_v26  ;;  %v115_v27 = vsel %vm114_vm0, %v170_v13, %v111_v19 }
 0x117   :  { %v129_v35 = vmul.f32 %v115_v27, %v221_v32 }
 0x119   :  { %v137_v36 = vmul.f32 %v157_v59, %v129_v35 }
 0x11b   :  { %v145_v37 = vadd.f32 %v158_v0, %v137_v36 }
 0x11d   :  { %150 = vst [vmem:[%s253_s3 + $0x18] sm:$0xff] %v145_v37 }

// kernel: clip_encoder_forward.23
= control target key start
LH: loop header
LB: loop body
LE: loop exit
PB: predicated region body
PF: predicated region fallthrough
CT: control target
= control target key end

     0   :  { %s589_s18 = smov 0   ;;  %s788_s0 = inlined_call_operand.vmem [shape: f32[2,17,128], index: 0, kind: input, shape index: {}]   ;;  %s789_s1 = inlined_call_operand.vmem [shape: f32[1,128], index: 1, kind: input, shape index: {}]   ;;  %s790_s2 = inlined_call_operand.vmem [shape: f32[1,128], index: 2, kind: input, shape index: {}]   ;;  %s791_s3 = inlined_call_operand.vmem [shape: f32[128,384], index: 3, kind: input, shape index: {}]   ;;  %s792_s4 = inlined_call_operand.vmem [shape: f32[1,384], index: 4, kind: input, shape index: {}]   ;;  %s793_s5 = inlined_call_operand.vmem [shape: f32[2,17,384], index: 5, kind: output, shape index: {}]  }
   0x1 LB: > { %s512_s19 = sadd.s32 4294967295, %s556_s18   ;;  %p516_p0 = scmp.ge.s32.totalorder %s556_s18, 1  ;;  %s556_s18 = sphi %s589_s18, %s15_s18  }
   0x2   : > { %p187_p1 = scmp.lt.s32.totalorder %s556_s18, 3 }
   0x4   : > { %p188_p2 = pnand %p516_p0, %p187_p1 }
   0x5   : > { %p215_p3 = scmp.lt.s32.totalorder (!%p188_p2), %s512_s19, 1 }
   0x6   : > { %191 = sbr.rel (%p188_p2) target bundleno = 449 (0x1c1), region = 40 }
   0xb   : > { %s795_s19 = smov (!%p215_p3, %s512_s19), 1  ;;  %vm234_vm0 = vcmask 1040384   ;;  %v558_v4 = vmov 128.0   ;;  %v356_v24 = vld [vmem:[%s791_s3 + $0x150] sm:$0xff]  ;;  %v359_v25 = vld [vmem:[%s791_s3 + $0x168] sm:$0xff]  ;;  %v357_v26 = vld [vmem:[%s791_s3 + $0x158] sm:$0xff] }
   0xc   : > { %s529_s20 = smul.u32 24, %s795_s19  ;;  %542 = vrcp.f32 %v558_v4  ;;  %v383_v27 = vpack.c.bf16 %v359_v25, %v356_v24  ;;  %v360_v28 = vld [vmem:[%s791_s3 + $0x170] sm:$0xff]  ;;  %v358_v29 = vld [vmem:[%s791_s3 + $0x160] sm:$0xff]  ;;  %v361_v30 = vld [vmem:[%s791_s3 + $0x178] sm:$0xff] }
   0xd   : > { %v384_v31 = vpack.c.bf16 %v360_v28, %v357_v26  ;;  %v385_v32 = vpack.c.bf16 %v361_v30, %v358_v29  ;;  %v350_v33 = vld [vmem:[%s791_s3 + $0x120] sm:$0xff]  ;;  %v353_v34 = vld [vmem:[%s791_s3 + $0x138] sm:$0xff]  ;;  %v351_v35 = vld [vmem:[%s791_s3 + $0x128] sm:$0xff]  ;;  %s530_s9 = smul.u32 72, %s795_s19 }
   0xe   : > { %s219_s23 = scalar_lea.vmem %s788_s0, %s529_s20  ;;  %394 = vmatpush.bf16.msra.mxu0 %v383_v27  ;;  %521 = vmatpush.bf16.msra.mxu3 %v383_v27  ;;  %v380_v36 = vpack.c.bf16 %v353_v34, %v350_v33  ;;  %v354_v37 = vld [vmem:[%s791_s3 + $0x140] sm:$0xff]  ;;  %v352_v38 = vld [vmem:[%s791_s3 + $0x130] sm:$0xff]  ;;  %v355_v39 = vld [vmem:[%s791_s3 + $0x148] sm:$0xff] }
   0xf   : > { %v225_v0 = vld [vmem:[%s219_s23] sm:$0xff]  ;;  %v227_v1 = vld [vmem:[%s219_s23 + $0x10] sm:$0x1]  ;;  %v226_v3 = vld [vmem:[%s219_s23 + $0x8] sm:$0xff]  ;;  %412 = vmatpush.bf16.msra.mxu1 %v384_v31  ;;  %430 = vmatpush.bf16.msra.mxu2 %v385_v32  ;;  %v381_v40 = vpack.c.bf16 %v354_v37, %v351_v35  ;;  %v382_v41 = vpack.c.bf16 %v355_v39, %v352_v38  ;;  %s224_s12 = scalar_lea.vmem %s793_s5, %s530_s9 }
  0x10   : > { %230 = vadd.xlane.f32.xlu0 %v225_v0  ;;  %v235_v2 = vsel %vm234_vm0, %v227_v1, 0.0  ;;  %v344_v42 = vld [vmem:[%s791_s3 + $0xf0] sm:$0xff]  ;;  %v347_v43 = vld [vmem:[%s791_s3 + $0x108] sm:$0xff]  ;;  %v345_v44 = vld [vmem:[%s791_s3 + $0xf8] sm:$0xff] }
  0x11   : > { %236 = vadd.xlane.f32.xlu1 %v235_v2  ;;  %v377_v45 = vpack.c.bf16 %v347_v43, %v344_v42  ;;  %v348_v46 = vld [vmem:[%s791_s3 + $0x110] sm:$0xff]  ;;  %v346_v47 = vld [vmem:[%s791_s3 + $0x100] sm:$0xff]  ;;  %v349_v48 = vld [vmem:[%s791_s3 + $0x118] sm:$0xff] }
  0x12   : > { %v543_v5 = vpop.eup %542  ;;  %395 = vmatpush.bf16.msra.mxu0 %v380_v36  ;;  %522 = vmatpush.bf16.msra.mxu3 %v380_v36  ;;  %v378_v49 = vpack.c.bf16 %v348_v46, %v345_v44  ;;  %v379_v50 = vpack.c.bf16 %v349_v48, %v346_v47  ;;  %v338_v51 = vld [vmem:[%s791_s3 + $0xc0] sm:$0xff]  ;;  %v341_v52 = vld [vmem:[%s791_s3 + $0xd8] sm:$0xff]  ;;  %v339_v53 = vld [vmem:[%s791_s3 + $0xc8] sm:$0xff] }
  0x13   : > { %v239_v6 = vmul.f32 128.0, %v543_v5  ;;  %vm243_vm1 = vweird.f32 %v543_v5  ;;  %413 = vmatpush.bf16.msra.mxu1 %v381_v40  ;;  %431 = vmatpush.bf16.msra.mxu2 %v382_v41  ;;  %v374_v54 = vpack.c.bf16 %v341_v52, %v338_v51  ;;  %v342_v55 = vld [vmem:[%s791_s3 + $0xe0] sm:$0xff]  ;;  %v340_v56 = vld [vmem:[%s791_s3 + $0xd0] sm:$0xff]  ;;  %v343_v57 = vld [vmem:[%s791_s3 + $0xe8] sm:$0xff] }
  0x14   : > { %v375_v58 = vpack.c.bf16 %v342_v55, %v339_v53  ;;  %v376_v59 = vpack.c.bf16 %v343_v57, %v340_v56  ;;  %v332_v60 = vld [vmem:[%s791_s3 + $0x90] sm:$0xff]  ;;  %v335_v61 = vld [vmem:[%s791_s3 + $0xa8] sm:$0xff]  ;;  %v333_v62 = vld [vmem:[%s791_s3 + $0x98] sm:$0xff] }
  0x15   : > { %v240_v7 = vsub.f32 1.0, %v239_v6  ;;  %v371_v63 = vpack.c.bf16 %v335_v61, %v332_v60  ;;  %v337_v2 = vld [vmem:[%s791_s3 + $0xb8] sm:$0xff]  ;;  %v314_v29 = vld [vmem:[%s791_s3] sm:$0xff]  ;;  %v315_v31 = vld [vmem:[%s791_s3 + $0x8] sm:$0xff] }
  0x16   : > { %396 = vmatpush.bf16.msra.mxu0 %v377_v45  ;;  %523 = vmatpush.bf16.msra.mxu3 %v377_v45  ;;  %v329_v6 = vld [vmem:[%s791_s3 + $0x78] sm:$0xff]  ;;  %v318_v33 = vld [vmem:[%s791_s3 + $0x20] sm:$0xff]  ;;  %v316_v34 = vld [vmem:[%s791_s3 + $0x10] sm:$0xff] }
  0x17   : > { %v241_v8 = vmul.f32 %v543_v5, %v240_v7  ;;  %414 = vmatpush.bf16.msra.mxu1 %v378_v49  ;;  %432 = vmatpush.bf16.msra.mxu2 %v379_v50  ;;  %v327_v7 = vld [vmem:[%s791_s3 + $0x68] sm:$0xff]  ;;  %v325_v24 = vld [vmem:[%s791_s3 + $0x58] sm:$0xff]  ;;  %v363_v37 = vpack.c.bf16 %v318_v33, %v315_v31 }
  0x18   : > { %232 = vadd.xlane.f32.xlu0 %v226_v3  ;;  %v317_v30 = vld [vmem:[%s791_s3 + $0x18] sm:$0xff]  ;;  %v319_v35 = vld [vmem:[%s791_s3 + $0x28] sm:$0xff] }
  0x19   : > { %v242_v9 = vadd.f32 %v543_v5, %v241_v8  ;;  %v362_v32 = vpack.c.bf16 %v317_v30, %v314_v29  ;;  %v364_v38 = vpack.c.bf16 %v319_v35, %v316_v34 }
  0x1a   : > { %397 = vmatpush.bf16.msra.mxu0 %v374_v54  ;;  %524 = vmatpush.bf16.msra.mxu3 %v374_v54 }
  0x1b   : > { %v604_v10 = vsel %vm243_vm1, %v543_v5, %v242_v9  ;;  %415 = vmatpush.bf16.msra.mxu1 %v375_v58  ;;  %433 = vmatpush.bf16.msra.mxu2 %v376_v59  ;;  %v326_v5 = vld [vmem:[%s791_s3 + $0x60] sm:$0xff] }
  0x1c   : > { %v368_v8 = vpack.c.bf16 %v329_v6, %v326_v5  ;;  %v330_v9 = vld [vmem:[%s791_s3 + $0x80] sm:$0xff] }
  0x1e   : > { %398 = vmatpush.bf16.msra.mxu0 %v371_v63  ;;  %525 = vmatpush.bf16.msra.mxu3 %v371_v63 }
  0x22   : > { %399 = vmatpush.bf16.msra.mxu0 %v368_v8  ;;  %526 = vmatpush.bf16.msra.mxu3 %v368_v8 }
  0x83   : > { %v231_v11 = vpop.xlane.xlu0 %230 }
  0x84   : > { %v245_v12 = vmul.f32 %v604_v10, %v231_v11  ;;  %v237_v15 = vpop.xlane.xlu1 %236  ;;  %v328_v11 = vld [vmem:[%s791_s3 + $0x70] sm:$0xff] }
  0x85   : > { %v247_v17 = vmul.f32 %v604_v10, %v237_v15 }
  0x86   : > { %v607_v13 = vsub.f32 %v225_v0, %v245_v12  ;;  %v336_v0 = vld [vmem:[%s791_s3 + $0xb0] sm:$0xff]  ;;  %v331_v12 = vld [vmem:[%s791_s3 + $0x88] sm:$0xff] }
  0x87   : > { %v615_v20 = vsub.f32 %v227_v1, %v247_v17  ;;  %v334_v1 = vld [vmem:[%s791_s3 + $0xa0] sm:$0xff]  ;;  %v370_v15 = vpack.c.bf16 %v331_v12, %v328_v11  ;;  %v323_v17 = vld [vmem:[%s791_s3 + $0x48] sm:$0xff] }
  0x88   : > { %v251_v14 = vmul.f32 %v607_v13, %v607_v13  ;;  %v373_v4 = vpack.c.bf16 %v337_v2, %v334_v1  ;;  %v541_v1 = vld [vmem:[%s790_s2] ss:$0 sm:$0xff] }
  0x89   : > { %v253_v22 = vmul.f32 %v615_v20, %v615_v20 }
  0x8a   : > { %254 = vadd.xlane.f32.xlu1 %v251_v14  ;;  %434 = vmatpush.bf16.msra.mxu2 %v373_v4  ;;  %v369_v14 = vpack.c.bf16 %v330_v9, %v327_v7 }
  0x8b   : > { %v233_v16 = vpop.xlane.xlu0 %232  ;;  %v258_v23 = vsel %vm234_vm0, %v253_v22, 0.0  ;;  %v324_v22 = vld [vmem:[%s791_s3 + $0x50] sm:$0xff] }
  0x8c   : > { %v246_v18 = vmul.f32 %v604_v10, %v233_v16  ;;  %v320_v16 = vld [vmem:[%s791_s3 + $0x30] sm:$0xff] }
  0x8e   : > { %v613_v19 = vsub.f32 %v226_v3, %v246_v18  ;;  %v372_v3 = vpack.c.bf16 %v336_v0, %v333_v62  ;;  %435 = vmatpush.bf16.msra.mxu2 %v370_v15  ;;  %v321_v18 = vld [vmem:[%s791_s3 + $0x38] sm:$0xff] }
  0x8f   : > { %v366_v25 = vpack.c.bf16 %v324_v22, %v321_v18 }
  0x90   : > { %v252_v21 = vmul.f32 %v613_v19, %v613_v19  ;;  %416 = vmatpush.bf16.msra.mxu1 %v372_v3 }
  0x92   : > { %256 = vadd.xlane.f32.xlu2 %v252_v21  ;;  %v365_v21 = vpack.c.bf16 %v323_v17, %v320_v16 }
  0x94   : > { %417 = vmatpush.bf16.msra.mxu1 %v369_v14  ;;  %400 = vmatpush.bf16.msra.mxu0 %v365_v21  ;;  %v386_v14 = vld [vmem:[%s792_s4] sm:$0x7] }
  0x95   : > { %527 = vmatpush.bf16.msra.mxu3 %v365_v21  ;;  %v388_v15 = vperm.slane %v386_v14, 0  ;;  %v389_v16 = vperm.slane %v386_v14, 1  ;;  %v390_v22 = vperm.slane %v386_v14, 2 }
  0x98   : > { %418 = vmatpush.bf16.msra.mxu1 %v366_v25  ;;  %401 = vmatpush.bf16.msra.mxu0 %v362_v32 }
  0x99   : > { %528 = vmatpush.bf16.msra.mxu3 %v362_v32 }
  0x9a   : > { %259 = vadd.xlane.f32.xlu2 %v258_v23  ;;  %v322_v23 = vld [vmem:[%s791_s3 + $0x40] sm:$0xff] }
  0x9b   : > { %v367_v26 = vpack.c.bf16 %v325_v24, %v322_v23 }
  0x9c   : > { %419 = vmatpush.bf16.msra.mxu1 %v363_v37 }
  0x9d   : > { %436 = vmatpush.bf16.msra.mxu2 %v367_v26 }
  0xa1   : > { %437 = vmatpush.bf16.msra.mxu2 %v364_v38 }
  0xfd   : > { %v255_v27 = vpop.xlane.xlu1 %254 }
  0xfe   : > { %v261_v28 = vmul.f32 %v255_v27, %v604_v10 }
 0x100   : > { %v264_v36 = vadd.f32 1e-05, %v261_v28 }
 0x102   : > { %544 = vrsqrt.f32 %v264_v36  ;;  %vm273_vm3 = vweird.f32 %v264_v36 }
 0x105   : > { %v257_v39 = vpop.xlane.xlu2 %256 }
 0x106   : > { %v262_v40 = vmul.f32 %v257_v39, %v604_v10 }
 0x108   : > { %v545_v41 = vpop.eup %544  ;;  %v265_v42 = vadd.f32 1e-05, %v262_v40 }
 0x109   : > { %v268_v43 = vmul.f32 %v545_v41, %v264_v36  ;;  %vm274_vm2 = vweird.f32 %v545_v41 }
 0x10a   : > { %546 = vrsqrt.f32 %v265_v42  ;;  %vm275_vm4 = vmor %vm273_vm3, %vm274_vm2  ;;  %vm283_vm6 = vweird.f32 %v265_v42 }
 0x10b   : > { %v269_v44 = vmul.f32 %v545_v41, %v268_v43 }
 0x10d   : > { %v270_v45 = vmul.f32 0.5, %v269_v44  ;;  %v260_v46 = vpop.xlane.xlu2 %259 }
 0x10e   : > { %v263_v47 = vmul.f32 %v260_v46, %v604_v10  ;;  %v540_v10 = vld [vmem:[%s789_s1] ss:$0 sm:$0xff] }
 0x10f   : > { %v271_v48 = vsub.f32 1.5, %v270_v45 }
 0x110   : > { %v547_v49 = vpop.eup %546  ;;  %v266_v50 = vadd.f32 1e-05, %v263_v47 }
 0x111   : > { %v272_v51 = vmul.f32 %v545_v41, %v271_v48  ;;  %v278_v52 = vmul.f32 %v547_v49, %v265_v42  ;;  %vm284_vm5 = vweird.f32 %v547_v49 }
 0x112   : > { %548 = vrsqrt.f32 %v266_v50  ;;  %vm285_vm7 = vmor %vm283_vm6, %vm284_vm5  ;;  %vm293_vm8 = vweird.f32 %v266_v50 }
 0x113   : > { %v279_v53 = vmul.f32 %v547_v49, %v278_v52  ;;  %v276_v54 = vsel %vm275_vm4, %v545_v41, %v272_v51 }
 0x114   : > { %v297_v58 = vmul.f32 %v276_v54, %v607_v13 }
 0x115   : > { %v280_v55 = vmul.f32 0.5, %v279_v53 }
 0x116   : > { %v303_v0 = vmul.f32 %v540_v10, %v297_v58 }
 0x117   : > { %v281_v56 = vsub.f32 1.5, %v280_v55 }
 0x118   : > { %v549_v57 = vpop.eup %548  ;;  %v309_v4 = vadd.f32 %v541_v1, %v303_v0 }
 0x119   : > { %v282_v59 = vmul.f32 %v547_v49, %v281_v56  ;;  %v288_v60 = vmul.f32 %v549_v57, %v266_v50  ;;  %vm294_vm9 = vweird.f32 %v549_v57 }
 0x11a   : > { %vm295_vm10 = vmor %vm293_vm8, %vm294_vm9 }
 0x11b   : > { %v286_v61 = vsel %vm285_vm7, %v547_v49, %v282_v59  ;;  %v289_v62 = vmul.f32 %v549_v57, %v288_v60 }
 0x11c   : > { %v298_v63 = vmul.f32 %v286_v61, %v613_v19 }
 0x11d   : > { %v290_v2 = vmul.f32 0.5, %v289_v62 }
 0x11e   : > { %v304_v3 = vmul.f32 %v540_v10, %v298_v63 }
 0x11f   : > { %v291_v13 = vsub.f32 1.5, %v290_v2 }
 0x120   : > { %v310_v5 = vadd.f32 %v541_v1, %v304_v3 }
 0x121   : > { %v292_v6 = vmul.f32 %v549_v57, %v291_v13 }
 0x122   : > { %v312_v7 = vpack.c.bf16 %v310_v5, %v309_v4 }
 0x123   : > { %v296_v8 = vsel %vm295_vm10, %v549_v57, %v292_v6 }
 0x124   : > { %402 = vmatmul.bf16.vlgmr.msra.gmra.mxu0 %v312_v7  ;;  %420 = vmatmul.bf16.vlgmr.msra.gmra.mxu1 %v312_v7  ;;  %v299_v19 = vmul.f32 %v296_v8, %v615_v20 }
 0x125   : > { %438 = vmatmul.bf16.vlgmr.msra.gmra.mxu2 %v312_v7 }
 0x126   : > { %v305_v9 = vmul.f32 %v540_v10, %v299_v19 }
 0x128   : > { %v311_v11 = vadd.f32 %v541_v1, %v305_v9 }
 0x12a   : > { %v313_v12 = vpack.c.bf16 %v311_v11, %v311_v11 }
 0x12c   : > { %407 = vmatmul.bf16.vlgmr.msra.gmra.mxu3 %v313_v12 }
 0x134   : > { %425 = vmatmul.bf16.gmra.mxu1 %v313_v12 }
 0x135   : > { %443 = vmatmul.bf16.gmra.mxu2 %v313_v12 }
 0x1a1   : > { %v403_v17 = vpop.f32.mrf.mxu0  ;;  %v421_v20 = vpop.f32.mrf.mxu1 }
 0x1a2   : > { %v404_v18 = vadd.f32 %v403_v17, %v388_v15  ;;  %v422_v21 = vadd.f32 %v421_v20, %v389_v16 }
 0x1a4   : > { %448 = vst [vmem:[%s224_s12] sm:$0xff] %v404_v18 }
 0x1a5   : > { %449 = vst [vmem:[%s224_s12 + $0x8] sm:$0xff] %v422_v21 }
 0x1a8   : > { %v439_v23 = vpop.f32.mrf.mxu2 }
 0x1a9   : > { %v440_v24 = vadd.f32 %v439_v23, %v390_v22  ;;  %v405_v25 = vpop.f32.mrf.mxu0  ;;  %v423_v26 = vpop.f32.mrf.mxu1 }
 0x1aa   : > { %v406_v27 = vadd.f32 %v405_v25, %v388_v15  ;;  %v424_v28 = vadd.f32 %v423_v26, %v389_v16 }
 0x1ab   : > { %450 = vst [vmem:[%s224_s12 + $0x10] sm:$0xff] %v440_v24 }
 0x1ac   : > { %451 = vst [vmem:[%s224_s12 + $0x18] sm:$0xff] %v406_v27 }
 0x1ad   : > { %452 = vst [vmem:[%s224_s12 + $0x20] sm:$0xff] %v424_v28 }
 0x1af   : > { %v408_v29 = vpop.f32.mrf.mxu3 }
 0x1b0   : > { %v409_v30 = vadd.f32 %v408_v29, %v388_v15  ;;  %v441_v31 = vpop.f32.mrf.mxu2 }
 0x1b1   : > { %v442_v32 = vadd.f32 %v441_v31, %v390_v22  ;;  %v426_v33 = vpop.f32.mrf.mxu1 }
 0x1b2   : > { %454 = vst [vmem:[%s224_s12 + $0x30] sm:$0x1] %v409_v30  ;;  %v427_v34 = vadd.f32 %v426_v33, %v389_v16 }
 0x1b3   : > { %453 = vst [vmem:[%s224_s12 + $0x28] sm:$0xff] %v442_v32 }
 0x1b4   : > { %455 = vst [vmem:[%s224_s12 + $0x38] sm:$0x1] %v427_v34 }
 0x1b7   : > { %v410_v35 = vpop.f32.mrf.mxu3 }
 0x1b8   : > { %v444_v36 = vpop.f32.mrf.mxu2 }
 0x1b9   : > { %v445_v37 = vadd.f32 %v444_v36, %v390_v22  ;;  %v428_v38 = vpop.f32.mrf.mxu1 }
 0x1bb   : > { %456 = vst [vmem:[%s224_s12 + $0x40] sm:$0x1] %v445_v37 }
 0x1c0   : > { %v446_v39 = vpop.f32.mrf.mxu2 }
 0x1c1 PF: > { %s15_s18 = sadd.s32 1, %s556_s18  }
 0x1c2   : > { %p12_p4 = scmp.ge.s32.totalorder %s15_s18, 4  }
 0x1c4   :  { %14 = sbr.rel (!%p12_p4) target bundleno = 1 (0x1), region = 70 }

// kernel: clip_encoder_forward.24
= control target key start
LH: loop header
LB: loop body
LE: loop exit
PB: predicated region body
PF: predicated region fallthrough
CT: control target
= control target key end

     0   :  { %s1000_s12 = smov 0   ;;  %s1205_s0 = inlined_call_operand.vmem [shape: f32[2,4,17,32], index: 0, kind: input, shape index: {}]   ;;  %s1206_s1 = inlined_call_operand.vmem [shape: f32[2,4,17,32], index: 1, kind: input, shape index: {}]   ;;  %s1207_s2 = inlined_call_operand.vmem [shape: f32[2,4,17,32], index: 2, kind: input, shape index: {}]   ;;  %s1208_s3 = inlined_call_operand.vmem [shape: f32[2,4,17,32], index: 3, kind: output, shape index: {}]  }
   0x1 LB: > { %s886_s13 = sadd.s32 4294967295, %s977_s12   ;;  %p890_p0 = scmp.ge.s32.totalorder %s977_s12, 1  ;;  %s977_s12 = sphi %s1000_s12, %s13_s12  }
   0x2   : > { %p157_p1 = scmp.lt.s32.totalorder %s977_s12, 3 }
   0x4   : > { %p158_p2 = pnand %p890_p0, %p157_p1 }
   0x5   : > { %p191_p3 = scmp.lt.s32.totalorder (!%p158_p2), %s886_s13, 1 }
   0x6   : > { %161 = sbr.rel (%p158_p2) target bundleno = 599 (0x257), region = 32 }
   0xb   : > { %s1210_s13 = smov (!%p191_p3, %s886_s13), 1  ;;  %vm300_vm0 = vcmask 261120   ;;  %vm469_vm1 = vcmask 138240   ;;  %vm476_vm2 = vcmask 131072   ;;  %vm638_vm3 = vcmask 1040384  }
   0xc   : > { %s1008_s14 = smul.u32 96, %s1210_s13  ;;  %vm796_vm4 = vcmask 253952  }
   0xe   : > { %s1014_s17 = scalar_lea.vmem %s1206_s1, %s1008_s14  ;;  %s1030_s20 = scalar_lea.vmem %s1205_s0, %s1008_s14 }
   0xf   : > { %v238_v0 = vld [vmem:[%s1014_s17 + $0x10] sm:$0x1]  ;;  %v244_v1 = vld [vmem:[%s1014_s17 + $0x40] sm:$0x1]  ;;  %v247_v2 = vld [vmem:[%s1014_s17 + $0x58] sm:$0x1]  ;;  %s1096_s23 = scalar_lea.vmem %s1207_s2, %s1008_s14  ;;  %s210_s26 = scalar_lea.vmem %s1208_s3, %s1008_s14 }
  0x10   : > { %v250_v3 = vpack.c.bf16 %v238_v0, %v238_v0  ;;  %v256_v4 = vpack.c.bf16 %v244_v1, %v244_v1  ;;  %v259_v5 = vpack.c.bf16 %v247_v2, %v247_v2  ;;  %v241_v6 = vld [vmem:[%s1014_s17 + $0x28] sm:$0x1]  ;;  %v236_v7 = vld [vmem:[%s1014_s17] sm:$0xff]  ;;  %v242_v12 = vld [vmem:[%s1014_s17 + $0x30] sm:$0xff] }
  0x11   : > { %v237_v8 = vld [vmem:[%s1014_s17 + $0x8] sm:$0xff]  ;;  %v253_v9 = vpack.c.bf16 %v241_v6, %v241_v6  ;;  %v248_v10 = vpack.c.bf16 %v236_v7, %v236_v7  ;;  %v243_v13 = vld [vmem:[%s1014_s17 + $0x38] sm:$0xff]  ;;  %v254_v17 = vpack.c.bf16 %v242_v12, %v242_v12  ;;  %v246_v23 = vld [vmem:[%s1014_s17 + $0x50] sm:$0xff] }
  0x12   : > { %v249_v11 = vpack.c.bf16 %v237_v8, %v237_v8  ;;  %v297_v14 = vunpack.c.l.b16 %v250_v3  ;;  %v390_v15 = vunpack.c.l.b16 %v256_v4  ;;  %v436_v16 = vunpack.c.l.b16 %v259_v5  ;;  %v245_v18 = vld [vmem:[%s1014_s17 + $0x48] sm:$0xff]  ;;  %v239_v31 = vld [vmem:[%s1014_s17 + $0x18] sm:$0xff]  ;;  %v240_v32 = vld [vmem:[%s1014_s17 + $0x20] sm:$0xff] }
  0x13   : > { %v344_v19 = vunpack.c.l.b16 %v253_v9  ;;  %v295_v20 = vunpack.c.l.b16 %v248_v10  ;;  %v255_v22 = vpack.c.bf16 %v243_v13, %v243_v13  ;;  %v388_v27 = vunpack.c.l.b16 %v254_v17  ;;  %v212_v37 = vld [vmem:[%s1030_s20] sm:$0xff]  ;;  %v213_v38 = vld [vmem:[%s1030_s20 + $0x8] sm:$0xff]  ;;  %v218_v39 = vld [vmem:[%s1030_s20 + $0x30] sm:$0xff] }
  0x14   : > { %v296_v21 = vunpack.c.l.b16 %v249_v11  ;;  %v299_v24 = vpack.c.b16 %v297_v14, %v297_v14  ;;  %v392_v25 = vpack.c.b16 %v390_v15, %v390_v15  ;;  %v438_v26 = vpack.c.b16 %v436_v16, %v436_v16  ;;  %v219_v43 = vld [vmem:[%s1030_s20 + $0x38] sm:$0xff]  ;;  %v221_v48 = vld [vmem:[%s1030_s20 + $0x48] sm:$0xff]  ;;  %v222_v52 = vld [vmem:[%s1030_s20 + $0x50] sm:$0xff] }
  0x15   : > { %v346_v28 = vpack.c.b16 %v344_v19, %v344_v19  ;;  %v389_v29 = vunpack.c.l.b16 %v255_v22  ;;  %v257_v30 = vpack.c.bf16 %v245_v18, %v245_v18  ;;  %v258_v36 = vpack.c.bf16 %v246_v23, %v246_v23  ;;  %v215_v53 = vld [vmem:[%s1030_s20 + $0x18] sm:$0xff]  ;;  %v216_v58 = vld [vmem:[%s1030_s20 + $0x20] sm:$0xff]  ;;  %v214_v17 = vld [vmem:[%s1030_s20 + $0x10] sm:$0x1] }
  0x16   : > { %v311_v33 = vsel %vm300_vm0, %v299_v24, 0  ;;  %v403_v34 = vsel %vm300_vm0, %v392_v25, 0  ;;  %v449_v35 = vsel %vm300_vm0, %v438_v26, 0  ;;  %v298_v41 = vpack.c.b16 %v296_v21, %v295_v20  ;;  %v220_v16 = vld [vmem:[%s1030_s20 + $0x40] sm:$0x1] }
  0x17   : > { %319 = vmatpush.bf16.xpose.msra.mxu0 %v311_v33  ;;  %411 = vmatpush.bf16.xpose.msra.mxu2 %v403_v34  ;;  %v357_v40 = vsel %vm300_vm0, %v346_v28, 0  ;;  %v434_v42 = vunpack.c.l.b16 %v257_v30  ;;  %v391_v44 = vpack.c.b16 %v389_v29, %v388_v27  ;;  %v435_v45 = vunpack.c.l.b16 %v258_v36  ;;  %v223_v18 = vld [vmem:[%s1030_s20 + $0x58] sm:$0x1]  ;;  %v217_v19 = vld [vmem:[%s1030_s20 + $0x28] sm:$0x1] }
  0x18   : > { %457 = vmatpush.bf16.xpose.msra.mxu3 %v449_v35  ;;  %365 = vmatpush.bf16.xpose.msra.mxu1 %v357_v40  ;;  %v251_v46 = vpack.c.bf16 %v239_v31, %v239_v31  ;;  %v252_v47 = vpack.c.bf16 %v240_v32, %v240_v32  ;;  %v224_v49 = vpack.c.bf16 %v212_v37, %v212_v37  ;;  %v308_v59 = vsel %vm300_vm0, %v298_v41, 0 }
  0x19   : > { %v225_v50 = vpack.c.bf16 %v213_v38, %v213_v38  ;;  %v230_v51 = vpack.c.bf16 %v218_v39, %v218_v39  ;;  %v437_v54 = vpack.c.b16 %v435_v45, %v434_v42  ;;  %v231_v57 = vpack.c.bf16 %v219_v43, %v219_v43 }
  0x1a   : > { %v342_v55 = vunpack.c.l.b16 %v251_v46  ;;  %v343_v56 = vunpack.c.l.b16 %v252_v47  ;;  %v233_v60 = vpack.c.bf16 %v221_v48, %v221_v48  ;;  %v400_v61 = vsel %vm300_vm0, %v391_v44, 0 }
  0x1b   : > { %v234_v63 = vpack.c.bf16 %v222_v52, %v222_v52  ;;  %v227_v0 = vpack.c.bf16 %v215_v53, %v215_v53  ;;  %v446_v1 = vsel %vm300_vm0, %v437_v54, 0  ;;  %v287_v2 = vunpack.c.l.b16 %v224_v49 }
  0x1c   : > { %v345_v62 = vpack.c.b16 %v343_v56, %v342_v55  ;;  %v228_v3 = vpack.c.bf16 %v216_v58, %v216_v58  ;;  %v288_v5 = vunpack.c.l.b16 %v225_v50  ;;  %v380_v6 = vunpack.c.l.b16 %v230_v51 }
  0x1d   : > { %v381_v7 = vunpack.c.l.b16 %v231_v57  ;;  %v426_v8 = vunpack.c.l.b16 %v233_v60  ;;  %v427_v9 = vunpack.c.l.b16 %v234_v63  ;;  %v334_v10 = vunpack.c.l.b16 %v227_v0 }
  0x1e   : > { %v354_v4 = vsel %vm300_vm0, %v345_v62, 0  ;;  %v335_v11 = vunpack.c.l.b16 %v228_v3  ;;  %v290_v12 = vpack.c.b16 %v288_v5, %v287_v2  ;;  %v232_v20 = vpack.c.bf16 %v220_v16, %v220_v16 }
  0x1f   : > { %320 = vmatpush.bf16.xpose.msra.mxu0 %v308_v59  ;;  %412 = vmatpush.bf16.xpose.msra.mxu2 %v400_v61  ;;  %v383_v13 = vpack.c.b16 %v381_v7, %v380_v6  ;;  %v429_v14 = vpack.c.b16 %v427_v9, %v426_v8  ;;  %v226_v21 = vpack.c.bf16 %v214_v17, %v214_v17 }
  0x20   : > { %458 = vmatpush.bf16.xpose.msra.mxu3 %v446_v1  ;;  %366 = vmatpush.bf16.xpose.msra.mxu1 %v354_v4  ;;  %v337_v15 = vpack.c.b16 %v335_v11, %v334_v10  ;;  %v235_v22 = vpack.c.bf16 %v223_v18, %v223_v18  ;;  %v229_v23 = vpack.c.bf16 %v217_v19, %v217_v19  ;;  %v382_v24 = vunpack.c.l.b16 %v232_v20  ;;  %v268_v10 = vld [vmem:[%s1096_s23 + $0x40] sm:$0x1]  ;;  %v271_v11 = vld [vmem:[%s1096_s23 + $0x58] sm:$0x1] }
  0x21   : > { %v289_v25 = vunpack.c.l.b16 %v226_v21 }
  0x22   : > { %v428_v26 = vunpack.c.l.b16 %v235_v22  ;;  %v336_v27 = vunpack.c.l.b16 %v229_v23  ;;  %v384_v28 = vpack.c.b16 %v382_v24, %v382_v24  ;;  %v979_v22 = vmov 0  }
  0x23   : > { %v291_v29 = vpack.c.b16 %v289_v25, %v289_v25  ;;  %v1106_v23 = vsel %vm638_vm3, 65535, %v979_v22 }
  0x24   : > { %v430_v30 = vpack.c.b16 %v428_v26, %v428_v26  ;;  %v338_v31 = vpack.c.b16 %v336_v27, %v336_v27 }
  0x26   : > { %895 = vmatmul.msk.bf16.vlgmr.msra.gmra.mxu0 %vm300_vm0, %v290_v12  ;;  %899 = vmatmul.msk.bf16.vlgmr.msra.gmra.mxu2 %vm300_vm0, %v383_v13  ;;  %v280_v13 = vpack.c.bf16 %v268_v10, %v268_v10 }
  0x27   : > { %901 = vmatmul.msk.bf16.vlgmr.msra.gmra.mxu3 %vm300_vm0, %v429_v14  ;;  %897 = vmatmul.msk.bf16.vlgmr.msra.gmra.mxu1 %vm300_vm0, %v337_v15  ;;  %v283_v14 = vpack.c.bf16 %v271_v11, %v271_v11 }
  0x28   : > { %v719_v18 = vunpack.c.l.b16 %v280_v13 }
  0x29   : > { %v763_v19 = vunpack.c.l.b16 %v283_v14 }
  0x2a   : > { %v721_v27 = vpack.c.b16 %v719_v18, %v719_v18 }
  0x36   : > { %900 = vmatmul.msk.bf16.gmra.mxu2 %vm300_vm0, %v384_v28  ;;  %896 = vmatmul.msk.bf16.gmra.mxu0 %vm300_vm0, %v291_v29  ;;  %v765_v28 = vpack.c.b16 %v763_v19, %v763_v19 }
  0x37   : > { %902 = vmatmul.msk.bf16.gmra.mxu3 %vm300_vm0, %v430_v30  ;;  %898 = vmatmul.msk.bf16.gmra.mxu1 %vm300_vm0, %v338_v31  ;;  %v730_v30 = vand.u32 %v721_v27, %v1106_v23 }
  0x38   : > { %v774_v31 = vand.u32 %v765_v28, %v1106_v23 }
  0x39   : > { %738 = vmatpush.bf16.msrb.mxu2 %v730_v30 }
  0x3a   : > { %782 = vmatpush.bf16.msrb.mxu3 %v774_v31 }
  0xa3   : > { %v322_v32 = vpop.f32.mrf.mxu0 }
  0xa4   : > { %v470_v33 = vsel %vm469_vm1, %v322_v32, -inf  ;;  %v1063_v34 = vpop.f32.mrf.mxu1 }
  0xa5   : > { %471 = vmax.xlane.f32.xlu2 %v470_v33  ;;  %v480_v50 = vsel %vm469_vm1, %v1063_v34, -inf }
  0xa9   : > { %v414_v35 = vpop.f32.mrf.mxu2 }
  0xaa   : > { %v460_v36 = vpop.f32.mrf.mxu3  ;;  %v489_v37 = vsel %vm469_vm1, %v414_v35, -inf }
  0xab   : > { %v498_v38 = vsel %vm469_vm1, %v460_v36, -inf  ;;  %490 = vmax.xlane.f32.xlu0 %v489_v37  ;;  %v324_v39 = vpop.f32.mrf.mxu0 }
  0xac   : > { %499 = vmax.xlane.f32.xlu1 %v498_v38  ;;  %v473_v40 = vsel %vm469_vm1, %v324_v39, -inf  ;;  %v1068_v41 = vpop.f32.mrf.mxu1 }
  0xad   : > { %474 = vmax.xlane.f32.xlu2 %v473_v40  ;;  %v483_v52 = vsel %vm469_vm1, %v1068_v41, -inf }
  0xb1   : > { %v416_v42 = vpop.f32.mrf.mxu2 }
  0xb2   : > { %v462_v43 = vpop.f32.mrf.mxu3  ;;  %v492_v44 = vsel %vm469_vm1, %v416_v42, -inf }
  0xb3   : > { %v501_v45 = vsel %vm469_vm1, %v462_v43, -inf  ;;  %493 = vmax.xlane.f32.xlu0 %v492_v44  ;;  %v1072_v46 = vpop.f32.mrf.mxu0 }
  0xb4   : > { %502 = vmax.xlane.f32.xlu1 %v501_v45  ;;  %v1074_v47 = vpop.f32.mrf.mxu1  ;;  %v477_v58 = vsel %vm476_vm2, %v1072_v46, -inf }
  0xb5   : > { %v486_v56 = vsel %vm476_vm2, %v1074_v47, -inf }
  0xb9   : > { %v1076_v48 = vpop.f32.mrf.mxu2 }
  0xba   : > { %v1078_v49 = vpop.f32.mrf.mxu3  ;;  %v495_v51 = vsel %vm476_vm2, %v1076_v48, -inf }
  0xbb   : > { %481 = vmax.xlane.f32.xlu0 %v480_v50  ;;  %496 = vmax.xlane.f32.xlu2 %v495_v51  ;;  %v329_v53 = vpop.f32.mrf.mxu0  ;;  %v504_v55 = vsel %vm476_vm2, %v1078_v49, -inf }
  0xbc   : > { %484 = vmax.xlane.f32.xlu1 %v483_v52  ;;  %v375_v54 = vpop.f32.mrf.mxu1 }
  0xc1   : > { %v421_v57 = vpop.f32.mrf.mxu2 }
  0xc2   : > { %v467_v59 = vpop.f32.mrf.mxu3 }
  0xc3   : > { %505 = vmax.xlane.f32.xlu0 %v504_v55  ;;  %487 = vmax.xlane.f32.xlu2 %v486_v56 }
  0xc4   : > { %478 = vmax.xlane.f32.xlu1 %v477_v58 }
 0x118   : > { %v472_v60 = vpop.xlane.xlu2 %471 }
 0x119   : > { %v507_v61 = vsub.f32 %v322_v32, %v472_v60 }
 0x11b   : > { %v519_v62 = vmul.f32 1.442695, %v507_v61 }
 0x11d   : > { %923 = vpow2.f32 %v519_v62 }
 0x11e   : > { %v491_v63 = vpop.xlane.xlu0 %490 }
 0x11f   : > { %v500_v0 = vpop.xlane.xlu1 %499  ;;  %v513_v1 = vsub.f32 %v414_v35, %v491_v63 }
 0x120   : > { %v516_v2 = vsub.f32 %v460_v36, %v500_v0  ;;  %v475_v3 = vpop.xlane.xlu2 %474 }
 0x121   : > { %v531_v4 = vmul.f32 1.442695, %v513_v1  ;;  %v508_v5 = vsub.f32 %v324_v39, %v475_v3 }
 0x122   : > { %v537_v6 = vmul.f32 1.442695, %v516_v2 }
 0x123   : > { %v1098_v7 = vpop.eup %923  ;;  %925 = vpow2.f32 %v531_v4  ;;  %v521_v9 = vmul.f32 1.442695, %v508_v5  ;;  %v262_v4 = vld [vmem:[%s1096_s23 + $0x10] sm:$0x1]  ;;  %v265_v5 = vld [vmem:[%s1096_s23 + $0x28] sm:$0x1] }
 0x124   : > { %927 = vpow2.f32 %v537_v6  ;;  %v543_v8 = vsel %vm469_vm1, %v1098_v7, 0.0  ;;  %v274_v6 = vpack.c.bf16 %v262_v4, %v262_v4 }
 0x125   : > { %544 = vadd.xlane.f32.xlu1 %v543_v8  ;;  %929 = vpow2.f32 %v521_v9  ;;  %v277_v8 = vpack.c.bf16 %v265_v5, %v265_v5 }
 0x126   : > { %v494_v12 = vpop.xlane.xlu0 %493  ;;  %v628_v9 = vunpack.c.l.b16 %v274_v6 }
 0x127   : > { %v503_v15 = vpop.xlane.xlu1 %502  ;;  %v514_v16 = vsub.f32 %v416_v42, %v494_v12  ;;  %v675_v10 = vunpack.c.l.b16 %v277_v8 }
 0x128   : > { %v517_v17 = vsub.f32 %v462_v43, %v503_v15  ;;  %v630_v11 = vpack.c.b16 %v628_v9, %v628_v9  ;;  %v266_v15 = vld [vmem:[%s1096_s23 + $0x30] sm:$0xff] }
 0x129   : > { %v1104_v20 = vpop.eup %925  ;;  %v533_v21 = vmul.f32 1.442695, %v514_v16  ;;  %v677_v12 = vpack.c.b16 %v675_v10, %v675_v10  ;;  %v267_v16 = vld [vmem:[%s1096_s23 + $0x38] sm:$0xff]  ;;  %v278_v18 = vpack.c.bf16 %v266_v15, %v266_v15 }
 0x12a   : > { %v1108_v24 = vpop.eup %927  ;;  %v539_v25 = vmul.f32 1.442695, %v517_v17  ;;  %v561_v26 = vsel %vm469_vm1, %v1104_v20, 0.0  ;;  %v642_v13 = vand.u32 %v1106_v23, %v630_v11  ;;  %v269_v17 = vld [vmem:[%s1096_s23 + $0x48] sm:$0xff]  ;;  %v279_v19 = vpack.c.bf16 %v267_v16, %v267_v16 }
 0x12b   : > { %931 = vpow2.f32 %v533_v21  ;;  %562 = vadd.xlane.f32.xlu0 %v561_v26  ;;  %v570_v29 = vsel %vm469_vm1, %v1108_v24, 0.0  ;;  %v1116_v35 = vpop.eup %929  ;;  %v686_v14 = vand.u32 %v677_v12, %v1106_v23  ;;  %v270_v21 = vld [vmem:[%s1096_s23 + $0x50] sm:$0xff]  ;;  %v281_v22 = vpack.c.bf16 %v269_v17, %v269_v17  ;;  %v261_v26 = vld [vmem:[%s1096_s23 + $0x8] sm:$0xff] }
 0x12c   : > { %933 = vpow2.f32 %v539_v25  ;;  %571 = vadd.xlane.f32.xlu2 %v570_v29  ;;  %650 = vmatpush.bf16.msrb.mxu0 %v642_v13  ;;  %v260_v25 = vld [vmem:[%s1096_s23] sm:$0xff]  ;;  %v282_v27 = vpack.c.bf16 %v270_v21, %v270_v21  ;;  %v273_v29 = vpack.c.bf16 %v261_v26, %v261_v26  ;;  %v717_v30 = vunpack.c.l.b16 %v278_v18 }
 0x12d   : > { %694 = vmatpush.bf16.msrb.mxu1 %v686_v14  ;;  %v272_v28 = vpack.c.bf16 %v260_v25, %v260_v25  ;;  %v718_v31 = vunpack.c.l.b16 %v279_v19 }
 0x12e   : > { %v482_v32 = vpop.xlane.xlu0 %481  ;;  %v497_v33 = vpop.xlane.xlu2 %496  ;;  %v762_v23 = vunpack.c.l.b16 %v282_v27 }
 0x12f   : > { %v510_v36 = vsub.f32 %v1063_v34, %v482_v32  ;;  %v485_v37 = vpop.xlane.xlu1 %484  ;;  %v515_v38 = vsub.f32 %v1076_v48, %v497_v33  ;;  %v546_v34 = vsel %vm469_vm1, %v1116_v35, 0.0  ;;  %v761_v32 = vunpack.c.l.b16 %v281_v22 }
 0x130   : > { %v511_v39 = vsub.f32 %v1068_v41, %v485_v37  ;;  %v626_v33 = vunpack.c.l.b16 %v272_v28  ;;  %v720_v37 = vpack.c.b16 %v718_v31, %v717_v30 }
 0x131   : > { %v1121_v40 = vpop.eup %931  ;;  %v525_v42 = vmul.f32 1.442695, %v510_v36  ;;  %v535_v43 = vmul.f32 1.442695, %v515_v38  ;;  %v627_v36 = vunpack.c.l.b16 %v273_v29  ;;  %v764_v38 = vpack.c.b16 %v762_v23, %v761_v32 }
 0x132   : > { %v1123_v44 = vpop.eup %933  ;;  %v527_v45 = vmul.f32 1.442695, %v511_v39  ;;  %v564_v50 = vsel %vm469_vm1, %v1121_v40, 0.0  ;;  %739 = vmatpush.bf16.msrb.mxu2 %v720_v37 }
 0x133   : > { %935 = vpow2.f32 %v525_v42  ;;  %v573_v51 = vsel %vm469_vm1, %v1123_v44, 0.0  ;;  %565 = vadd.xlane.f32.xlu1 %v564_v50  ;;  %v629_v39 = vpack.c.b16 %v627_v36, %v626_v33  ;;  %v263_v42 = vld [vmem:[%s1096_s23 + $0x18] sm:$0xff]  ;;  %783 = vmatpush.bf16.msrb.mxu3 %v764_v38 }
 0x134   : > { %937 = vpow2.f32 %v527_v45  ;;  %574 = vadd.xlane.f32.xlu0 %v573_v51  ;;  %547 = vadd.xlane.f32.xlu2 %v546_v34  ;;  %v275_v45 = vpack.c.bf16 %v263_v42, %v263_v42 }
 0x135   : > { %939 = vpow2.f32 %v535_v43  ;;  %v264_v43 = vld [vmem:[%s1096_s23 + $0x20] sm:$0xff]  ;;  %651 = vmatpush.bf16.msrb.mxu0 %v629_v39 }
 0x136   : > { %v506_v41 = vpop.xlane.xlu0 %505  ;;  %v488_v48 = vpop.xlane.xlu2 %487  ;;  %v276_v50 = vpack.c.bf16 %v264_v43, %v264_v43  ;;  %v673_v51 = vunpack.c.l.b16 %v275_v45 }
 0x137   : > { %v518_v52 = vsub.f32 %v1078_v49, %v506_v41  ;;  %v512_v53 = vsub.f32 %v1074_v47, %v488_v48  ;;  %v479_v54 = vpop.xlane.xlu1 %478 }
 0x138   : > { %v509_v55 = vsub.f32 %v1072_v46, %v479_v54  ;;  %v674_v34 = vunpack.c.l.b16 %v276_v50 }
 0x139   : > { %v1134_v56 = vpop.eup %935  ;;  %v541_v57 = vmul.f32 1.442695, %v518_v52  ;;  %v529_v58 = vmul.f32 1.442695, %v512_v53 }
 0x13a   : > { %v1136_v59 = vpop.eup %937  ;;  %v523_v60 = vmul.f32 1.442695, %v509_v55  ;;  %v552_v61 = vsel %vm469_vm1, %v1134_v56, 0.0  ;;  %v676_v41 = vpack.c.b16 %v674_v34, %v673_v51 }
 0x13b   : > { %v1140_v62 = vpop.eup %939  ;;  %941 = vpow2.f32 %v541_v57  ;;  %v555_v49 = vsel %vm469_vm1, %v1136_v59, 0.0 }
 0x13c   : > { %943 = vpow2.f32 %v529_v58  ;;  %553 = vadd.xlane.f32.xlu0 %v552_v61  ;;  %v567_v46 = vsel %vm476_vm2, %v1140_v62, 0.0  ;;  %556 = vadd.xlane.f32.xlu1 %v555_v49 }
 0x13d   : > { %945 = vpow2.f32 %v523_v60  ;;  %568 = vadd.xlane.f32.xlu2 %v567_v46  ;;  %695 = vmatpush.bf16.msrb.mxu1 %v676_v41 }
 0x141   : > { %v1146_v47 = vpop.eup %941 }
 0x142   : > { %v1148_v63 = vpop.eup %943  ;;  %v576_v0 = vsel %vm476_vm2, %v1146_v47, 0.0 }
 0x143   : > { %v1152_v1 = vpop.eup %945  ;;  %v558_v2 = vsel %vm476_vm2, %v1148_v63, 0.0 }
 0x144   : > { %577 = vadd.xlane.f32.xlu0 %v576_v0  ;;  %v549_v3 = vsel %vm476_vm2, %v1152_v1, 0.0 }
 0x145   : > { %559 = vadd.xlane.f32.xlu2 %v558_v2  ;;  %550 = vadd.xlane.f32.xlu1 %v549_v3 }
 0x198   : > { %v545_v48 = vpop.xlane.xlu1 %544 }
 0x19e   : > { %v563_v52 = vpop.xlane.xlu0 %562 }
 0x19f   : > { %v572_v53 = vpop.xlane.xlu2 %571  ;;  %947 = vrcp.f32 %v563_v52 }
 0x1a0   : > { %949 = vrcp.f32 %v572_v53 }
 0x1a1   : > { %951 = vrcp.f32 %v545_v48 }
 0x1a5   : > { %v948_v55 = vpop.eup %947 }
 0x1a6   : > { %v566_v54 = vpop.xlane.xlu1 %565  ;;  %v950_v60 = vpop.eup %949  ;;  %v597_v49 = vmul.f32 %v948_v55, %v1104_v20 }
 0x1a7   : > { %v575_v57 = vpop.xlane.xlu0 %574  ;;  %v548_v58 = vpop.xlane.xlu2 %547  ;;  %953 = vrcp.f32 %v566_v54  ;;  %v600_v46 = vmul.f32 %v950_v60, %v1108_v24 }
 0x1a8   : > { %955 = vrcp.f32 %v575_v57  ;;  %v952_v61 = vpop.eup %951  ;;  %v609_v4 = vpack.c.bf16 %v597_v49, %v597_v49 }
 0x1a9   : > { %957 = vrcp.f32 %v548_v58  ;;  %v591_v0 = vmul.f32 %v952_v61, %v1098_v7  ;;  %v612_v8 = vpack.c.bf16 %v600_v46, %v600_v46 }
 0x1aa   : > { %v709_v7 = vunpack.c.l.b16 %v609_v4 }
 0x1ab   : > { %v603_v12 = vpack.c.bf16 %v591_v0, %v591_v0  ;;  %v753_v17 = vunpack.c.l.b16 %v612_v8 }
 0x1ad   : > { %v954_v2 = vpop.eup %953  ;;  %v618_v18 = vunpack.c.l.b16 %v603_v12 }
 0x1ae   : > { %v956_v3 = vpop.eup %955  ;;  %v598_v5 = vmul.f32 %v954_v2, %v1121_v40 }
 0x1af   : > { %v958_v6 = vpop.eup %957  ;;  %v601_v9 = vmul.f32 %v956_v3, %v1123_v44  ;;  %v554_v10 = vpop.xlane.xlu0 %553 }
 0x1b0   : > { %v557_v11 = vpop.xlane.xlu1 %556  ;;  %v592_v13 = vmul.f32 %v958_v6, %v1116_v35  ;;  %v610_v14 = vpack.c.bf16 %v598_v5, %v598_v5  ;;  %959 = vrcp.f32 %v554_v10  ;;  %v569_v20 = vpop.xlane.xlu2 %568 }
 0x1b1   : > { %v613_v24 = vpack.c.bf16 %v601_v9, %v601_v9  ;;  %961 = vrcp.f32 %v569_v20 }
 0x1b2   : > { %v604_v15 = vpack.c.bf16 %v592_v13, %v592_v13  ;;  %v710_v16 = vunpack.c.l.b16 %v610_v14  ;;  %963 = vrcp.f32 %v557_v11 }
 0x1b3   : > { %v754_v40 = vunpack.c.l.b16 %v613_v24 }
 0x1b4   : > { %v619_v19 = vunpack.c.l.b16 %v604_v15  ;;  %v712_v21 = vpack.c.b16 %v710_v16, %v709_v7 }
 0x1b5   : > { %v756_v44 = vpack.c.b16 %v754_v40, %v753_v17 }
 0x1b6   : > { %v960_v22 = vpop.eup %959  ;;  %v621_v25 = vpack.c.b16 %v619_v19, %v618_v18  ;;  %907 = vmatmul.msk.bf16.vlgmr.msrb.gmra.mxu2 %vm469_vm1, %v712_v21 }
 0x1b7   : > { %v962_v35 = vpop.eup %961  ;;  %v594_v26 = vmul.f32 %v960_v22, %v1134_v56  ;;  %v578_v27 = vpop.xlane.xlu0 %577  ;;  %909 = vmatmul.msk.bf16.vlgmr.msrb.gmra.mxu3 %vm469_vm1, %v756_v44 }
 0x1b8   : > { %v964_v28 = vpop.eup %963  ;;  %965 = vrcp.f32 %v578_v27  ;;  %v560_v29 = vpop.xlane.xlu2 %559  ;;  %903 = vmatmul.msk.bf16.vlgmr.msrb.gmra.mxu0 %vm469_vm1, %v621_v25  ;;  %v599_v31 = vmul.f32 %v962_v35, %v1140_v62 }
 0x1b9   : > { %v551_v30 = vpop.xlane.xlu1 %550  ;;  %v606_v32 = vpack.c.bf16 %v594_v26, %v594_v26  ;;  %v595_v23 = vmul.f32 %v964_v28, %v1136_v59  ;;  %967 = vrcp.f32 %v560_v29 }
 0x1ba   : > { %969 = vrcp.f32 %v551_v30  ;;  %v611_v37 = vpack.c.bf16 %v599_v31, %v599_v31 }
 0x1bb   : > { %v665_v33 = vunpack.c.l.b16 %v606_v32  ;;  %v607_v36 = vpack.c.bf16 %v595_v23, %v595_v23 }
 0x1bc   : > { %v711_v50 = vunpack.c.l.b16 %v611_v37 }
 0x1bd   : > { %v666_v56 = vunpack.c.l.b16 %v607_v36 }
 0x1be   : > { %v966_v38 = vpop.eup %965  ;;  %v713_v48 = vpack.c.b16 %v711_v50, %v711_v50 }
 0x1bf   : > { %v968_v39 = vpop.eup %967  ;;  %v668_v42 = vpack.c.b16 %v666_v56, %v665_v33  ;;  %v602_v43 = vmul.f32 %v966_v38, %v1146_v47 }
 0x1c0   : > { %v970_v45 = vpop.eup %969  ;;  %v596_v41 = vmul.f32 %v968_v39, %v1148_v63 }
 0x1c1   : > { %905 = vmatmul.msk.bf16.vlgmr.msrb.gmra.mxu1 %vm469_vm1, %v668_v42  ;;  %v593_v62 = vmul.f32 %v970_v45, %v1152_v1  ;;  %v614_v51 = vpack.c.bf16 %v602_v43, %v602_v43 }
 0x1c2   : > { %v608_v47 = vpack.c.bf16 %v596_v41, %v596_v41 }
 0x1c3   : > { %v605_v59 = vpack.c.bf16 %v593_v62, %v593_v62  ;;  %v755_v34 = vunpack.c.l.b16 %v614_v51 }
 0x1c4   : > { %v667_v55 = vunpack.c.l.b16 %v608_v47 }
 0x1c5   : > { %v620_v52 = vunpack.c.l.b16 %v605_v59  ;;  %v757_v53 = vpack.c.b16 %v755_v34, %v755_v34 }
 0x1c6   : > { %908 = vmatmul.msk.bf16.gmra.mxu2 %vm469_vm1, %v713_v48  ;;  %v669_v57 = vpack.c.b16 %v667_v55, %v667_v55 }
 0x1c7   : > { %v622_v54 = vpack.c.b16 %v620_v52, %v620_v52  ;;  %910 = vmatmul.msk.bf16.gmra.mxu3 %vm469_vm1, %v757_v53 }
 0x1c9   : > { %904 = vmatmul.msk.bf16.gmra.mxu0 %vm469_vm1, %v622_v54 }
 0x1d1   : > { %906 = vmatmul.msk.bf16.gmra.mxu1 %vm469_vm1, %v669_v57 }
 0x235   : > { %v653_v63 = vpop.f32.mrf.mxu0 }
 0x236   : > { %794 = vst.msk [vmem:[%s210_s26] sm:$0xff] %vm300_vm0, %v653_v63 }
 0x239   : > { %v741_v1 = vpop.f32.mrf.mxu2 }
 0x23a   : > { %801 = vst.msk [vmem:[%s210_s26 + $0x30] sm:$0xff] %vm300_vm0, %v741_v1  ;;  %v785_v58 = vpop.f32.mrf.mxu3 }
 0x23b   : > { %804 = vst.msk [vmem:[%s210_s26 + $0x48] sm:$0xff] %vm300_vm0, %v785_v58 }
 0x23d   : > { %v655_v60 = vpop.f32.mrf.mxu0 }
 0x23e   : > { %795 = vst.msk [vmem:[%s210_s26 + $0x8] sm:$0xff] %vm300_vm0, %v655_v60  ;;  %v697_v61 = vpop.f32.mrf.mxu1 }
 0x23f   : > { %798 = vst.msk [vmem:[%s210_s26 + $0x18] sm:$0xff] %vm300_vm0, %v697_v61 }
 0x241   : > { %v743_v49 = vpop.f32.mrf.mxu2 }
 0x242   : > { %802 = vst.msk [vmem:[%s210_s26 + $0x38] sm:$0xff] %vm300_vm0, %v743_v49  ;;  %v787_v46 = vpop.f32.mrf.mxu3 }
 0x243   : > { %805 = vst.msk [vmem:[%s210_s26 + $0x50] sm:$0xff] %vm300_vm0, %v787_v46 }
 0x246   : > { %v658_v0 = vpop.f32.mrf.mxu0  ;;  %v699_v2 = vpop.f32.mrf.mxu1 }
 0x247   : > { %797 = vst.msk [vmem:[%s210_s26 + $0x10] sm:$0x1] %vm796_vm4, %v658_v0 }
 0x248   : > { %799 = vst.msk [vmem:[%s210_s26 + $0x20] sm:$0xff] %vm300_vm0, %v699_v2 }
 0x249   : > { %v746_v3 = vpop.f32.mrf.mxu2 }
 0x24a   : > { %803 = vst.msk [vmem:[%s210_s26 + $0x40] sm:$0x1] %vm796_vm4, %v746_v3  ;;  %v790_v4 = vpop.f32.mrf.mxu3 }
 0x24b   : > { %806 = vst.msk [vmem:[%s210_s26 + $0x58] sm:$0x1] %vm796_vm4, %v790_v4 }
 0x24e   : > { %v660_v5 = vpop.f32.mrf.mxu0  ;;  %v702_v6 = vpop.f32.mrf.mxu1 }
 0x24f   : > { %800 = vst.msk [vmem:[%s210_s26 + $0x28] sm:$0x1] %vm796_vm4, %v702_v6 }
 0x251   : > { %v748_v8 = vpop.f32.mrf.mxu2 }
 0x252   : > { %v792_v9 = vpop.f32.mrf.mxu3 }
 0x256   : > { %v704_v10 = vpop.f32.mrf.mxu1 }
 0x257 PF: > { %s13_s12 = sadd.s32 1, %s977_s12  }
 0x258   : > { %p10_p4 = scmp.ge.s32.totalorder %s13_s12, 4  }
 0x25a   :  { %12 = sbr.rel (!%p10_p4) target bundleno = 1 (0x1), region = 68 }

// kernel: clip_encoder_forward.26
= control target key start
LH: loop header
LB: loop body
LE: loop exit
PB: predicated region body
PF: predicated region fallthrough
CT: control target
= control target key end

     0   :  { %s846_s24 = smov 0   ;;  %s1196_s0 = inlined_call_operand.vmem [shape: f32[2,17,128], index: 0, kind: input, shape index: {}]   ;;  %s1197_s1 = inlined_call_operand.vmem [shape: f32[1,128], index: 1, kind: input, shape index: {}]   ;;  %s1198_s2 = inlined_call_operand.vmem [shape: f32[1,128], index: 2, kind: input, shape index: {}]   ;;  %s1199_s3 = inlined_call_operand.vmem [shape: f32[128,256], index: 3, kind: input, shape index: {}]   ;;  %s1200_s4 = inlined_call_operand.vmem [shape: f32[1,256], index: 4, kind: input, shape index: {}]   ;;  %s1201_s5 = inlined_call_operand.vmem [shape: f32[256,128], index: 5, kind: input, shape index: {}]   ;;  %s1202_s6 = inlined_call_operand.vmem [shape: f32[1,128], index: 6, kind: input, shape index: {}]   ;;  %s1203_s7 = inlined_call_operand.vmem [shape: f32[2,17,128], index: 7, kind: output, shape index: {}]  }
   0x1 LB: > { %s737_s25 = sadd.s32 4294967295, %s803_s24   ;;  %p741_p0 = scmp.ge.s32.totalorder %s803_s24, 1  ;;  %s803_s24 = sphi %s846_s24, %s17_s24  }
   0x2   : > { %p237_p1 = scmp.lt.s32.totalorder %s803_s24, 3 }
   0x4   : > { %p238_p2 = pnand %p741_p0, %p237_p1 }
   0x5   : > { %p269_p3 = scmp.lt.s32.totalorder (!%p238_p2), %s737_s25, 1 }
   0x6   : > { %241 = sbr.rel (%p238_p2) target bundleno = 621 (0x26d), region = 48 }
   0xb   : > { %s1211_s25 = smov (!%p269_p3, %s737_s25), 1  ;;  %vm288_vm0 = vcmask 1040384   ;;  %v805_v4 = vmov 128.0   ;;  %v396_v24 = vld [vmem:[%s1199_s3 + $0xe0] sm:$0xff]  ;;  %v398_v25 = vld [vmem:[%s1199_s3 + $0xf0] sm:$0xff]  ;;  %v397_v26 = vld [vmem:[%s1199_s3 + $0xe8] sm:$0xff] }
   0xc   : > { %s752_s26 = smul.u32 24, %s1211_s25  ;;  %765 = vrcp.f32 %v805_v4  ;;  %v414_v27 = vpack.c.bf16 %v398_v25, %v396_v24  ;;  %v399_v28 = vld [vmem:[%s1199_s3 + $0xf8] sm:$0xff]  ;;  %v392_v30 = vld [vmem:[%s1199_s3 + $0xc0] sm:$0xff]  ;;  %v394_v31 = vld [vmem:[%s1199_s3 + $0xd0] sm:$0xff] }
   0xd   : > { %v415_v29 = vpack.c.bf16 %v399_v28, %v397_v26  ;;  %v393_v32 = vld [vmem:[%s1199_s3 + $0xc8] sm:$0xff]  ;;  %v412_v33 = vpack.c.bf16 %v394_v31, %v392_v30  ;;  %v395_v34 = vld [vmem:[%s1199_s3 + $0xd8] sm:$0xff]  ;;  %v388_v36 = vld [vmem:[%s1199_s3 + $0xa0] sm:$0xff] }
   0xe   : > { %s273_s29 = scalar_lea.vmem %s1196_s0, %s752_s26  ;;  %422 = vmatpush.bf16.msra.mxu0 %v414_v27  ;;  %v413_v35 = vpack.c.bf16 %v395_v34, %v393_v32  ;;  %v390_v37 = vld [vmem:[%s1199_s3 + $0xb0] sm:$0xff]  ;;  %v389_v38 = vld [vmem:[%s1199_s3 + $0xa8] sm:$0xff]  ;;  %v391_v40 = vld [vmem:[%s1199_s3 + $0xb8] sm:$0xff]  ;;  %s278_s28 = scalar_lea.vmem %s1203_s7, %s752_s26 }
   0xf   : > { %v862_v0 = vld [vmem:[%s273_s29] sm:$0xff]  ;;  %v864_v1 = vld [vmem:[%s273_s29 + $0x10] sm:$0x1]  ;;  %v869_v3 = vld [vmem:[%s273_s29 + $0x8] sm:$0xff]  ;;  %440 = vmatpush.bf16.msra.mxu1 %v415_v29  ;;  %v410_v39 = vpack.c.bf16 %v390_v37, %v388_v36  ;;  %v411_v41 = vpack.c.bf16 %v391_v40, %v389_v38 }
  0x10   : > { %284 = vadd.xlane.f32.xlu0 %v862_v0  ;;  %v289_v2 = vsel %vm288_vm0, %v864_v1, 0.0  ;;  %v384_v42 = vld [vmem:[%s1199_s3 + $0x80] sm:$0xff]  ;;  %v386_v43 = vld [vmem:[%s1199_s3 + $0x90] sm:$0xff]  ;;  %v385_v44 = vld [vmem:[%s1199_s3 + $0x88] sm:$0xff] }
  0x11   : > { %290 = vadd.xlane.f32.xlu1 %v289_v2  ;;  %v408_v45 = vpack.c.bf16 %v386_v43, %v384_v42  ;;  %v387_v46 = vld [vmem:[%s1199_s3 + $0x98] sm:$0xff]  ;;  %v380_v48 = vld [vmem:[%s1199_s3 + $0x60] sm:$0xff]  ;;  %v382_v49 = vld [vmem:[%s1199_s3 + $0x70] sm:$0xff] }
  0x12   : > { %v766_v5 = vpop.eup %765  ;;  %423 = vmatpush.bf16.msra.mxu0 %v412_v33  ;;  %v409_v47 = vpack.c.bf16 %v387_v46, %v385_v44  ;;  %v381_v50 = vld [vmem:[%s1199_s3 + $0x68] sm:$0xff]  ;;  %v406_v51 = vpack.c.bf16 %v382_v49, %v380_v48  ;;  %v383_v52 = vld [vmem:[%s1199_s3 + $0x78] sm:$0xff]  ;;  %v376_v54 = vld [vmem:[%s1199_s3 + $0x40] sm:$0xff] }
  0x13   : > { %v293_v6 = vmul.f32 128.0, %v766_v5  ;;  %vm297_vm1 = vweird.f32 %v766_v5  ;;  %441 = vmatpush.bf16.msra.mxu1 %v413_v35  ;;  %v407_v53 = vpack.c.bf16 %v383_v52, %v381_v50  ;;  %v378_v55 = vld [vmem:[%s1199_s3 + $0x50] sm:$0xff]  ;;  %v377_v56 = vld [vmem:[%s1199_s3 + $0x48] sm:$0xff]  ;;  %v379_v58 = vld [vmem:[%s1199_s3 + $0x58] sm:$0xff] }
  0x14   : > { %v404_v57 = vpack.c.bf16 %v378_v55, %v376_v54  ;;  %v405_v59 = vpack.c.bf16 %v379_v58, %v377_v56  ;;  %v372_v60 = vld [vmem:[%s1199_s3 + $0x20] sm:$0xff]  ;;  %v374_v61 = vld [vmem:[%s1199_s3 + $0x30] sm:$0xff]  ;;  %v373_v62 = vld [vmem:[%s1199_s3 + $0x28] sm:$0xff] }
  0x15   : > { %v294_v7 = vsub.f32 1.0, %v293_v6  ;;  %v402_v63 = vpack.c.bf16 %v374_v61, %v372_v60  ;;  %v375_v2 = vld [vmem:[%s1199_s3 + $0x38] sm:$0xff]  ;;  %v763_v44 = vld [vmem:[%s1198_s2] ss:$0 sm:$0xff]  ;;  %v602_v55 = vld [vmem:[%s1201_s5 + $0x70] sm:$0xff] }
  0x16   : > { %424 = vmatpush.bf16.msra.mxu0 %v410_v39  ;;  %v403_v4 = vpack.c.bf16 %v375_v2, %v373_v62  ;;  %v603_v56 = vld [vmem:[%s1201_s5 + $0x78] sm:$0xff]  ;;  %v600_v60 = vld [vmem:[%s1201_s5 + $0x60] sm:$0xff]  ;;  %v601_v61 = vld [vmem:[%s1201_s5 + $0x68] sm:$0xff] }
  0x17   : > { %v295_v8 = vmul.f32 %v766_v5, %v294_v7  ;;  %442 = vmatpush.bf16.msra.mxu1 %v411_v41  ;;  %v368_v7 = vld [vmem:[%s1199_s3] sm:$0xff]  ;;  %v627_v58 = vpack.c.bf16 %v603_v56, %v602_v55  ;;  %v617_v2 = vld [vmem:[%s1201_s5 + $0xe8] sm:$0xff] }
  0x18   : > { %286 = vadd.xlane.f32.xlu0 %v869_v3  ;;  %v616_v62 = vld [vmem:[%s1201_s5 + $0xe0] sm:$0xff] }
  0x19   : > { %v296_v9 = vadd.f32 %v766_v5, %v295_v8  ;;  %v370_v8 = vld [vmem:[%s1199_s3 + $0x10] sm:$0xff]  ;;  %640 = vmatpush.bf16.msra.mxu2 %v627_v58  ;;  %v604_v55 = vld [vmem:[%s1201_s5 + $0x80] sm:$0xff] }
  0x1a   : > { %425 = vmatpush.bf16.msra.mxu0 %v408_v45 }
  0x1b   : > { %v872_v10 = vsel %vm297_vm1, %v766_v5, %v296_v9  ;;  %443 = vmatpush.bf16.msra.mxu1 %v409_v47  ;;  %v369_v9 = vld [vmem:[%s1199_s3 + $0x8] sm:$0xff] }
  0x1e   : > { %426 = vmatpush.bf16.msra.mxu0 %v406_v51 }
  0x1f   : > { %444 = vmatpush.bf16.msra.mxu1 %v407_v53 }
  0x22   : > { %427 = vmatpush.bf16.msra.mxu0 %v404_v57  ;;  %v618_v57 = vld [vmem:[%s1201_s5 + $0xf0] sm:$0xff] }
  0x23   : > { %445 = vmatpush.bf16.msra.mxu1 %v405_v59 }
  0x26   : > { %428 = vmatpush.bf16.msra.mxu0 %v402_v63  ;;  %v626_v63 = vpack.c.bf16 %v601_v61, %v600_v60 }
  0x27   : > { %446 = vmatpush.bf16.msra.mxu1 %v403_v4  ;;  %v634_v4 = vpack.c.bf16 %v617_v2, %v616_v62 }
  0x28   : > { %641 = vmatpush.bf16.msra.mxu2 %v626_v63 }
  0x83   : > { %v285_v11 = vpop.xlane.xlu0 %284 }
  0x84   : > { %v299_v12 = vmul.f32 %v872_v10, %v285_v11  ;;  %v291_v15 = vpop.xlane.xlu1 %290  ;;  %v400_v11 = vpack.c.bf16 %v370_v8, %v368_v7  ;;  %v614_v7 = vld [vmem:[%s1201_s5 + $0xd0] sm:$0xff]  ;;  %v416_v8 = vld [vmem:[%s1200_s4] sm:$0x3] }
  0x85   : > { %v301_v17 = vmul.f32 %v872_v10, %v291_v15 }
  0x86   : > { %v876_v13 = vsub.f32 %v862_v0, %v299_v12  ;;  %v371_v12 = vld [vmem:[%s1199_s3 + $0x18] sm:$0xff]  ;;  %429 = vmatpush.bf16.msra.mxu0 %v400_v11 }
  0x87   : > { %v886_v20 = vsub.f32 %v864_v1, %v301_v17  ;;  %v401_v15 = vpack.c.bf16 %v371_v12, %v369_v9  ;;  %v615_v11 = vld [vmem:[%s1201_s5 + $0xd8] sm:$0xff] }
  0x88   : > { %v305_v14 = vmul.f32 %v876_v13, %v876_v13  ;;  %v633_v12 = vpack.c.bf16 %v615_v11, %v614_v7 }
  0x89   : > { %v307_v22 = vmul.f32 %v886_v20, %v886_v20  ;;  %447 = vmatpush.bf16.msra.mxu1 %v401_v15  ;;  %v1042_v15 = vperm.slane %v416_v8, 1 }
  0x8a   : > { %308 = vadd.xlane.f32.xlu1 %v305_v14 }
  0x8b   : > { %v287_v16 = vpop.xlane.xlu0 %286  ;;  %v312_v23 = vsel %vm288_vm0, %v307_v22, 0.0 }
  0x8c   : > { %v300_v18 = vmul.f32 %v872_v10, %v287_v16 }
  0x8e   : > { %v883_v19 = vsub.f32 %v869_v3, %v300_v18 }
  0x90   : > { %v306_v21 = vmul.f32 %v883_v19, %v883_v19 }
  0x92   : > { %310 = vadd.xlane.f32.xlu2 %v306_v21 }
  0x9a   : > { %313 = vadd.xlane.f32.xlu2 %v312_v23 }
  0xfd   : > { %v309_v5 = vpop.xlane.xlu1 %308 }
  0xfe   : > { %v315_v6 = vmul.f32 %v309_v5, %v872_v10  ;;  %v598_v5 = vld [vmem:[%s1201_s5 + $0x50] sm:$0xff] }
 0x100   : > { %v318_v14 = vadd.f32 1e-05, %v315_v6  ;;  %v599_v6 = vld [vmem:[%s1201_s5 + $0x58] sm:$0xff] }
 0x101   : > { %v625_v9 = vpack.c.bf16 %v599_v6, %v598_v5 }
 0x102   : > { %767 = vrsqrt.f32 %v318_v14  ;;  %vm327_vm3 = vweird.f32 %v318_v14 }
 0x103   : > { %642 = vmatpush.bf16.msra.mxu2 %v625_v9 }
 0x105   : > { %v311_v16 = vpop.xlane.xlu2 %310 }
 0x106   : > { %v316_v17 = vmul.f32 %v311_v16, %v872_v10  ;;  %v596_v16 = vld [vmem:[%s1201_s5 + $0x40] sm:$0xff] }
 0x108   : > { %v768_v18 = vpop.eup %767  ;;  %v319_v21 = vadd.f32 1e-05, %v316_v17  ;;  %v597_v17 = vld [vmem:[%s1201_s5 + $0x48] sm:$0xff] }
 0x109   : > { %v322_v22 = vmul.f32 %v768_v18, %v318_v14  ;;  %vm328_vm2 = vweird.f32 %v768_v18  ;;  %v1040_v14 = vperm.slane %v416_v8, 0 }
 0x10a   : > { %769 = vrsqrt.f32 %v319_v21  ;;  %vm329_vm4 = vmor %vm327_vm3, %vm328_vm2  ;;  %vm337_vm6 = vweird.f32 %v319_v21 }
 0x10b   : > { %v323_v23 = vmul.f32 %v768_v18, %v322_v22  ;;  %v613_v22 = vld [vmem:[%s1201_s5 + $0xc8] sm:$0xff] }
 0x10d   : > { %v324_v24 = vmul.f32 0.5, %v323_v23  ;;  %v314_v25 = vpop.xlane.xlu2 %313 }
 0x10e   : > { %v317_v26 = vmul.f32 %v314_v25, %v872_v10  ;;  %v762_v10 = vld [vmem:[%s1197_s1] ss:$0 sm:$0xff] }
 0x10f   : > { %v325_v27 = vsub.f32 1.5, %v324_v24 }
 0x110   : > { %v770_v28 = vpop.eup %769  ;;  %v320_v29 = vadd.f32 1e-05, %v317_v26 }
 0x111   : > { %v326_v30 = vmul.f32 %v768_v18, %v325_v27  ;;  %v332_v31 = vmul.f32 %v770_v28, %v319_v21  ;;  %vm338_vm5 = vweird.f32 %v770_v28  ;;  %v624_v21 = vpack.c.bf16 %v597_v17, %v596_v16 }
 0x112   : > { %771 = vrsqrt.f32 %v320_v29  ;;  %vm339_vm7 = vmor %vm337_vm6, %vm338_vm5  ;;  %vm347_vm8 = vweird.f32 %v320_v29 }
 0x113   : > { %v333_v32 = vmul.f32 %v770_v28, %v332_v31  ;;  %v330_v34 = vsel %vm329_vm4, %v768_v18, %v326_v30  ;;  %v612_v18 = vld [vmem:[%s1201_s5 + $0xc0] sm:$0xff]  ;;  %643 = vmatpush.bf16.msra.mxu2 %v624_v21  ;;  %v610_v30 = vld [vmem:[%s1201_s5 + $0xb0] sm:$0xff] }
 0x114   : > { %v351_v37 = vmul.f32 %v330_v34, %v876_v13  ;;  %v632_v23 = vpack.c.bf16 %v613_v22, %v612_v18 }
 0x115   : > { %v334_v33 = vmul.f32 0.5, %v333_v32  ;;  %v611_v32 = vld [vmem:[%s1201_s5 + $0xb8] sm:$0xff] }
 0x116   : > { %v357_v43 = vmul.f32 %v762_v10, %v351_v37 }
 0x117   : > { %v335_v35 = vsub.f32 1.5, %v334_v33 }
 0x118   : > { %v772_v36 = vpop.eup %771  ;;  %v363_v47 = vadd.f32 %v763_v44, %v357_v43 }
 0x119   : > { %v336_v38 = vmul.f32 %v770_v28, %v335_v35  ;;  %v342_v39 = vmul.f32 %v772_v36, %v320_v29  ;;  %vm348_vm9 = vweird.f32 %v772_v36  ;;  %v595_v29 = vld [vmem:[%s1201_s5 + $0x38] sm:$0xff]  ;;  %v631_v35 = vpack.c.bf16 %v611_v32, %v610_v30 }
 0x11a   : > { %vm349_vm10 = vmor %vm347_vm8, %vm348_vm9 }
 0x11b   : > { %v343_v40 = vmul.f32 %v772_v36, %v342_v39  ;;  %v340_v41 = vsel %vm339_vm7, %v770_v28, %v336_v38  ;;  %v594_v28 = vld [vmem:[%s1201_s5 + $0x30] sm:$0xff]  ;;  %v593_v38 = vld [vmem:[%s1201_s5 + $0x28] sm:$0xff] }
 0x11c   : > { %v352_v42 = vmul.f32 %v340_v41, %v883_v19  ;;  %v623_v31 = vpack.c.bf16 %v595_v29, %v594_v28  ;;  %v609_v41 = vld [vmem:[%s1201_s5 + $0xa8] sm:$0xff] }
 0x11d   : > { %v344_v45 = vmul.f32 0.5, %v343_v40  ;;  %v608_v40 = vld [vmem:[%s1201_s5 + $0xa0] sm:$0xff] }
 0x11e   : > { %v358_v13 = vmul.f32 %v762_v10, %v352_v42  ;;  %644 = vmatpush.bf16.msra.mxu2 %v623_v31  ;;  %v630_v42 = vpack.c.bf16 %v609_v41, %v608_v40  ;;  %v764_v40 = vld [vmem:[%s1202_s6] ss:$0 sm:$0xff] }
 0x11f   : > { %v345_v46 = vsub.f32 1.5, %v344_v45 }
 0x120   : > { %v364_v48 = vadd.f32 %v763_v44, %v358_v13 }
 0x121   : > { %v346_v49 = vmul.f32 %v772_v36, %v345_v46  ;;  %v590_v46 = vld [vmem:[%s1201_s5 + $0x10] sm:$0xff] }
 0x122   : > { %v366_v50 = vpack.c.bf16 %v364_v48, %v363_v47  ;;  %v591_v47 = vld [vmem:[%s1201_s5 + $0x18] sm:$0xff]  ;;  %v606_v48 = vld [vmem:[%s1201_s5 + $0x90] sm:$0xff] }
 0x123   : > { %v350_v51 = vsel %vm349_vm10, %v772_v36, %v346_v49  ;;  %v621_v49 = vpack.c.bf16 %v591_v47, %v590_v46 }
 0x124   : > { %430 = vmatmul.bf16.vlgmr.msra.gmra.mxu0 %v366_v50  ;;  %448 = vmatmul.bf16.vlgmr.msra.gmra.mxu1 %v366_v50  ;;  %v353_v19 = vmul.f32 %v350_v51, %v886_v20  ;;  %v619_v20 = vld [vmem:[%s1201_s5 + $0xf8] sm:$0xff] }
 0x125   : > { %v635_v59 = vpack.c.bf16 %v619_v20, %v618_v57  ;;  %v607_v50 = vld [vmem:[%s1201_s5 + $0x98] sm:$0xff]  ;;  %v605_v20 = vld [vmem:[%s1201_s5 + $0x88] sm:$0xff] }
 0x126   : > { %v359_v52 = vmul.f32 %v762_v10, %v353_v19  ;;  %v592_v10 = vld [vmem:[%s1201_s5 + $0x20] sm:$0xff]  ;;  %v628_v62 = vpack.c.bf16 %v605_v20, %v604_v55 }
 0x127   : > { %658 = vmatpush.bf16.msra.mxu3 %v635_v59  ;;  %v622_v39 = vpack.c.bf16 %v593_v38, %v592_v10 }
 0x128   : > { %v365_v53 = vadd.f32 %v763_v44, %v359_v52  ;;  %v629_v52 = vpack.c.bf16 %v607_v50, %v606_v48 }
 0x129   : > { %645 = vmatpush.bf16.msra.mxu2 %v622_v39 }
 0x12a   : > { %v367_v54 = vpack.c.bf16 %v365_v53, %v365_v53  ;;  %v588_v53 = vld [vmem:[%s1201_s5] sm:$0xff] }
 0x12b   : > { %659 = vmatpush.bf16.msra.mxu3 %v634_v4 }
 0x12d   : > { %646 = vmatpush.bf16.msra.mxu2 %v621_v49 }
 0x12f   : > { %660 = vmatpush.bf16.msra.mxu3 %v633_v12 }
 0x133   : > { %661 = vmatpush.bf16.msra.mxu3 %v632_v23 }
 0x134   : > { %435 = vmatmul.bf16.gmra.mxu0 %v367_v54  ;;  %453 = vmatmul.bf16.gmra.mxu1 %v367_v54  ;;  %v589_v54 = vld [vmem:[%s1201_s5 + $0x8] sm:$0xff] }
 0x135   : > { %v620_v58 = vpack.c.bf16 %v589_v54, %v588_v53 }
 0x137   : > { %662 = vmatpush.bf16.msra.mxu3 %v631_v35  ;;  %647 = vmatpush.bf16.msra.mxu2 %v620_v58 }
 0x13b   : > { %663 = vmatpush.bf16.msra.mxu3 %v630_v42 }
 0x13f   : > { %664 = vmatpush.bf16.msra.mxu3 %v629_v52 }
 0x143   : > { %665 = vmatpush.bf16.msra.mxu3 %v628_v62 }
 0x1a1   : > { %v431_v24 = vpop.f32.mrf.mxu0  ;;  %v449_v25 = vpop.f32.mrf.mxu1 }
 0x1a2   : > { %v1057_v26 = vadd.f32 %v431_v24, %v1040_v14  ;;  %v1060_v27 = vadd.f32 %v449_v25, %v1042_v15 }
 0x1a4   : > { %v744_v33 = vmul.f32 -1.702, %v1057_v26  ;;  %v745_v34 = vmul.f32 -1.702, %v1060_v27 }
 0x1a6   : > { %v470_v36 = vmul.f32 1.442695, %v744_v33  ;;  %v472_v37 = vmul.f32 1.442695, %v745_v34 }
 0x1a8   : > { %773 = vpow2.f32 %v470_v36 }
 0x1a9   : > { %775 = vpow2.f32 %v472_v37  ;;  %v433_v43 = vpop.f32.mrf.mxu0  ;;  %v451_v44 = vpop.f32.mrf.mxu1 }
 0x1aa   : > { %v1089_v45 = vadd.f32 %v433_v43, %v1040_v14  ;;  %v1092_v13 = vadd.f32 %v451_v44, %v1042_v15 }
 0x1ac   : > { %v746_v51 = vmul.f32 -1.702, %v1089_v45  ;;  %v747_v19 = vmul.f32 -1.702, %v1092_v13 }
 0x1ae   : > { %v774_v56 = vpop.eup %773  ;;  %v474_v57 = vmul.f32 1.442695, %v746_v51  ;;  %v476_v61 = vmul.f32 1.442695, %v747_v19 }
 0x1af   : > { %v776_v59 = vpop.eup %775  ;;  %v482_v60 = vadd.f32 1.0, %v774_v56 }
 0x1b0   : > { %v1120_v63 = vadd.f32 1.0, %v776_v59  ;;  %777 = vpow2.f32 %v474_v57 }
 0x1b1   : > { %779 = vrcp.f32 %v482_v60  ;;  %v436_v2 = vpop.f32.mrf.mxu0  ;;  %v454_v4 = vpop.f32.mrf.mxu1  ;;  %v497_v30 = vand.u32 2147483647, %v482_v60  ;;  %v499_v31 = vand.u32 2147483648, %v482_v60  ;;  %vm493_vm12 = vweird.f32 %v482_v60 }
 0x1b2   : > { %781 = vrcp.f32 %v1120_v63  ;;  %v1124_v5 = vadd.f32 %v436_v2, %v1040_v14  ;;  %v1127_v6 = vadd.f32 %v454_v4, %v1042_v15  ;;  %vm508_vm13 = vweird.f32 %v1120_v63 }
 0x1b3   : > { %783 = vpow2.f32 %v476_v61  ;;  %v512_v37 = vand.u32 2147483647, %v1120_v63  ;;  %v514_v10 = vand.u32 2147483648, %v1120_v63  ;;  %vm1146_vm15 = vcmp.eq.f32.partialorder %v497_v30, 8.507059e+37 }
 0x1b4   : > { %v748_v7 = vmul.f32 -1.702, %v1124_v5  ;;  %v749_v9 = vmul.f32 -1.702, %v1127_v6  ;;  %v500_v42 = vor.u32 1.1754944e-38, %v499_v31 }
 0x1b5   : > { %vm513_vm7 = vcmp.eq.f32.partialorder %v512_v37, 8.507059e+37 }
 0x1b6   : > { %v778_v8 = vpop.eup %777  ;;  %v478_v16 = vmul.f32 1.442695, %v748_v7  ;;  %v480_v25 = vmul.f32 1.442695, %v749_v9 }
 0x1b7   : > { %v780_v11 = vpop.eup %779  ;;  %v484_v12 = vadd.f32 1.0, %v778_v8 }
 0x1b8   : > { %v1131_v17 = vpop.eup %781  ;;  %v489_v18 = vmul.f32 %v780_v11, %v482_v60  ;;  %vm494_vm11 = vweird.f32 %v780_v11  ;;  %v515_v60 = vor.u32 1.1754944e-38, %v514_v10 }
 0x1b9   : > { %v784_v21 = vpop.eup %783  ;;  %v504_v22 = vmul.f32 %v1131_v17, %v1120_v63  ;;  %785 = vrcp.f32 %v484_v12  ;;  %v438_v14 = vpop.f32.mrf.mxu0  ;;  %v529_v38 = vand.u32 2147483648, %v484_v12  ;;  %vm1142_vm14 = vmor %vm493_vm12, %vm494_vm11  ;;  %vm509_vm0 = vweird.f32 %v1131_v17 }
 0x1ba   : > { %v456_v23 = vpop.f32.mrf.mxu1  ;;  %v490_v15 = vsub.f32 1.0, %v489_v18  ;;  %v1135_v24 = vadd.f32 1.0, %v784_v21  ;;  %787 = vpow2.f32 %v478_v16  ;;  %v527_v51 = vand.u32 2147483647, %v484_v12  ;;  %vm1162_vm3 = vmor %vm508_vm13, %vm509_vm0 }
 0x1bb   : > { %v505_v28 = vsub.f32 1.0, %v504_v22  ;;  %vm523_vm2 = vweird.f32 %v484_v12  ;;  %v530_v19 = vor.u32 1.1754944e-38, %v529_v38 }
 0x1bc   : > { %v491_v29 = vmul.f32 %v780_v11, %v490_v15  ;;  %789 = vrcp.f32 %v1135_v24  ;;  %v542_v57 = vand.u32 2147483647, %v1135_v24  ;;  %v544_v58 = vand.u32 2147483648, %v1135_v24 }
 0x1bd   : > { %791 = vpow2.f32 %v480_v25  ;;  %v506_v34 = vmul.f32 %v1131_v17, %v505_v28  ;;  %vm528_vm6 = vcmp.eq.f32.partialorder %v527_v51, 8.507059e+37  ;;  %vm538_vm8 = vweird.f32 %v1135_v24 }
 0x1be   : > { %v492_v33 = vadd.f32 %v780_v11, %v491_v29  ;;  %v545_v9 = vor.u32 1.1754944e-38, %v544_v58  ;;  %vm543_vm10 = vcmp.eq.f32.partialorder %v542_v57, 8.507059e+37 }
 0x1bf   : > { %v786_v32 = vpop.eup %785  ;;  %v507_v47 = vadd.f32 %v1131_v17, %v506_v34 }
 0x1c0   : > { %v519_v35 = vmul.f32 %v786_v32, %v484_v12  ;;  %v788_v36 = vpop.eup %787  ;;  %v496_v46 = vsel %vm1142_vm14, %v780_v11, %v492_v33  ;;  %vm524_vm1 = vweird.f32 %v786_v32 }
 0x1c1   : > { %v1150_v44 = vadd.f32 1.0, %v788_v36  ;;  %v501_v54 = vsel %vm1146_vm15, %v500_v42, %v496_v46  ;;  %v511_v20 = vsel %vm1162_vm3, %v1131_v17, %v507_v47  ;;  %vm525_vm4 = vmor %vm523_vm2, %vm524_vm1 }
 0x1c2   : > { %v790_v39 = vpop.eup %789  ;;  %v520_v43 = vsub.f32 1.0, %v519_v35  ;;  %v578_v4 = vmul.f32 %v501_v54, %v1057_v26  ;;  %v516_v7 = vsel %vm513_vm7, %v515_v60, %v511_v20 }
 0x1c3   : > { %v534_v48 = vmul.f32 %v790_v39, %v1135_v24  ;;  %v792_v49 = vpop.eup %791  ;;  %793 = vrcp.f32 %v1150_v44  ;;  %vm539_vm5 = vweird.f32 %v790_v39  ;;  %v579_v21 = vmul.f32 %v516_v7, %v1060_v27 }
 0x1c4   : > { %v521_v50 = vmul.f32 %v786_v32, %v520_v43  ;;  %v487_v53 = vadd.f32 1.0, %v792_v49  ;;  %vm540_vm9 = vmor %vm538_vm8, %vm539_vm5  ;;  %v557_v24 = vand.u32 2147483647, %v1150_v44  ;;  %vm553_vm12 = vweird.f32 %v1150_v44 }
 0x1c5   : > { %v535_v52 = vsub.f32 1.0, %v534_v48 }
 0x1c6   : > { %v522_v56 = vadd.f32 %v786_v32, %v521_v50  ;;  %795 = vrcp.f32 %v487_v53  ;;  %v574_v27 = vand.u32 2147483648, %v487_v53  ;;  %v572_v31 = vand.u32 2147483647, %v487_v53 }
 0x1c7   : > { %v536_v59 = vmul.f32 %v790_v39, %v535_v52  ;;  %vm558_vm15 = vcmp.eq.f32.partialorder %v557_v24, 8.507059e+37  ;;  %vm568_vm0 = vweird.f32 %v487_v53 }
 0x1c8   : > { %v526_v61 = vsel %vm525_vm4, %v786_v32, %v522_v56  ;;  %v575_v35 = vor.u32 1.1754944e-38, %v574_v27  ;;  %vm573_vm2 = vcmp.eq.f32.partialorder %v572_v31, 8.507059e+37 }
 0x1c9   : > { %v531_v62 = vsel %vm528_vm6, %v530_v19, %v526_v61  ;;  %v537_v63 = vadd.f32 %v790_v39, %v536_v59  ;;  %v794_v2 = vpop.eup %793 }
 0x1ca   : > { %v580_v8 = vmul.f32 %v531_v62, %v1089_v45  ;;  %v549_v12 = vmul.f32 %v794_v2, %v1150_v44  ;;  %vm554_vm11 = vweird.f32 %v794_v2  ;;  %v559_v45 = vand.u32 2147483648, %v1150_v44 }
 0x1cb   : > { %v541_v11 = vsel %vm540_vm9, %v790_v39, %v537_v63  ;;  %vm555_vm13 = vmor %vm553_vm12, %vm554_vm11 }
 0x1cc   : > { %v546_v16 = vsel %vm543_vm10, %v545_v9, %v541_v11  ;;  %v584_v17 = vpack.c.bf16 %v580_v8, %v578_v4  ;;  %v796_v18 = vpop.eup %795  ;;  %v550_v14 = vsub.f32 1.0, %v549_v12  ;;  %v560_v30 = vor.u32 1.1754944e-38, %v559_v45 }
 0x1cd   : > { %v581_v22 = vmul.f32 %v546_v16, %v1092_v13  ;;  %v564_v23 = vmul.f32 %v796_v18, %v487_v53  ;;  %vm569_vm14 = vweird.f32 %v796_v18 }
 0x1ce   : > { %648 = vmatmul.bf16.vlgmr.msra.gmra.mxu2 %v584_v17  ;;  %v551_v15 = vmul.f32 %v794_v2, %v550_v14  ;;  %vm570_vm1 = vmor %vm568_vm0, %vm569_vm14 }
 0x1cf   : > { %v585_v26 = vpack.c.bf16 %v581_v22, %v579_v21  ;;  %v565_v25 = vsub.f32 1.0, %v564_v23 }
 0x1d0   : > { %v552_v28 = vadd.f32 %v794_v2, %v551_v15 }
 0x1d1   : > { %666 = vmatmul.bf16.vlgmr.msra.gmra.mxu3 %v585_v26  ;;  %v566_v29 = vmul.f32 %v796_v18, %v565_v25 }
 0x1d2   : > { %v556_v13 = vsel %vm555_vm13, %v794_v2, %v552_v28 }
 0x1d3   : > { %v567_v32 = vadd.f32 %v796_v18, %v566_v29  ;;  %v561_v33 = vsel %vm558_vm15, %v560_v30, %v556_v13 }
 0x1d4   : > { %v582_v36 = vmul.f32 %v561_v33, %v1124_v5 }
 0x1d5   : > { %v571_v34 = vsel %vm570_vm1, %v796_v18, %v567_v32 }
 0x1d6   : > { %v576_v37 = vsel %vm573_vm2, %v575_v35, %v571_v34  ;;  %v586_v38 = vpack.c.bf16 %v582_v36, %v582_v36 }
 0x1d7   : > { %v583_v10 = vmul.f32 %v576_v37, %v1127_v6 }
 0x1d9   : > { %v587_v39 = vpack.c.bf16 %v583_v10, %v583_v10 }
 0x1de   : > { %653 = vmatmul.bf16.gmra.mxu2 %v586_v38 }
 0x1e1   : > { %671 = vmatmul.bf16.gmra.mxu3 %v587_v39 }
 0x251   : > { %v649_v41 = vpop.f32.mrf.mxu2 }
 0x252   : > { %v650_v42 = vadd.f32 %v764_v40, %v649_v41 }
 0x254   : > { %v667_v43 = vpop.f32.mrf.mxu3 }
 0x255   : > { %v668_v44 = vadd.f32 %v667_v43, %v650_v42 }
 0x257   : > { %v676_v5 = vadd.f32 %v668_v44, %v862_v0 }
 0x259   : > { %679 = vst [vmem:[%s278_s28] sm:$0xff] %v676_v5  ;;  %v651_v6 = vpop.f32.mrf.mxu2 }
 0x25a   : > { %v652_v46 = vadd.f32 %v764_v40, %v651_v6 }
 0x25c   : > { %v669_v47 = vpop.f32.mrf.mxu3 }
 0x25d   : > { %v670_v48 = vadd.f32 %v669_v47, %v652_v46 }
 0x25f   : > { %v677_v49 = vadd.f32 %v670_v48, %v869_v3 }
 0x261   : > { %680 = vst [vmem:[%s278_s28 + $0x8] sm:$0xff] %v677_v49  ;;  %v654_v50 = vpop.f32.mrf.mxu2 }
 0x262   : > { %v655_v51 = vadd.f32 %v764_v40, %v654_v50 }
 0x264   : > { %v672_v19 = vpop.f32.mrf.mxu3 }
 0x265   : > { %v673_v52 = vadd.f32 %v672_v19, %v655_v51 }
 0x267   : > { %v678_v53 = vadd.f32 %v673_v52, %v864_v1 }
 0x269   : > { %681 = vst [vmem:[%s278_s28 + $0x10] sm:$0x1] %v678_v53  ;;  %v656_v54 = vpop.f32.mrf.mxu2 }
 0x26c   : > { %v674_v55 = vpop.f32.mrf.mxu3 }
 0x26d PF: > { %s17_s24 = sadd.s32 1, %s803_s24  }
 0x26e   : > { %p14_p4 = scmp.ge.s32.totalorder %s17_s24, 4  }
 0x270   :  { %16 = sbr.rel (!%p14_p4) target bundleno = 1 (0x1), region = 78 }

// kernel: clip_encoder_forward.25
= control target key start
LH: loop header
LB: loop body
LE: loop exit
PB: predicated region body
PF: predicated region fallthrough
CT: control target
= control target key end

     0   :  { %s406_s15 = smov 0   ;;  %s481_s0 = inlined_call_operand.vmem [shape: f32[2,17,128], index: 0, kind: input, shape index: {}]   ;;  %s482_s1 = inlined_call_operand.vmem [shape: f32[2,17,128], index: 1, kind: input, shape index: {}]   ;;  %s483_s2 = inlined_call_operand.vmem [shape: f32[128,128], index: 2, kind: input, shape index: {}]   ;;  %s484_s3 = inlined_call_operand.vmem [shape: f32[1,128], index: 3, kind: input, shape index: {}]   ;;  %s485_s4 = inlined_call_operand.vmem [shape: f32[2,17,128], index: 4, kind: output, shape index: {}]  }
   0x1 LB: > { %s345_s16 = sadd.s32 4294967295, %s379_s15   ;;  %p349_p0 = scmp.ge.s32.totalorder %s379_s15, 1  ;;  %s379_s15 = sphi %s406_s15, %s14_s15  }
   0x2   : > { %p172_p1 = scmp.lt.s32.totalorder %s379_s15, 3 }
   0x4   : > { %p173_p2 = pnand %p349_p0, %p172_p1 }
   0x5   : > { %p203_p3 = scmp.lt.s32.totalorder (!%p173_p2), %s345_s16, 1 }
   0x6   : > { %176 = sbr.rel (%p173_p2) target bundleno = 184 (0xb8), region = 36 }
   0xb   : > { %v237_v0 = vld [vmem:[%s483_s2 + $0x70] sm:$0xff]  ;;  %v238_v1 = vld [vmem:[%s483_s2 + $0x78] sm:$0xff]  ;;  %v235_v2 = vld [vmem:[%s483_s2 + $0x60] sm:$0xff]  ;;  %s487_s16 = smov (!%p203_p3, %s345_s16), 1 }
   0xc   : > { %v246_v3 = vpack.c.bf16 %v238_v1, %v237_v0  ;;  %v236_v4 = vld [vmem:[%s483_s2 + $0x68] sm:$0xff]  ;;  %v233_v6 = vld [vmem:[%s483_s2 + $0x50] sm:$0xff]  ;;  %v234_v7 = vld [vmem:[%s483_s2 + $0x58] sm:$0xff]  ;;  %s363_s21 = smul.u32 24, %s487_s16 }
   0xd   : > { %v245_v5 = vpack.c.bf16 %v236_v4, %v235_v2  ;;  %v244_v8 = vpack.c.bf16 %v234_v7, %v233_v6  ;;  %v231_v9 = vld [vmem:[%s483_s2 + $0x40] sm:$0xff]  ;;  %v232_v10 = vld [vmem:[%s483_s2 + $0x48] sm:$0xff]  ;;  %v229_v12 = vld [vmem:[%s483_s2 + $0x30] sm:$0xff] }
   0xe   : > { %251 = vmatpush.bf16.msra.mxu0 %v246_v3  ;;  %355 = vmatpush.bf16.msra.mxu1 %v246_v3  ;;  %v243_v11 = vpack.c.bf16 %v232_v10, %v231_v9  ;;  %v230_v13 = vld [vmem:[%s483_s2 + $0x38] sm:$0xff]  ;;  %v227_v15 = vld [vmem:[%s483_s2 + $0x20] sm:$0xff]  ;;  %v228_v16 = vld [vmem:[%s483_s2 + $0x28] sm:$0xff]  ;;  %s207_s28 = scalar_lea.vmem %s481_s0, %s363_s21  ;;  %s212_s30 = scalar_lea.vmem %s482_s1, %s363_s21 }
   0xf   : > { %v242_v14 = vpack.c.bf16 %v230_v13, %v229_v12  ;;  %v241_v17 = vpack.c.bf16 %v228_v16, %v227_v15  ;;  %v225_v18 = vld [vmem:[%s483_s2 + $0x10] sm:$0xff]  ;;  %v226_v19 = vld [vmem:[%s483_s2 + $0x18] sm:$0xff]  ;;  %v223_v21 = vld [vmem:[%s483_s2] sm:$0xff]  ;;  %s217_s9 = scalar_lea.vmem %s485_s4, %s363_s21 }
  0x10   : > { %v240_v20 = vpack.c.bf16 %v226_v19, %v225_v18  ;;  %v224_v22 = vld [vmem:[%s483_s2 + $0x8] sm:$0xff]  ;;  %v218_v24 = vld [vmem:[%s207_s28] sm:$0xff]  ;;  %v220_v26 = vld [vmem:[%s207_s28 + $0x10] sm:$0x1] }
  0x11   : > { %v239_v23 = vpack.c.bf16 %v224_v22, %v223_v21  ;;  %v219_v25 = vld [vmem:[%s207_s28 + $0x8] sm:$0xff]  ;;  %v222_v28 = vpack.c.bf16 %v220_v26, %v220_v26  ;;  %v372_v29 = vld [vmem:[%s484_s3] ss:$0 sm:$0xff]  ;;  %v271_v33 = vld [vmem:[%s212_s30 + $0x10] sm:$0x1] }
  0x12   : > { %252 = vmatpush.bf16.msra.mxu0 %v245_v5  ;;  %356 = vmatpush.bf16.msra.mxu1 %v245_v5  ;;  %v221_v27 = vpack.c.bf16 %v219_v25, %v218_v24  ;;  %v269_v31 = vld [vmem:[%s212_s30] sm:$0xff]  ;;  %v270_v39 = vld [vmem:[%s212_s30 + $0x8] sm:$0xff] }
  0x16   : > { %253 = vmatpush.bf16.msra.mxu0 %v244_v8  ;;  %357 = vmatpush.bf16.msra.mxu1 %v244_v8 }
  0x1a   : > { %254 = vmatpush.bf16.msra.mxu0 %v243_v11  ;;  %358 = vmatpush.bf16.msra.mxu1 %v243_v11 }
  0x1e   : > { %255 = vmatpush.bf16.msra.mxu0 %v242_v14  ;;  %359 = vmatpush.bf16.msra.mxu1 %v242_v14 }
  0x22   : > { %256 = vmatpush.bf16.msra.mxu0 %v241_v17  ;;  %360 = vmatpush.bf16.msra.mxu1 %v241_v17 }
  0x26   : > { %257 = vmatpush.bf16.msra.mxu0 %v240_v20  ;;  %361 = vmatpush.bf16.msra.mxu1 %v240_v20 }
  0x2a   : > { %258 = vmatpush.bf16.msra.mxu0 %v239_v23  ;;  %362 = vmatpush.bf16.msra.mxu1 %v239_v23 }
  0x2d   : > { %259 = vmatmul.bf16.vlgmr.msra.gmra.mxu0 %v221_v27  ;;  %264 = vmatmul.bf16.vlgmr.msra.gmra.mxu1 %v222_v28 }
  0xaa   : > { %v260_v30 = vpop.f32.mrf.mxu0  ;;  %v265_v32 = vpop.f32.mrf.mxu1 }
  0xab   : > { %v261_v34 = vadd.f32 %v372_v29, %v260_v30  ;;  %v266_v35 = vadd.f32 %v372_v29, %v265_v32 }
  0xad   : > { %v272_v36 = vadd.f32 %v269_v31, %v261_v34  ;;  %v274_v37 = vadd.f32 %v271_v33, %v266_v35 }
  0xaf   : > { %275 = vst [vmem:[%s217_s9] sm:$0xff] %v272_v36 }
  0xb0   : > { %277 = vst [vmem:[%s217_s9 + $0x10] sm:$0x1] %v274_v37 }
  0xb2   : > { %v262_v38 = vpop.f32.mrf.mxu0  ;;  %v267_v40 = vpop.f32.mrf.mxu1 }
  0xb3   : > { %v263_v41 = vadd.f32 %v372_v29, %v262_v38 }
  0xb5   : > { %v273_v42 = vadd.f32 %v270_v39, %v263_v41 }
  0xb7   : > { %276 = vst [vmem:[%s217_s9 + $0x8] sm:$0xff] %v273_v42 }
  0xb8 PF: > { %s14_s15 = sadd.s32 1, %s379_s15  }
  0xb9   : > { %p11_p4 = scmp.ge.s32.totalorder %s14_s15, 4  }
  0xbb   :  { %13 = sbr.rel (!%p11_p4) target bundleno = 1 (0x1), region = 69 }

// kernel: clip_encoder_forward.31
= control target key start
LH: loop header
LB: loop body
LE: loop exit
PB: predicated region body
PF: predicated region fallthrough
CT: control target
= control target key end

     0   :  { %11 = vsyncpa [#allocation3], 0  ;;  %vm24_vm0 = vcmask 1041408   ;;  %s294_s0 = inlined_call_operand.vmem [shape: f32[2,128], index: 0, kind: input, shape index: {}]   ;;  %s295_s1 = inlined_call_operand.vmem [shape: f32[1,128], index: 1, kind: input, shape index: {}]   ;;  %s296_s2 = inlined_call_operand.vmem [shape: f32[1,128], index: 2, kind: input, shape index: {}]   ;;  %s297_s3 = inlined_call_operand.vmem [shape: f32[128,64], index: 3, kind: input, shape index: {}]   ;;  %s298_s4 = inlined_call_operand.hbm [shape: f32[2,128], index: 4, kind: output, shape index: {0}]   ;;  %s299_s5 = inlined_call_operand.hbm [shape: f32[2,64], index: 5, kind: output, shape index: {1}]  }
   0x1   :  { %v21_v0 = vld [vmem:[%s294_s0] sm:$0x3] }
   0x2   :  { %v25_v1 = vsel %vm24_vm0, %v21_v0, 0.0 }
   0x3   :  { %12 = vsyncpa [#allocation5], 0  ;;  %26 = vadd.xlane.f32.xlu0 %v25_v1  ;;  %v196_v2 = vmov 128.0   ;;  %v78_v3 = vld [vmem:[%s297_s3 + $0x70] sm:$0xff]  ;;  %v79_v4 = vld [vmem:[%s297_s3 + $0x78] sm:$0xff]  ;;  %s197_s28 = smov [#allocation2]  }
   0x4   :  { %140 = vrcp.f32 %v196_v2  ;;  %v87_v5 = vpack.c.bf16 %v79_v4, %v78_v3  ;;  %v76_v17 = vld [vmem:[%s297_s3 + $0x60] sm:$0xff]  ;;  %v77_v18 = vld [vmem:[%s297_s3 + $0x68] sm:$0xff]  ;;  %v74_v20 = vld [vmem:[%s297_s3 + $0x50] sm:$0xff]  ;;  %s108_s29 = sshll.u32 %s197_s28, 4  ;;  %s110_s7 = sshll.u32 %s298_s4, 4  ;;  %vm101_vm5 = vcmask 517120   ;;  %s109_s29 = int_to_ptr.vmem [resolvable:$true] %s108_s29  ;;  %s111_s7 = int_to_ptr.hbm [resolvable:$true] %s110_s7 }
   0x5   :  { %v86_v19 = vpack.c.bf16 %v77_v18, %v76_v17  ;;  %v75_v21 = vld [vmem:[%s297_s3 + $0x58] sm:$0xff]  ;;  %v72_v23 = vld [vmem:[%s297_s3 + $0x40] sm:$0xff]  ;;  %v73_v24 = vld [vmem:[%s297_s3 + $0x48] sm:$0xff] }
   0x6   :  { %88 = vmatpush.bf16.msra.mxu0 %v87_v5  ;;  %v85_v22 = vpack.c.bf16 %v75_v21, %v74_v20  ;;  %v84_v25 = vpack.c.bf16 %v73_v24, %v72_v23  ;;  %v70_v26 = vld [vmem:[%s297_s3 + $0x30] sm:$0xff]  ;;  %v71_v27 = vld [vmem:[%s297_s3 + $0x38] sm:$0xff]  ;;  %v68_v29 = vld [vmem:[%s297_s3 + $0x20] sm:$0xff] }
   0x7   :  { %v83_v28 = vpack.c.bf16 %v71_v27, %v70_v26  ;;  %v69_v30 = vld [vmem:[%s297_s3 + $0x28] sm:$0xff]  ;;  %v66_v32 = vld [vmem:[%s297_s3 + $0x10] sm:$0xff]  ;;  %v67_v33 = vld [vmem:[%s297_s3 + $0x18] sm:$0xff] }
   0x8   :  { %v82_v31 = vpack.c.bf16 %v69_v30, %v68_v29  ;;  %v81_v34 = vpack.c.bf16 %v67_v33, %v66_v32  ;;  %v64_v35 = vld [vmem:[%s297_s3] sm:$0xff]  ;;  %v65_v36 = vld [vmem:[%s297_s3 + $0x8] sm:$0xff] }
   0x9   :  { %v80_v37 = vpack.c.bf16 %v65_v36, %v64_v35  ;;  %v138_v47 = vld [vmem:[%s295_s1] ss:$0 sm:$0xff]  ;;  %s198_s1 = smov [#allocation4]  }
   0xa   :  { %v141_v6 = vpop.eup %140  ;;  %89 = vmatpush.bf16.msra.mxu0 %v86_v19  ;;  %v139_v50 = vld [vmem:[%s296_s2] ss:$0 sm:$0xff]  ;;  %s119_s8 = sshll.u32 %s198_s1, 4  ;;  %s121_s2 = sshll.u32 %s299_s5, 4  ;;  %s120_s8 = int_to_ptr.vmem [resolvable:$true] %s119_s8  ;;  %s122_s2 = int_to_ptr.hbm [resolvable:$true] %s121_s2 }
   0xb   :  { %v29_v7 = vmul.f32 128.0, %v141_v6  ;;  %vm33_vm1 = vweird.f32 %v141_v6 }
   0xd   :  { %v30_v8 = vsub.f32 1.0, %v29_v7 }
   0xe   :  { %90 = vmatpush.bf16.msra.mxu0 %v85_v22 }
   0xf   :  { %v31_v9 = vmul.f32 %v141_v6, %v30_v8 }
  0x11   :  { %v32_v10 = vadd.f32 %v141_v6, %v31_v9 }
  0x12   :  { %91 = vmatpush.bf16.msra.mxu0 %v84_v25 }
  0x13   :  { %v34_v11 = vsel %vm33_vm1, %v141_v6, %v32_v10 }
  0x16   :  { %92 = vmatpush.bf16.msra.mxu0 %v83_v28 }
  0x1a   :  { %93 = vmatpush.bf16.msra.mxu0 %v82_v31 }
  0x1e   :  { %94 = vmatpush.bf16.msra.mxu0 %v81_v34 }
  0x22   :  { %95 = vmatpush.bf16.msra.mxu0 %v80_v37 }
  0x76   :  { %v27_v12 = vpop.xlane.xlu0 %26 }
  0x77   :  { %v35_v13 = vmul.f32 %v34_v11, %v27_v12 }
  0x79   :  { %v36_v14 = vsub.f32 %v21_v0, %v35_v13 }
  0x7b   :  { %v37_v15 = vmul.f32 %v36_v14, %v36_v14 }
  0x7d   :  { %v38_v16 = vsel %vm24_vm0, %v37_v15, 0.0 }
  0x7e   :  { %39 = vadd.xlane.f32.xlu0 %v38_v16 }
  0xf1   :  { %v40_v38 = vpop.xlane.xlu0 %39 }
  0xf2   :  { %v41_v39 = vmul.f32 %v40_v38, %v34_v11 }
  0xf4   :  { %v42_v40 = vadd.f32 1e-05, %v41_v39 }
  0xf6   :  { %142 = vrsqrt.f32 %v42_v40  ;;  %vm49_vm3 = vweird.f32 %v42_v40 }
  0xfc   :  { %v143_v41 = vpop.eup %142 }
  0xfd   :  { %v44_v42 = vmul.f32 %v143_v41, %v42_v40  ;;  %vm50_vm2 = vweird.f32 %v143_v41 }
  0xfe   :  { %vm51_vm4 = vmor %vm49_vm3, %vm50_vm2 }
  0xff   :  { %v45_v43 = vmul.f32 %v143_v41, %v44_v42 }
 0x101   :  { %v46_v44 = vmul.f32 0.5, %v45_v43 }
 0x103   :  { %v47_v45 = vsub.f32 1.5, %v46_v44 }
 0x105   :  { %v48_v46 = vmul.f32 %v143_v41, %v47_v45 }
 0x107   :  { %v52_v48 = vsel %vm51_vm4, %v143_v41, %v48_v46 }
 0x108   :  { %v53_v49 = vmul.f32 %v52_v48, %v36_v14 }
 0x10a   :  { %v57_v51 = vmul.f32 %v138_v47, %v53_v49 }
 0x10c   :  { %v61_v52 = vadd.f32 %v139_v50, %v57_v51 }
 0x10e   :  { %v63_v53 = vpack.c.bf16 %v61_v52, %v61_v52  ;;  %62 = vst [vmem:[#allocation2] sm:$0x3] %v61_v52 }
 0x10f   :  { %113 = dma.vmem_to_hbm [thread:$0]  %s109_s29, 32, %s111_s7, [#allocation3]  }
 0x110   :  { %96 = vmatmul.bf16.vlgmr.msra.gmra.mxu0 %v63_v53 }
 0x18d   :  { %v97_v54 = vpop.f32.mrf.mxu0 }
 0x18e   :  { %102 = vst.msk [vmem:[#allocation4] sm:$0x3] %vm101_vm5, %v97_v54 }
 0x18f   :  { %124 = dma.vmem_to_hbm [thread:$0]  %s120_s8, 32, %s122_s2, [#allocation5]  }
 0x195   :  { %v99_v55 = vpop.f32.mrf.mxu0 }
 0x196   :  { %192 = dma.done.wait [#allocation3], 32  }
 0x197   :  { %193 = vsyncadd [#allocation3], 4294967264 }
 0x198   :  { %194 = dma.done.wait [#allocation5], 32  }
 0x199   :  { %195 = vsyncadd [#allocation5], 4294967264 }
 0x19a   :  { %133 = vsyncpa [#allocation3], 1 }
 0x19b   :  { %134 = vsyncpa [#allocation5], 1 }

// kernel: clip_encoder_forward.32
= control target key start
LH: loop header
LB: loop body
LE: loop exit
PB: predicated region body
PF: predicated region fallthrough
CT: control target
= control target key end

     0   :  { %s502_s18 = smov 0   ;;  %s685_s0 = inlined_call_operand.vmem [shape: f32[2,8,128], index: 0, kind: input, shape index: {}]   ;;  %s686_s1 = inlined_call_operand.vmem [shape: f32[1,128], index: 1, kind: input, shape index: {}]   ;;  %s687_s2 = inlined_call_operand.vmem [shape: f32[1,128], index: 2, kind: input, shape index: {}]   ;;  %s688_s3 = inlined_call_operand.vmem [shape: f32[128,384], index: 3, kind: input, shape index: {}]   ;;  %s689_s4 = inlined_call_operand.vmem [shape: f32[1,384], index: 4, kind: input, shape index: {}]   ;;  %s690_s5 = inlined_call_operand.vmem [shape: f32[2,8,384], index: 5, kind: output, shape index: {}]  }
   0x1 LB: > { %s438_s19 = sadd.s32 4294967295, %s469_s18   ;;  %p442_p0 = scmp.ge.s32.totalorder %s469_s18, 1  ;;  %s469_s18 = sphi %s502_s18, %s15_s18  }
   0x2   : > { %p186_p1 = scmp.lt.s32.totalorder %s469_s18, 3 }
   0x4   : > { %p187_p2 = pnand %p442_p0, %p186_p1 }
   0x5   : > { %p213_p3 = scmp.lt.s32.totalorder (!%p187_p2), %s438_s19, 1 }
   0x6   : > { %190 = sbr.rel (%p187_p2) target bundleno = 424 (0x1a8), region = 40 }
   0xb   : > { %s692_s19 = smov (!%p213_p3, %s438_s19), 1  ;;  %v471_v1 = vmov 128.0   ;;  %v303_v2 = vld [vmem:[%s688_s3 + $0x150] sm:$0xff]  ;;  %v306_v3 = vld [vmem:[%s688_s3 + $0x168] sm:$0xff]  ;;  %v304_v4 = vld [vmem:[%s688_s3 + $0x158] sm:$0xff] }
   0xc   : > { %s443_s20 = sshll.u32 %s692_s19, 3  ;;  %459 = vrcp.f32 %v471_v1  ;;  %v330_v5 = vpack.c.bf16 %v306_v3, %v303_v2  ;;  %v307_v6 = vld [vmem:[%s688_s3 + $0x170] sm:$0xff]  ;;  %v305_v7 = vld [vmem:[%s688_s3 + $0x160] sm:$0xff]  ;;  %v308_v8 = vld [vmem:[%s688_s3 + $0x178] sm:$0xff]  ;;  %s447_s9 = smul.u32 24, %s692_s19 }
   0xd   : > { %s216_s23 = scalar_lea.vmem %s685_s0, %s443_s20  ;;  %v331_v9 = vpack.c.bf16 %v307_v6, %v304_v4  ;;  %v332_v10 = vpack.c.bf16 %v308_v8, %v305_v7  ;;  %v297_v21 = vld [vmem:[%s688_s3 + $0x120] sm:$0xff]  ;;  %v300_v22 = vld [vmem:[%s688_s3 + $0x138] sm:$0xff]  ;;  %v298_v23 = vld [vmem:[%s688_s3 + $0x128] sm:$0xff] }
   0xe   : > { %v222_v0 = vld [vmem:[%s216_s23] sm:$0xff]  ;;  %341 = vmatpush.bf16.msra.mxu0 %v330_v5  ;;  %v327_v24 = vpack.c.bf16 %v300_v22, %v297_v21  ;;  %v299_v26 = vld [vmem:[%s688_s3 + $0x130] sm:$0xff]  ;;  %v302_v27 = vld [vmem:[%s688_s3 + $0x148] sm:$0xff]  ;;  %s221_s12 = scalar_lea.vmem %s690_s5, %s447_s9 }
   0xf   : > { %225 = vadd.xlane.f32.xlu0 %v222_v0  ;;  %354 = vmatpush.bf16.msra.mxu1 %v331_v9  ;;  %v301_v25 = vld [vmem:[%s688_s3 + $0x140] sm:$0xff]  ;;  %v329_v29 = vpack.c.bf16 %v302_v27, %v299_v26  ;;  %v291_v30 = vld [vmem:[%s688_s3 + $0xf0] sm:$0xff]  ;;  %v294_v31 = vld [vmem:[%s688_s3 + $0x108] sm:$0xff] }
  0x10   : > { %367 = vmatpush.bf16.msra.mxu2 %v332_v10  ;;  %v328_v28 = vpack.c.bf16 %v301_v25, %v298_v23  ;;  %v292_v32 = vld [vmem:[%s688_s3 + $0xf8] sm:$0xff]  ;;  %v324_v33 = vpack.c.bf16 %v294_v31, %v291_v30  ;;  %v295_v34 = vld [vmem:[%s688_s3 + $0x110] sm:$0xff]  ;;  %v293_v35 = vld [vmem:[%s688_s3 + $0x100] sm:$0xff] }
  0x11   : > { %v296_v36 = vld [vmem:[%s688_s3 + $0x118] sm:$0xff]  ;;  %v325_v37 = vpack.c.bf16 %v295_v34, %v292_v32  ;;  %v285_v39 = vld [vmem:[%s688_s3 + $0xc0] sm:$0xff]  ;;  %v286_v41 = vld [vmem:[%s688_s3 + $0xc8] sm:$0xff] }
  0x12   : > { %v460_v11 = vpop.eup %459  ;;  %342 = vmatpush.bf16.msra.mxu0 %v327_v24  ;;  %v326_v38 = vpack.c.bf16 %v296_v36, %v293_v35  ;;  %v288_v40 = vld [vmem:[%s688_s3 + $0xd8] sm:$0xff]  ;;  %v289_v43 = vld [vmem:[%s688_s3 + $0xe0] sm:$0xff]  ;;  %v287_v44 = vld [vmem:[%s688_s3 + $0xd0] sm:$0xff] }
  0x13   : > { %v228_v12 = vmul.f32 128.0, %v460_v11  ;;  %vm232_vm0 = vweird.f32 %v460_v11  ;;  %355 = vmatpush.bf16.msra.mxu1 %v328_v28  ;;  %v321_v42 = vpack.c.bf16 %v288_v40, %v285_v39  ;;  %v290_v45 = vld [vmem:[%s688_s3 + $0xe8] sm:$0xff]  ;;  %v322_v46 = vpack.c.bf16 %v289_v43, %v286_v41  ;;  %v279_v48 = vld [vmem:[%s688_s3 + $0x90] sm:$0xff]  ;;  %v280_v50 = vld [vmem:[%s688_s3 + $0x98] sm:$0xff] }
  0x14   : > { %368 = vmatpush.bf16.msra.mxu2 %v329_v29  ;;  %v323_v47 = vpack.c.bf16 %v290_v45, %v287_v44  ;;  %v282_v49 = vld [vmem:[%s688_s3 + $0xa8] sm:$0xff]  ;;  %v283_v52 = vld [vmem:[%s688_s3 + $0xb0] sm:$0xff]  ;;  %v281_v53 = vld [vmem:[%s688_s3 + $0xa0] sm:$0xff] }
  0x15   : > { %v229_v13 = vsub.f32 1.0, %v228_v12  ;;  %v318_v51 = vpack.c.bf16 %v282_v49, %v279_v48  ;;  %v284_v54 = vld [vmem:[%s688_s3 + $0xb8] sm:$0xff]  ;;  %v319_v55 = vpack.c.bf16 %v283_v52, %v280_v50  ;;  %v273_v57 = vld [vmem:[%s688_s3 + $0x60] sm:$0xff]  ;;  %v274_v59 = vld [vmem:[%s688_s3 + $0x68] sm:$0xff] }
  0x16   : > { %343 = vmatpush.bf16.msra.mxu0 %v324_v33  ;;  %v320_v56 = vpack.c.bf16 %v284_v54, %v281_v53  ;;  %v276_v58 = vld [vmem:[%s688_s3 + $0x78] sm:$0xff]  ;;  %v277_v61 = vld [vmem:[%s688_s3 + $0x80] sm:$0xff]  ;;  %v275_v62 = vld [vmem:[%s688_s3 + $0x70] sm:$0xff] }
  0x17   : > { %v230_v14 = vmul.f32 %v460_v11, %v229_v13  ;;  %356 = vmatpush.bf16.msra.mxu1 %v325_v37  ;;  %v315_v60 = vpack.c.bf16 %v276_v58, %v273_v57  ;;  %v278_v63 = vld [vmem:[%s688_s3 + $0x88] sm:$0xff]  ;;  %v267_v2 = vld [vmem:[%s688_s3 + $0x30] sm:$0xff]  ;;  %v268_v4 = vld [vmem:[%s688_s3 + $0x38] sm:$0xff] }
  0x18   : > { %369 = vmatpush.bf16.msra.mxu2 %v326_v38  ;;  %v317_v1 = vpack.c.bf16 %v278_v63, %v275_v62  ;;  %v270_v3 = vld [vmem:[%s688_s3 + $0x48] sm:$0xff]  ;;  %v271_v6 = vld [vmem:[%s688_s3 + $0x50] sm:$0xff]  ;;  %v269_v7 = vld [vmem:[%s688_s3 + $0x40] sm:$0xff] }
  0x19   : > { %v231_v15 = vadd.f32 %v460_v11, %v230_v14  ;;  %v312_v5 = vpack.c.bf16 %v270_v3, %v267_v2  ;;  %v272_v8 = vld [vmem:[%s688_s3 + $0x58] sm:$0xff]  ;;  %v313_v9 = vpack.c.bf16 %v271_v6, %v268_v4  ;;  %v262_v13 = vld [vmem:[%s688_s3 + $0x8] sm:$0xff]  ;;  %v457_v31 = vld [vmem:[%s686_s1] ss:$0 sm:$0xff] }
  0x1a   : > { %344 = vmatpush.bf16.msra.mxu0 %v321_v42  ;;  %v314_v10 = vpack.c.bf16 %v272_v8, %v269_v7  ;;  %v264_v12 = vld [vmem:[%s688_s3 + $0x18] sm:$0xff]  ;;  %v333_v37 = vld [vmem:[%s689_s4] sm:$0x7] }
  0x1b   : > { %v534_v16 = vsel %vm232_vm0, %v460_v11, %v231_v15  ;;  %357 = vmatpush.bf16.msra.mxu1 %v322_v46  ;;  %v261_v11 = vld [vmem:[%s688_s3] sm:$0xff]  ;;  %v335_v38 = vperm.slane %v333_v37, 0  ;;  %v336_v39 = vperm.slane %v333_v37, 1  ;;  %v337_v43 = vperm.slane %v333_v37, 2 }
  0x1c   : > { %370 = vmatpush.bf16.msra.mxu2 %v323_v47  ;;  %v309_v14 = vpack.c.bf16 %v264_v12, %v261_v11  ;;  %v265_v15 = vld [vmem:[%s688_s3 + $0x20] sm:$0xff] }
  0x1e   : > { %345 = vmatpush.bf16.msra.mxu0 %v318_v51 }
  0x1f   : > { %358 = vmatpush.bf16.msra.mxu1 %v319_v55 }
  0x20   : > { %371 = vmatpush.bf16.msra.mxu2 %v320_v56 }
  0x22   : > { %346 = vmatpush.bf16.msra.mxu0 %v315_v60 }
  0x24   : > { %372 = vmatpush.bf16.msra.mxu2 %v317_v1 }
  0x26   : > { %347 = vmatpush.bf16.msra.mxu0 %v312_v5 }
  0x28   : > { %373 = vmatpush.bf16.msra.mxu2 %v314_v10 }
  0x2a   : > { %348 = vmatpush.bf16.msra.mxu0 %v309_v14 }
  0x82   : > { %v226_v17 = vpop.xlane.xlu0 %225 }
  0x83   : > { %v234_v18 = vmul.f32 %v534_v16, %v226_v17  ;;  %v263_v17 = vld [vmem:[%s688_s3 + $0x10] sm:$0xff] }
  0x85   : > { %v537_v19 = vsub.f32 %v222_v0, %v234_v18  ;;  %v316_v0 = vpack.c.bf16 %v277_v61, %v274_v59  ;;  %v266_v18 = vld [vmem:[%s688_s3 + $0x28] sm:$0xff] }
  0x86   : > { %v311_v21 = vpack.c.bf16 %v266_v18, %v263_v17 }
  0x87   : > { %v236_v20 = vmul.f32 %v537_v19, %v537_v19  ;;  %359 = vmatpush.bf16.msra.mxu1 %v316_v0 }
  0x88   : > { %374 = vmatpush.bf16.msra.mxu2 %v311_v21 }
  0x89   : > { %237 = vadd.xlane.f32.xlu0 %v236_v20  ;;  %v310_v20 = vpack.c.bf16 %v265_v15, %v262_v13 }
  0x8b   : > { %360 = vmatpush.bf16.msra.mxu1 %v313_v9 }
  0x8f   : > { %361 = vmatpush.bf16.msra.mxu1 %v310_v20 }
  0xfc   : > { %v238_v22 = vpop.xlane.xlu0 %237 }
  0xfd   : > { %v239_v23 = vmul.f32 %v238_v22, %v534_v16  ;;  %v458_v16 = vld [vmem:[%s687_s2] ss:$0 sm:$0xff] }
  0xff   : > { %v240_v24 = vadd.f32 1e-05, %v239_v23 }
 0x101   : > { %461 = vrsqrt.f32 %v240_v24  ;;  %vm247_vm2 = vweird.f32 %v240_v24 }
 0x107   : > { %v462_v25 = vpop.eup %461 }
 0x108   : > { %v242_v26 = vmul.f32 %v462_v25, %v240_v24  ;;  %vm248_vm1 = vweird.f32 %v462_v25 }
 0x109   : > { %vm249_vm3 = vmor %vm247_vm2, %vm248_vm1 }
 0x10a   : > { %v243_v27 = vmul.f32 %v462_v25, %v242_v26 }
 0x10c   : > { %v244_v28 = vmul.f32 0.5, %v243_v27 }
 0x10e   : > { %v245_v29 = vsub.f32 1.5, %v244_v28 }
 0x110   : > { %v246_v30 = vmul.f32 %v462_v25, %v245_v29 }
 0x112   : > { %v250_v32 = vsel %vm249_vm3, %v462_v25, %v246_v30 }
 0x113   : > { %v251_v33 = vmul.f32 %v250_v32, %v537_v19 }
 0x115   : > { %v255_v34 = vmul.f32 %v457_v31, %v251_v33 }
 0x117   : > { %v259_v35 = vadd.f32 %v458_v16, %v255_v34 }
 0x119   : > { %v260_v36 = vpack.c.bf16 %v259_v35, %v259_v35 }
 0x11b   : > { %349 = vmatmul.bf16.vlgmr.msra.gmra.mxu0 %v260_v36  ;;  %362 = vmatmul.bf16.vlgmr.msra.gmra.mxu1 %v260_v36 }
 0x11c   : > { %375 = vmatmul.bf16.vlgmr.msra.gmra.mxu2 %v260_v36 }
 0x198   : > { %v350_v19 = vpop.f32.mrf.mxu0  ;;  %v363_v40 = vpop.f32.mrf.mxu1 }
 0x199   : > { %v351_v41 = vadd.f32 %v350_v19, %v335_v38  ;;  %v364_v42 = vadd.f32 %v363_v40, %v336_v39 }
 0x19b   : > { %380 = vst [vmem:[%s221_s12] sm:$0xff] %v351_v41 }
 0x19c   : > { %381 = vst [vmem:[%s221_s12 + $0x8] sm:$0xff] %v364_v42 }
 0x19f   : > { %v376_v44 = vpop.f32.mrf.mxu2 }
 0x1a0   : > { %v377_v45 = vadd.f32 %v376_v44, %v337_v43  ;;  %v352_v46 = vpop.f32.mrf.mxu0  ;;  %v365_v47 = vpop.f32.mrf.mxu1 }
 0x1a2   : > { %382 = vst [vmem:[%s221_s12 + $0x10] sm:$0xff] %v377_v45 }
 0x1a7   : > { %v378_v48 = vpop.f32.mrf.mxu2 }
 0x1a8 PF: > { %s15_s18 = sadd.s32 1, %s469_s18  }
 0x1a9   : > { %p12_p4 = scmp.ge.s32.totalorder %s15_s18, 4  }
 0x1ab   :  { %14 = sbr.rel (!%p12_p4) target bundleno = 1 (0x1), region = 70 }

// kernel: clip_encoder_forward.33
= control target key start
LH: loop header
LB: loop body
LE: loop exit
PB: predicated region body
PF: predicated region fallthrough
CT: control target
= control target key end

     0   :  { %s610_s12 = smov 0   ;;  %s667_s0 = inlined_call_operand.vmem [shape: f32[2,4,8,32], index: 0, kind: input, shape index: {}]   ;;  %s668_s1 = inlined_call_operand.vmem [shape: f32[2,4,8,32], index: 1, kind: input, shape index: {}]   ;;  %s669_s2 = inlined_call_operand.vmem [shape: f32[2,4,8,32], index: 2, kind: input, shape index: {}]   ;;  %s670_s3 = inlined_call_operand.vmem [shape: f32[2,4,8,32], index: 3, kind: output, shape index: {}]  }
   0x1 LB: > { %s531_s13 = sadd.s32 4294967295, %s588_s12   ;;  %p535_p0 = scmp.ge.s32.totalorder %s588_s12, 1  ;;  %s588_s12 = sphi %s610_s12, %s13_s12  }
   0x2   : > { %p157_p1 = scmp.lt.s32.totalorder %s588_s12, 3 }
   0x4   : > { %p158_p2 = pnand %p535_p0, %p157_p1 }
   0x5   : > { %p191_p3 = scmp.lt.s32.totalorder (!%p158_p2), %s531_s13, 1 }
   0x6   : > { %161 = sbr.rel (%p158_p2) target bundleno = 562 (0x232), region = 32 }
   0xb   : > { %s672_s13 = smov (!%p191_p3, %s531_s13), 1  ;;  %vm236_vm0 = vcmask 261120   ;;  %v313_v20 = vlaneseq  ;;  %vm322_vm2 = vcmask 64512   ;;  %vm374_vm3 = vcmask 1043456  }
   0xc   : > { %s618_s14 = sshll.u32 %s672_s13, 5 }
   0xd   : > { %s200_s17 = scalar_lea.vmem %s668_s1, %s618_s14  ;;  %s195_s20 = scalar_lea.vmem %s667_s0, %s618_s14  ;;  %v314_v21 = vshrl.u32 %v313_v20, 7  ;;  %v316_v22 = vand.u32 127, %v313_v20 }
   0xe   : > { %v220_v0 = vld [vmem:[%s200_s17] sm:$0xff]  ;;  %v222_v1 = vld [vmem:[%s200_s17 + $0x10] sm:$0xff]  ;;  %v223_v2 = vld [vmem:[%s200_s17 + $0x18] sm:$0xff]  ;;  %s205_s23 = scalar_lea.vmem %s669_s2, %s618_s14  ;;  %s210_s26 = scalar_lea.vmem %s670_s3, %s618_s14 }
   0xf   : > { %v224_v3 = vpack.c.bf16 %v220_v0, %v220_v0  ;;  %v226_v4 = vpack.c.bf16 %v222_v1, %v222_v1  ;;  %v227_v5 = vpack.c.bf16 %v223_v2, %v223_v2  ;;  %v221_v6 = vld [vmem:[%s200_s17 + $0x8] sm:$0xff]  ;;  %v212_v11 = vld [vmem:[%s195_s20] sm:$0xff]  ;;  %v214_v12 = vld [vmem:[%s195_s20 + $0x10] sm:$0xff]  ;;  %vm317_vm1 = vcmp.le.s32.totalorder %v316_v22, %v314_v21 }
  0x10   : > { %v225_v10 = vpack.c.bf16 %v221_v6, %v221_v6  ;;  %v215_v13 = vld [vmem:[%s195_s20 + $0x18] sm:$0xff]  ;;  %v213_v15 = vld [vmem:[%s195_s20 + $0x8] sm:$0xff]  ;;  %v216_v16 = vpack.c.bf16 %v212_v11, %v212_v11  ;;  %v218_v17 = vpack.c.bf16 %v214_v12, %v214_v12  ;;  %v228_v59 = vld [vmem:[%s205_s23] sm:$0xff] }
  0x11   : > { %v241_v7 = vsel %vm236_vm0, %v224_v3, 0  ;;  %v279_v8 = vsel %vm236_vm0, %v226_v4, 0  ;;  %v298_v9 = vsel %vm236_vm0, %v227_v5, 0  ;;  %v219_v18 = vpack.c.bf16 %v215_v13, %v215_v13  ;;  %v230_v62 = vld [vmem:[%s205_s23 + $0x10] sm:$0xff]  ;;  %v229_v0 = vld [vmem:[%s205_s23 + $0x8] sm:$0xff]  ;;  %v231_v4 = vld [vmem:[%s205_s23 + $0x18] sm:$0xff] }
  0x12   : > { %250 = vmatpush.bf16.xpose.msra.mxu0 %v241_v7  ;;  %288 = vmatpush.bf16.xpose.msra.mxu2 %v279_v8  ;;  %v260_v14 = vsel %vm236_vm0, %v225_v10, 0  ;;  %v217_v19 = vpack.c.bf16 %v213_v15, %v213_v15  ;;  %v232_v60 = vpack.c.bf16 %v228_v59, %v228_v59  ;;  %v234_v63 = vpack.c.bf16 %v230_v62, %v230_v62 }
  0x13   : > { %307 = vmatpush.bf16.xpose.msra.mxu3 %v298_v9  ;;  %269 = vmatpush.bf16.xpose.msra.mxu1 %v260_v14  ;;  %v233_v2 = vpack.c.bf16 %v229_v0, %v229_v0  ;;  %v235_v5 = vpack.c.bf16 %v231_v4, %v231_v4 }
  0x14   : > { %v376_v61 = vsel %vm374_vm3, %v232_v60, 0  ;;  %v414_v1 = vsel %vm374_vm3, %v234_v63, 0 }
  0x15   : > { %v395_v3 = vsel %vm374_vm3, %v233_v2, 0  ;;  %v433_v6 = vsel %vm374_vm3, %v235_v5, 0 }
  0x19   : > { %544 = vmatmul.msk.bf16.vlgmr.msra.gmra.mxu0 %vm236_vm0, %v216_v16  ;;  %546 = vmatmul.msk.bf16.vlgmr.msra.gmra.mxu2 %vm236_vm0, %v218_v17 }
  0x1a   : > { %547 = vmatmul.msk.bf16.vlgmr.msra.gmra.mxu3 %vm236_vm0, %v219_v18  ;;  %545 = vmatmul.msk.bf16.vlgmr.msra.gmra.mxu1 %vm236_vm0, %v217_v19 }
  0x1b   : > { %385 = vmatpush.bf16.msrb.mxu0 %v376_v61  ;;  %423 = vmatpush.bf16.msrb.mxu2 %v414_v1 }
  0x1c   : > { %404 = vmatpush.bf16.msrb.mxu1 %v395_v3  ;;  %442 = vmatpush.bf16.msrb.mxu3 %v433_v6 }
  0x96   : > { %v252_v23 = vpop.f32.mrf.mxu0 }
  0x97   : > { %v318_v24 = vsel %vm317_vm1, %v252_v23, -1e+09  ;;  %v271_v26 = vpop.f32.mrf.mxu1 }
  0x98   : > { %v323_v25 = vsel %vm322_vm2, %v318_v24, -inf  ;;  %v319_v27 = vsel %vm317_vm1, %v271_v26, -1e+09 }
  0x99   : > { %324 = vmax.xlane.f32.xlu1 %v323_v25  ;;  %v326_v32 = vsel %vm322_vm2, %v319_v27, -inf }
  0x9c   : > { %v290_v28 = vpop.f32.mrf.mxu2 }
  0x9d   : > { %v320_v29 = vsel %vm317_vm1, %v290_v28, -1e+09  ;;  %v309_v30 = vpop.f32.mrf.mxu3 }
  0x9e   : > { %v329_v31 = vsel %vm322_vm2, %v320_v29, -inf  ;;  %v254_v33 = vpop.f32.mrf.mxu0  ;;  %v321_v35 = vsel %vm317_vm1, %v309_v30, -1e+09 }
  0x9f   : > { %330 = vmax.xlane.f32.xlu0 %v329_v31  ;;  %v273_v34 = vpop.f32.mrf.mxu1  ;;  %v332_v37 = vsel %vm322_vm2, %v321_v35, -inf }
  0xa1   : > { %327 = vmax.xlane.f32.xlu1 %v326_v32 }
  0xa4   : > { %v292_v36 = vpop.f32.mrf.mxu2 }
  0xa5   : > { %v311_v38 = vpop.f32.mrf.mxu3 }
  0xa7   : > { %333 = vmax.xlane.f32.xlu0 %v332_v37 }
 0x10c   : > { %v325_v39 = vpop.xlane.xlu1 %324 }
 0x10d   : > { %v335_v40 = vsub.f32 %v318_v24, %v325_v39 }
 0x10f   : > { %v339_v41 = vmul.f32 1.442695, %v335_v40 }
 0x111   : > { %566 = vpow2.f32 %v339_v41 }
 0x112   : > { %v331_v42 = vpop.xlane.xlu0 %330 }
 0x113   : > { %v337_v43 = vsub.f32 %v320_v29, %v331_v42 }
 0x114   : > { %v328_v44 = vpop.xlane.xlu1 %327 }
 0x115   : > { %v343_v45 = vmul.f32 1.442695, %v337_v43  ;;  %v336_v46 = vsub.f32 %v319_v27, %v328_v44 }
 0x117   : > { %v567_v47 = vpop.eup %566  ;;  %568 = vpow2.f32 %v343_v45  ;;  %v341_v48 = vmul.f32 1.442695, %v336_v46 }
 0x118   : > { %v347_v49 = vsel %vm322_vm2, %v567_v47, 0.0 }
 0x119   : > { %570 = vpow2.f32 %v341_v48  ;;  %348 = vadd.xlane.f32.xlu0 %v347_v49 }
 0x11a   : > { %v334_v50 = vpop.xlane.xlu0 %333 }
 0x11b   : > { %v338_v51 = vsub.f32 %v321_v35, %v334_v50 }
 0x11d   : > { %v569_v52 = vpop.eup %568  ;;  %v345_v53 = vmul.f32 1.442695, %v338_v51 }
 0x11e   : > { %v353_v54 = vsel %vm322_vm2, %v569_v52, 0.0 }
 0x11f   : > { %v571_v55 = vpop.eup %570  ;;  %572 = vpow2.f32 %v345_v53  ;;  %354 = vadd.xlane.f32.xlu2 %v353_v54 }
 0x120   : > { %v350_v56 = vsel %vm322_vm2, %v571_v55, 0.0 }
 0x121   : > { %351 = vadd.xlane.f32.xlu1 %v350_v56 }
 0x125   : > { %v573_v57 = vpop.eup %572 }
 0x126   : > { %v356_v58 = vsel %vm322_vm2, %v573_v57, 0.0 }
 0x127   : > { %357 = vadd.xlane.f32.xlu2 %v356_v58 }
 0x18c   : > { %v349_v7 = vpop.xlane.xlu0 %348 }
 0x18d   : > { %574 = vrcp.f32 %v349_v7 }
 0x192   : > { %v355_v8 = vpop.xlane.xlu2 %354 }
 0x193   : > { %v575_v9 = vpop.eup %574  ;;  %576 = vrcp.f32 %v355_v8 }
 0x194   : > { %v363_v10 = vmul.f32 %v575_v9, %v567_v47  ;;  %v352_v11 = vpop.xlane.xlu1 %351 }
 0x195   : > { %578 = vrcp.f32 %v352_v11 }
 0x196   : > { %v367_v12 = vpack.c.bf16 %v363_v10, %v363_v10 }
 0x198   : > { %548 = vmatmul.msk.bf16.vlgmr.msrb.gmra.mxu0 %vm322_vm2, %v367_v12 }
 0x199   : > { %v577_v13 = vpop.eup %576 }
 0x19a   : > { %v365_v14 = vmul.f32 %v577_v13, %v569_v52  ;;  %v358_v15 = vpop.xlane.xlu2 %357 }
 0x19b   : > { %v579_v16 = vpop.eup %578  ;;  %580 = vrcp.f32 %v358_v15 }
 0x19c   : > { %v364_v17 = vmul.f32 %v579_v16, %v571_v55  ;;  %v369_v18 = vpack.c.bf16 %v365_v14, %v365_v14 }
 0x19e   : > { %v368_v19 = vpack.c.bf16 %v364_v17, %v364_v17  ;;  %550 = vmatmul.msk.bf16.vlgmr.msrb.gmra.mxu2 %vm322_vm2, %v369_v18 }
 0x1a0   : > { %549 = vmatmul.msk.bf16.vlgmr.msrb.gmra.mxu1 %vm322_vm2, %v368_v19 }
 0x1a1   : > { %v581_v20 = vpop.eup %580 }
 0x1a2   : > { %v366_v21 = vmul.f32 %v581_v20, %v573_v57 }
 0x1a4   : > { %v370_v22 = vpack.c.bf16 %v366_v21, %v366_v21 }
 0x1a6   : > { %551 = vmatmul.msk.bf16.vlgmr.msrb.gmra.mxu3 %vm322_vm2, %v370_v22 }
 0x215   : > { %v387_v23 = vpop.f32.mrf.mxu0 }
 0x216   : > { %448 = vst.msk [vmem:[%s210_s26] sm:$0xff] %vm236_vm0, %v387_v23 }
 0x21d   : > { %v389_v24 = vpop.f32.mrf.mxu0  ;;  %v406_v25 = vpop.f32.mrf.mxu1 }
 0x21e   : > { %449 = vst.msk [vmem:[%s210_s26 + $0x8] sm:$0xff] %vm236_vm0, %v406_v25 }
 0x221   : > { %v425_v26 = vpop.f32.mrf.mxu2 }
 0x222   : > { %450 = vst.msk [vmem:[%s210_s26 + $0x10] sm:$0xff] %vm236_vm0, %v425_v26 }
 0x225   : > { %v408_v27 = vpop.f32.mrf.mxu1 }
 0x229   : > { %v427_v28 = vpop.f32.mrf.mxu2  ;;  %v444_v29 = vpop.f32.mrf.mxu3 }
 0x22a   : > { %451 = vst.msk [vmem:[%s210_s26 + $0x18] sm:$0xff] %vm236_vm0, %v444_v29 }
 0x231   : > { %v446_v30 = vpop.f32.mrf.mxu3 }
 0x232 PF: > { %s13_s12 = sadd.s32 1, %s588_s12  }
 0x233   : > { %p10_p4 = scmp.ge.s32.totalorder %s13_s12, 4  }
 0x235   :  { %12 = sbr.rel (!%p10_p4) target bundleno = 1 (0x1), region = 68 }

// kernel: clip_encoder_forward.34
= control target key start
LH: loop header
LB: loop body
LE: loop exit
PB: predicated region body
PF: predicated region fallthrough
CT: control target
= control target key end

     0   :  { %s373_s15 = smov 0   ;;  %s444_s0 = inlined_call_operand.vmem [shape: f32[2,8,128], index: 0, kind: input, shape index: {}]   ;;  %s445_s1 = inlined_call_operand.vmem [shape: f32[2,8,128], index: 1, kind: input, shape index: {}]   ;;  %s446_s2 = inlined_call_operand.vmem [shape: f32[128,128], index: 2, kind: input, shape index: {}]   ;;  %s447_s3 = inlined_call_operand.vmem [shape: f32[1,128], index: 3, kind: input, shape index: {}]   ;;  %s448_s4 = inlined_call_operand.vmem [shape: f32[2,8,128], index: 4, kind: output, shape index: {}]  }
   0x1 LB: > { %s321_s16 = sadd.s32 4294967295, %s346_s15   ;;  %p325_p0 = scmp.ge.s32.totalorder %s346_s15, 1  ;;  %s346_s15 = sphi %s373_s15, %s14_s15  }
   0x2   : > { %p170_p1 = scmp.lt.s32.totalorder %s346_s15, 3 }
   0x4   : > { %p171_p2 = pnand %p325_p0, %p170_p1 }
   0x5   : > { %p198_p3 = scmp.lt.s32.totalorder (!%p171_p2), %s321_s16, 1 }
   0x6   : > { %174 = sbr.rel (%p171_p2) target bundleno = 179 (0xb3), region = 36 }
   0xb   : > { %v226_v0 = vld [vmem:[%s446_s2 + $0x70] sm:$0xff]  ;;  %v227_v1 = vld [vmem:[%s446_s2 + $0x78] sm:$0xff]  ;;  %v224_v2 = vld [vmem:[%s446_s2 + $0x60] sm:$0xff]  ;;  %s450_s16 = smov (!%p198_p3, %s321_s16), 1 }
   0xc   : > { %v235_v3 = vpack.c.bf16 %v227_v1, %v226_v0  ;;  %v225_v4 = vld [vmem:[%s446_s2 + $0x68] sm:$0xff]  ;;  %v222_v6 = vld [vmem:[%s446_s2 + $0x50] sm:$0xff]  ;;  %v223_v7 = vld [vmem:[%s446_s2 + $0x58] sm:$0xff]  ;;  %s326_s21 = sshll.u32 %s450_s16, 3 }
   0xd   : > { %v234_v5 = vpack.c.bf16 %v225_v4, %v224_v2  ;;  %v233_v8 = vpack.c.bf16 %v223_v7, %v222_v6  ;;  %v220_v9 = vld [vmem:[%s446_s2 + $0x40] sm:$0xff]  ;;  %v221_v10 = vld [vmem:[%s446_s2 + $0x48] sm:$0xff]  ;;  %v218_v12 = vld [vmem:[%s446_s2 + $0x30] sm:$0xff]  ;;  %s201_s28 = scalar_lea.vmem %s444_s0, %s326_s21  ;;  %s205_s30 = scalar_lea.vmem %s445_s1, %s326_s21 }
   0xe   : > { %240 = vmatpush.bf16.msra.mxu0 %v235_v3  ;;  %v232_v11 = vpack.c.bf16 %v221_v10, %v220_v9  ;;  %v219_v13 = vld [vmem:[%s446_s2 + $0x38] sm:$0xff]  ;;  %v216_v15 = vld [vmem:[%s446_s2 + $0x20] sm:$0xff]  ;;  %v217_v16 = vld [vmem:[%s446_s2 + $0x28] sm:$0xff]  ;;  %s209_s9 = scalar_lea.vmem %s448_s4, %s326_s21 }
   0xf   : > { %v231_v14 = vpack.c.bf16 %v219_v13, %v218_v12  ;;  %v230_v17 = vpack.c.bf16 %v217_v16, %v216_v15  ;;  %v214_v18 = vld [vmem:[%s446_s2 + $0x10] sm:$0xff]  ;;  %v215_v19 = vld [vmem:[%s446_s2 + $0x18] sm:$0xff]  ;;  %v212_v21 = vld [vmem:[%s446_s2] sm:$0xff] }
  0x10   : > { %v229_v20 = vpack.c.bf16 %v215_v19, %v214_v18  ;;  %v213_v22 = vld [vmem:[%s446_s2 + $0x8] sm:$0xff]  ;;  %v210_v24 = vld [vmem:[%s201_s28] sm:$0xff] }
  0x11   : > { %v228_v23 = vpack.c.bf16 %v213_v22, %v212_v21  ;;  %v211_v25 = vpack.c.bf16 %v210_v24, %v210_v24  ;;  %v339_v26 = vld [vmem:[%s447_s3] ss:$0 sm:$0xff] }
  0x12   : > { %241 = vmatpush.bf16.msra.mxu0 %v234_v5  ;;  %v253_v28 = vld [vmem:[%s205_s30] sm:$0xff] }
  0x16   : > { %242 = vmatpush.bf16.msra.mxu0 %v233_v8 }
  0x1a   : > { %243 = vmatpush.bf16.msra.mxu0 %v232_v11 }
  0x1e   : > { %244 = vmatpush.bf16.msra.mxu0 %v231_v14 }
  0x22   : > { %245 = vmatpush.bf16.msra.mxu0 %v230_v17 }
  0x26   : > { %246 = vmatpush.bf16.msra.mxu0 %v229_v20 }
  0x2a   : > { %247 = vmatpush.bf16.msra.mxu0 %v228_v23 }
  0x2d   : > { %248 = vmatmul.bf16.vlgmr.msra.gmra.mxu0 %v211_v25 }
  0xaa   : > { %v249_v27 = vpop.f32.mrf.mxu0 }
  0xab   : > { %v250_v29 = vadd.f32 %v339_v26, %v249_v27 }
  0xad   : > { %v254_v30 = vadd.f32 %v253_v28, %v250_v29 }
  0xaf   : > { %255 = vst [vmem:[%s209_s9] sm:$0xff] %v254_v30 }
  0xb2   : > { %v251_v31 = vpop.f32.mrf.mxu0 }
  0xb3 PF: > { %s14_s15 = sadd.s32 1, %s346_s15  }
  0xb4   : > { %p11_p4 = scmp.ge.s32.totalorder %s14_s15, 4  }
  0xb6   :  { %13 = sbr.rel (!%p11_p4) target bundleno = 1 (0x1), region = 69 }

// kernel: clip_encoder_forward.35
= control target key start
LH: loop header
LB: loop body
LE: loop exit
PB: predicated region body
PF: predicated region fallthrough
CT: control target
= control target key end

     0   :  { %s654_s24 = smov 0   ;;  %s896_s0 = inlined_call_operand.vmem [shape: f32[2,8,128], index: 0, kind: input, shape index: {}]   ;;  %s897_s1 = inlined_call_operand.vmem [shape: f32[1,128], index: 1, kind: input, shape index: {}]   ;;  %s898_s2 = inlined_call_operand.vmem [shape: f32[1,128], index: 2, kind: input, shape index: {}]   ;;  %s899_s3 = inlined_call_operand.vmem [shape: f32[128,256], index: 3, kind: input, shape index: {}]   ;;  %s900_s4 = inlined_call_operand.vmem [shape: f32[1,256], index: 4, kind: input, shape index: {}]   ;;  %s901_s5 = inlined_call_operand.vmem [shape: f32[256,128], index: 5, kind: input, shape index: {}]   ;;  %s902_s6 = inlined_call_operand.vmem [shape: f32[1,128], index: 6, kind: input, shape index: {}]   ;;  %s903_s7 = inlined_call_operand.vmem [shape: f32[2,8,128], index: 7, kind: output, shape index: {}]  }
   0x1 LB: > { %s570_s25 = sadd.s32 4294967295, %s611_s24   ;;  %p574_p0 = scmp.ge.s32.totalorder %s611_s24, 1  ;;  %s611_s24 = sphi %s654_s24, %s17_s24  }
   0x2   : > { %p236_p1 = scmp.lt.s32.totalorder %s611_s24, 3 }
   0x4   : > { %p237_p2 = pnand %p574_p0, %p236_p1 }
   0x5   : > { %p266_p3 = scmp.lt.s32.totalorder (!%p237_p2), %s570_s25, 1 }
   0x6   : > { %240 = sbr.rel (%p237_p2) target bundleno = 586 (0x24a), region = 48 }
   0xb   : > { %s905_s25 = smov (!%p266_p3, %s570_s25), 1  ;;  %v613_v1 = vmov 128.0   ;;  %v341_v2 = vld [vmem:[%s899_s3 + $0xe0] sm:$0xff]  ;;  %v343_v3 = vld [vmem:[%s899_s3 + $0xf0] sm:$0xff]  ;;  %v342_v4 = vld [vmem:[%s899_s3 + $0xe8] sm:$0xff] }
   0xc   : > { %s575_s26 = sshll.u32 %s905_s25, 3  ;;  %593 = vrcp.f32 %v613_v1  ;;  %v359_v5 = vpack.c.bf16 %v343_v3, %v341_v2  ;;  %v344_v6 = vld [vmem:[%s899_s3 + $0xf8] sm:$0xff]  ;;  %v337_v18 = vld [vmem:[%s899_s3 + $0xc0] sm:$0xff]  ;;  %v339_v19 = vld [vmem:[%s899_s3 + $0xd0] sm:$0xff] }
   0xd   : > { %s269_s29 = scalar_lea.vmem %s896_s0, %s575_s26  ;;  %v360_v7 = vpack.c.bf16 %v344_v6, %v342_v4  ;;  %v338_v20 = vld [vmem:[%s899_s3 + $0xc8] sm:$0xff]  ;;  %v357_v21 = vpack.c.bf16 %v339_v19, %v337_v18  ;;  %v340_v22 = vld [vmem:[%s899_s3 + $0xd8] sm:$0xff]  ;;  %v333_v24 = vld [vmem:[%s899_s3 + $0xa0] sm:$0xff]  ;;  %s273_s28 = scalar_lea.vmem %s903_s7, %s575_s26 }
   0xe   : > { %v670_v0 = vld [vmem:[%s269_s29] sm:$0xff]  ;;  %367 = vmatpush.bf16.msra.mxu0 %v359_v5  ;;  %v358_v23 = vpack.c.bf16 %v340_v22, %v338_v20  ;;  %v335_v25 = vld [vmem:[%s899_s3 + $0xb0] sm:$0xff]  ;;  %v334_v26 = vld [vmem:[%s899_s3 + $0xa8] sm:$0xff] }
   0xf   : > { %277 = vadd.xlane.f32.xlu0 %v670_v0  ;;  %380 = vmatpush.bf16.msra.mxu1 %v360_v7  ;;  %v355_v27 = vpack.c.bf16 %v335_v25, %v333_v24  ;;  %v336_v28 = vld [vmem:[%s899_s3 + $0xb8] sm:$0xff]  ;;  %v329_v30 = vld [vmem:[%s899_s3 + $0x80] sm:$0xff]  ;;  %v331_v31 = vld [vmem:[%s899_s3 + $0x90] sm:$0xff] }
  0x10   : > { %v356_v29 = vpack.c.bf16 %v336_v28, %v334_v26  ;;  %v330_v32 = vld [vmem:[%s899_s3 + $0x88] sm:$0xff]  ;;  %v353_v33 = vpack.c.bf16 %v331_v31, %v329_v30  ;;  %v332_v34 = vld [vmem:[%s899_s3 + $0x98] sm:$0xff]  ;;  %v325_v36 = vld [vmem:[%s899_s3 + $0x60] sm:$0xff] }
  0x11   : > { %v354_v35 = vpack.c.bf16 %v332_v34, %v330_v32  ;;  %v327_v37 = vld [vmem:[%s899_s3 + $0x70] sm:$0xff]  ;;  %v326_v38 = vld [vmem:[%s899_s3 + $0x68] sm:$0xff]  ;;  %v328_v40 = vld [vmem:[%s899_s3 + $0x78] sm:$0xff] }
  0x12   : > { %v594_v8 = vpop.eup %593  ;;  %368 = vmatpush.bf16.msra.mxu0 %v357_v21  ;;  %v351_v39 = vpack.c.bf16 %v327_v37, %v325_v36  ;;  %v352_v41 = vpack.c.bf16 %v328_v40, %v326_v38  ;;  %v321_v42 = vld [vmem:[%s899_s3 + $0x40] sm:$0xff]  ;;  %v323_v43 = vld [vmem:[%s899_s3 + $0x50] sm:$0xff]  ;;  %v322_v44 = vld [vmem:[%s899_s3 + $0x48] sm:$0xff] }
  0x13   : > { %v280_v9 = vmul.f32 128.0, %v594_v8  ;;  %vm284_vm0 = vweird.f32 %v594_v8  ;;  %381 = vmatpush.bf16.msra.mxu1 %v358_v23  ;;  %v349_v45 = vpack.c.bf16 %v323_v43, %v321_v42  ;;  %v324_v46 = vld [vmem:[%s899_s3 + $0x58] sm:$0xff]  ;;  %v317_v48 = vld [vmem:[%s899_s3 + $0x20] sm:$0xff]  ;;  %v319_v49 = vld [vmem:[%s899_s3 + $0x30] sm:$0xff] }
  0x14   : > { %v350_v47 = vpack.c.bf16 %v324_v46, %v322_v44  ;;  %v318_v50 = vld [vmem:[%s899_s3 + $0x28] sm:$0xff]  ;;  %v347_v51 = vpack.c.bf16 %v319_v49, %v317_v48  ;;  %v320_v52 = vld [vmem:[%s899_s3 + $0x38] sm:$0xff]  ;;  %v313_v53 = vld [vmem:[%s899_s3] sm:$0xff] }
  0x15   : > { %v281_v10 = vsub.f32 1.0, %v280_v9  ;;  %v315_v54 = vld [vmem:[%s899_s3 + $0x10] sm:$0xff]  ;;  %v348_v55 = vpack.c.bf16 %v320_v52, %v318_v50  ;;  %v314_v56 = vld [vmem:[%s899_s3 + $0x8] sm:$0xff]  ;;  %v316_v57 = vld [vmem:[%s899_s3 + $0x18] sm:$0xff] }
  0x16   : > { %369 = vmatpush.bf16.msra.mxu0 %v355_v27  ;;  %v345_v58 = vpack.c.bf16 %v315_v54, %v313_v53  ;;  %v346_v59 = vpack.c.bf16 %v316_v57, %v314_v56  ;;  %v590_v6 = vld [vmem:[%s897_s1] ss:$0 sm:$0xff]  ;;  %v450_v20 = vld [vmem:[%s901_s5 + $0x68] sm:$0xff]  ;;  %v447_v25 = vld [vmem:[%s901_s5 + $0x50] sm:$0xff] }
  0x17   : > { %v282_v11 = vmul.f32 %v594_v8, %v281_v10  ;;  %382 = vmatpush.bf16.msra.mxu1 %v356_v29  ;;  %v591_v9 = vld [vmem:[%s898_s2] ss:$0 sm:$0xff]  ;;  %v466_v23 = vld [vmem:[%s901_s5 + $0xe8] sm:$0xff]  ;;  %v448_v26 = vld [vmem:[%s901_s5 + $0x58] sm:$0xff] }
  0x18   : > { %v449_v19 = vld [vmem:[%s901_s5 + $0x60] sm:$0xff]  ;;  %v463_v27 = vld [vmem:[%s901_s5 + $0xd0] sm:$0xff]  ;;  %v474_v28 = vpack.c.bf16 %v448_v26, %v447_v25  ;;  %v464_v29 = vld [vmem:[%s901_s5 + $0xd8] sm:$0xff] }
  0x19   : > { %v283_v12 = vadd.f32 %v594_v8, %v282_v11  ;;  %v465_v21 = vld [vmem:[%s901_s5 + $0xe0] sm:$0xff]  ;;  %v475_v22 = vpack.c.bf16 %v450_v20, %v449_v19  ;;  %v482_v30 = vpack.c.bf16 %v464_v29, %v463_v27  ;;  %v446_v32 = vld [vmem:[%s901_s5 + $0x48] sm:$0xff]  ;;  %v443_v36 = vld [vmem:[%s901_s5 + $0x30] sm:$0xff] }
  0x1a   : > { %370 = vmatpush.bf16.msra.mxu0 %v353_v33  ;;  %v483_v24 = vpack.c.bf16 %v466_v23, %v465_v21  ;;  %v445_v31 = vld [vmem:[%s901_s5 + $0x40] sm:$0xff]  ;;  %v444_v37 = vld [vmem:[%s901_s5 + $0x38] sm:$0xff]  ;;  %v442_v44 = vld [vmem:[%s901_s5 + $0x28] sm:$0xff] }
  0x1b   : > { %v685_v13 = vsel %vm284_vm0, %v594_v8, %v283_v12  ;;  %383 = vmatpush.bf16.msra.mxu1 %v354_v35  ;;  %v461_v33 = vld [vmem:[%s901_s5 + $0xc0] sm:$0xff]  ;;  %v473_v34 = vpack.c.bf16 %v446_v32, %v445_v31  ;;  %v462_v35 = vld [vmem:[%s901_s5 + $0xc8] sm:$0xff]  ;;  %v460_v40 = vld [vmem:[%s901_s5 + $0xb8] sm:$0xff] }
  0x1c   : > { %v481_v38 = vpack.c.bf16 %v462_v35, %v461_v33  ;;  %v441_v43 = vld [vmem:[%s901_s5 + $0x20] sm:$0xff]  ;;  %v458_v46 = vld [vmem:[%s901_s5 + $0xa8] sm:$0xff]  ;;  %v439_v49 = vld [vmem:[%s901_s5 + $0x10] sm:$0xff] }
  0x1d   : > { %v440_v50 = vld [vmem:[%s901_s5 + $0x18] sm:$0xff]  ;;  %v361_v53 = vld [vmem:[%s900_s4] sm:$0x3]  ;;  %v438_v57 = vld [vmem:[%s901_s5 + $0x8] sm:$0xff] }
  0x1e   : > { %371 = vmatpush.bf16.msra.mxu0 %v351_v39  ;;  %v459_v39 = vld [vmem:[%s901_s5 + $0xb0] sm:$0xff]  ;;  %v456_v52 = vld [vmem:[%s901_s5 + $0x98] sm:$0xff]  ;;  %v470_v54 = vpack.c.bf16 %v440_v50, %v439_v49  ;;  %v437_v56 = vld [vmem:[%s901_s5] sm:$0xff] }
  0x1f   : > { %384 = vmatpush.bf16.msra.mxu1 %v352_v41  ;;  %v472_v41 = vpack.c.bf16 %v444_v37, %v443_v36  ;;  %v480_v42 = vpack.c.bf16 %v460_v40, %v459_v39  ;;  %v592_v39 = vld [vmem:[%s902_s6] ss:$0 sm:$0xff] }
  0x22   : > { %372 = vmatpush.bf16.msra.mxu0 %v349_v45  ;;  %v457_v45 = vld [vmem:[%s901_s5 + $0xa0] sm:$0xff] }
  0x23   : > { %385 = vmatpush.bf16.msra.mxu1 %v350_v47  ;;  %v471_v47 = vpack.c.bf16 %v442_v44, %v441_v43  ;;  %v479_v48 = vpack.c.bf16 %v458_v46, %v457_v45 }
  0x26   : > { %373 = vmatpush.bf16.msra.mxu0 %v347_v51  ;;  %v455_v51 = vld [vmem:[%s901_s5 + $0x90] sm:$0xff] }
  0x27   : > { %386 = vmatpush.bf16.msra.mxu1 %v348_v55  ;;  %v478_v55 = vpack.c.bf16 %v456_v52, %v455_v51 }
  0x2a   : > { %374 = vmatpush.bf16.msra.mxu0 %v345_v58  ;;  %v363_v58 = vperm.slane %v361_v53, 0 }
  0x2b   : > { %387 = vmatpush.bf16.msra.mxu1 %v346_v59  ;;  %v364_v59 = vperm.slane %v361_v53, 1 }
  0x82   : > { %v278_v14 = vpop.xlane.xlu0 %277 }
  0x83   : > { %v286_v15 = vmul.f32 %v685_v13, %v278_v14  ;;  %v452_v14 = vld [vmem:[%s901_s5 + $0x78] sm:$0xff] }
  0x85   : > { %v689_v16 = vsub.f32 %v670_v0, %v286_v15  ;;  %v467_v15 = vld [vmem:[%s901_s5 + $0xf0] sm:$0xff] }
  0x87   : > { %v288_v17 = vmul.f32 %v689_v16, %v689_v16 }
  0x89   : > { %289 = vadd.xlane.f32.xlu0 %v288_v17  ;;  %v468_v17 = vld [vmem:[%s901_s5 + $0xf8] sm:$0xff] }
  0x8a   : > { %v484_v18 = vpack.c.bf16 %v468_v17, %v467_v15 }
  0x8c   : > { %502 = vmatpush.bf16.msra.mxu3 %v484_v18 }
  0x90   : > { %503 = vmatpush.bf16.msra.mxu3 %v483_v24 }
  0x94   : > { %504 = vmatpush.bf16.msra.mxu3 %v482_v30 }
  0x98   : > { %505 = vmatpush.bf16.msra.mxu3 %v481_v38 }
  0x9c   : > { %506 = vmatpush.bf16.msra.mxu3 %v480_v42 }
  0xa0   : > { %507 = vmatpush.bf16.msra.mxu3 %v479_v48 }
  0xa4   : > { %508 = vmatpush.bf16.msra.mxu3 %v478_v55 }
  0xfc   : > { %v290_v60 = vpop.xlane.xlu0 %289 }
  0xfd   : > { %v291_v61 = vmul.f32 %v290_v60, %v685_v13  ;;  %v451_v13 = vld [vmem:[%s901_s5 + $0x70] sm:$0xff]  ;;  %v453_v60 = vld [vmem:[%s901_s5 + $0x80] sm:$0xff] }
  0xff   : > { %v292_v62 = vadd.f32 1e-05, %v291_v61  ;;  %v454_v61 = vld [vmem:[%s901_s5 + $0x88] sm:$0xff] }
 0x101   : > { %595 = vrsqrt.f32 %v292_v62  ;;  %vm299_vm2 = vweird.f32 %v292_v62 }
 0x107   : > { %v596_v63 = vpop.eup %595 }
 0x108   : > { %v294_v1 = vmul.f32 %v596_v63, %v292_v62  ;;  %vm300_vm1 = vweird.f32 %v596_v63  ;;  %v469_v62 = vpack.c.bf16 %v438_v57, %v437_v56 }
 0x109   : > { %vm301_vm3 = vmor %vm299_vm2, %vm300_vm1 }
 0x10a   : > { %v295_v2 = vmul.f32 %v596_v63, %v294_v1 }
 0x10c   : > { %v296_v3 = vmul.f32 0.5, %v295_v2  ;;  %v477_v2 = vpack.c.bf16 %v454_v61, %v453_v60 }
 0x10e   : > { %v297_v4 = vsub.f32 1.5, %v296_v3  ;;  %509 = vmatpush.bf16.msra.mxu3 %v477_v2 }
 0x110   : > { %v298_v5 = vmul.f32 %v596_v63, %v297_v4 }
 0x112   : > { %v302_v7 = vsel %vm301_vm3, %v596_v63, %v298_v5 }
 0x113   : > { %v303_v8 = vmul.f32 %v302_v7, %v689_v16  ;;  %v476_v16 = vpack.c.bf16 %v452_v14, %v451_v13 }
 0x115   : > { %v307_v10 = vmul.f32 %v590_v6, %v303_v8  ;;  %489 = vmatpush.bf16.msra.mxu2 %v476_v16 }
 0x117   : > { %v311_v11 = vadd.f32 %v591_v9, %v307_v10 }
 0x119   : > { %v312_v12 = vpack.c.bf16 %v311_v11, %v311_v11  ;;  %490 = vmatpush.bf16.msra.mxu2 %v475_v22 }
 0x11b   : > { %375 = vmatmul.bf16.vlgmr.msra.gmra.mxu0 %v312_v12  ;;  %388 = vmatmul.bf16.vlgmr.msra.gmra.mxu1 %v312_v12 }
 0x11d   : > { %491 = vmatpush.bf16.msra.mxu2 %v474_v28 }
 0x121   : > { %492 = vmatpush.bf16.msra.mxu2 %v473_v34 }
 0x125   : > { %493 = vmatpush.bf16.msra.mxu2 %v472_v41 }
 0x129   : > { %494 = vmatpush.bf16.msra.mxu2 %v471_v47 }
 0x12d   : > { %495 = vmatpush.bf16.msra.mxu2 %v470_v54 }
 0x131   : > { %496 = vmatpush.bf16.msra.mxu2 %v469_v62 }
 0x198   : > { %v376_v63 = vpop.f32.mrf.mxu0  ;;  %v389_v1 = vpop.f32.mrf.mxu1 }
 0x199   : > { %v377_v3 = vadd.f32 %v376_v63, %v363_v58  ;;  %v390_v4 = vadd.f32 %v389_v1, %v364_v59 }
 0x19b   : > { %v577_v5 = vmul.f32 -1.702, %v377_v3  ;;  %v578_v6 = vmul.f32 -1.702, %v390_v4 }
 0x19d   : > { %v397_v7 = vmul.f32 1.442695, %v577_v5  ;;  %v399_v8 = vmul.f32 1.442695, %v578_v6 }
 0x19f   : > { %597 = vpow2.f32 %v397_v7 }
 0x1a0   : > { %599 = vpow2.f32 %v399_v8  ;;  %v378_v9 = vpop.f32.mrf.mxu0  ;;  %v391_v10 = vpop.f32.mrf.mxu1 }
 0x1a5   : > { %v598_v11 = vpop.eup %597 }
 0x1a6   : > { %v600_v12 = vpop.eup %599  ;;  %v401_v13 = vadd.f32 1.0, %v598_v11 }
 0x1a7   : > { %v402_v14 = vadd.f32 1.0, %v600_v12 }
 0x1a8   : > { %601 = vrcp.f32 %v401_v13  ;;  %v414_v20 = vand.u32 2147483648, %v401_v13  ;;  %v412_v23 = vand.u32 2147483647, %v401_v13  ;;  %vm408_vm6 = vweird.f32 %v401_v13 }
 0x1a9   : > { %603 = vrcp.f32 %v402_v14  ;;  %v429_v24 = vand.u32 2147483648, %v402_v14  ;;  %v427_v26 = vand.u32 2147483647, %v402_v14  ;;  %vm423_vm8 = vweird.f32 %v402_v14 }
 0x1aa   : > { %v415_v28 = vor.u32 1.1754944e-38, %v414_v20  ;;  %vm413_vm9 = vcmp.eq.f32.partialorder %v412_v23, 8.507059e+37 }
 0x1ab   : > { %v430_v31 = vor.u32 1.1754944e-38, %v429_v24  ;;  %vm428_vm11 = vcmp.eq.f32.partialorder %v427_v26, 8.507059e+37 }
 0x1ae   : > { %v602_v15 = vpop.eup %601 }
 0x1af   : > { %v604_v16 = vpop.eup %603  ;;  %v404_v17 = vmul.f32 %v602_v15, %v401_v13  ;;  %vm409_vm4 = vweird.f32 %v602_v15 }
 0x1b0   : > { %v419_v18 = vmul.f32 %v604_v16, %v402_v14  ;;  %vm424_vm5 = vweird.f32 %v604_v16  ;;  %vm410_vm7 = vmor %vm408_vm6, %vm409_vm4 }
 0x1b1   : > { %v405_v19 = vsub.f32 1.0, %v404_v17  ;;  %vm425_vm10 = vmor %vm423_vm8, %vm424_vm5 }
 0x1b2   : > { %v420_v21 = vsub.f32 1.0, %v419_v18 }
 0x1b3   : > { %v406_v22 = vmul.f32 %v602_v15, %v405_v19 }
 0x1b4   : > { %v421_v25 = vmul.f32 %v604_v16, %v420_v21 }
 0x1b5   : > { %v407_v27 = vadd.f32 %v602_v15, %v406_v22 }
 0x1b6   : > { %v422_v29 = vadd.f32 %v604_v16, %v421_v25 }
 0x1b7   : > { %v411_v30 = vsel %vm410_vm7, %v602_v15, %v407_v27 }
 0x1b8   : > { %v416_v32 = vsel %vm413_vm9, %v415_v28, %v411_v30  ;;  %v426_v33 = vsel %vm425_vm10, %v604_v16, %v422_v29 }
 0x1b9   : > { %v433_v34 = vmul.f32 %v416_v32, %v377_v3  ;;  %v431_v35 = vsel %vm428_vm11, %v430_v31, %v426_v33 }
 0x1ba   : > { %v434_v36 = vmul.f32 %v431_v35, %v390_v4 }
 0x1bb   : > { %v435_v37 = vpack.c.bf16 %v433_v34, %v433_v34 }
 0x1bc   : > { %v436_v38 = vpack.c.bf16 %v434_v36, %v434_v36 }
 0x1bd   : > { %497 = vmatmul.bf16.vlgmr.msra.gmra.mxu2 %v435_v37 }
 0x1be   : > { %510 = vmatmul.bf16.vlgmr.msra.gmra.mxu3 %v436_v38 }
 0x240   : > { %v498_v40 = vpop.f32.mrf.mxu2 }
 0x241   : > { %v499_v41 = vadd.f32 %v592_v39, %v498_v40  ;;  %v511_v42 = vpop.f32.mrf.mxu3 }
 0x243   : > { %v512_v43 = vadd.f32 %v511_v42, %v499_v41 }
 0x245   : > { %v515_v44 = vadd.f32 %v512_v43, %v670_v0 }
 0x247   : > { %516 = vst [vmem:[%s273_s28] sm:$0xff] %v515_v44 }
 0x248   : > { %v500_v45 = vpop.f32.mrf.mxu2 }
 0x249   : > { %v513_v46 = vpop.f32.mrf.mxu3 }
 0x24a PF: > { %s17_s24 = sadd.s32 1, %s611_s24  }
 0x24b   : > { %p14_p4 = scmp.ge.s32.totalorder %s17_s24, 4  }
 0x24d   :  { %16 = sbr.rel (!%p14_p4) target bundleno = 1 (0x1), region = 78 }

// kernel: clip_encoder_forward.40
= control target key start
LH: loop header
LB: loop body
LE: loop exit
PB: predicated region body
PF: predicated region fallthrough
CT: control target
= control target key end

     0   :  { %v90_v2 = vmov 128.0   ;;  %s129_s0 = inlined_call_operand.vmem [shape: f32[16,128], index: 0, kind: input, shape index: {}]   ;;  %s130_s1 = inlined_call_operand.vmem [shape: f32[1,128], index: 1, kind: input, shape index: {}]   ;;  %s131_s2 = inlined_call_operand.vmem [shape: f32[1,128], index: 2, kind: input, shape index: {}]   ;;  %s132_s3 = inlined_call_operand.vmem [shape: f32[16,128], index: 3, kind: output, shape index: {}]  }
   0x1   :  { %v14_v0 = vld [vmem:[%s129_s0] sm:$0xff]  ;;  %v15_v1 = vld [vmem:[%s129_s0 + $0x8] sm:$0xff]  ;;  %84 = vrcp.f32 %v90_v2 }
   0x2   :  { %18 = vadd.xlane.f32.xlu0 %v14_v0  ;;  %v82_v31 = vld [vmem:[%s130_s1] ss:$0 sm:$0xff] }
   0x3   :  { %v83_v34 = vld [vmem:[%s131_s2] ss:$0 sm:$0xff] }
   0x7   :  { %v85_v3 = vpop.eup %84 }
   0x8   :  { %v23_v4 = vmul.f32 128.0, %v85_v3  ;;  %vm27_vm0 = vweird.f32 %v85_v3 }
   0xa   :  { %20 = vadd.xlane.f32.xlu0 %v15_v1  ;;  %v24_v5 = vsub.f32 1.0, %v23_v4 }
   0xc   :  { %v25_v6 = vmul.f32 %v85_v3, %v24_v5 }
   0xe   :  { %v26_v7 = vadd.f32 %v85_v3, %v25_v6 }
  0x10   :  { %v28_v8 = vsel %vm27_vm0, %v85_v3, %v26_v7 }
  0x75   :  { %v19_v9 = vpop.xlane.xlu0 %18 }
  0x76   :  { %v29_v10 = vmul.f32 %v28_v8, %v19_v9 }
  0x78   :  { %v31_v11 = vsub.f32 %v14_v0, %v29_v10 }
  0x7a   :  { %v33_v12 = vmul.f32 %v31_v11, %v31_v11 }
  0x7c   :  { %35 = vadd.xlane.f32.xlu1 %v33_v12 }
  0x7d   :  { %v21_v13 = vpop.xlane.xlu0 %20 }
  0x7e   :  { %v30_v14 = vmul.f32 %v28_v8, %v21_v13 }
  0x80   :  { %v32_v15 = vsub.f32 %v15_v1, %v30_v14 }
  0x82   :  { %v34_v16 = vmul.f32 %v32_v15, %v32_v15 }
  0x84   :  { %37 = vadd.xlane.f32.xlu1 %v34_v16 }
  0xef   :  { %v36_v17 = vpop.xlane.xlu1 %35 }
  0xf0   :  { %v39_v18 = vmul.f32 %v36_v17, %v28_v8 }
  0xf2   :  { %v41_v19 = vadd.f32 1e-05, %v39_v18 }
  0xf4   :  { %86 = vrsqrt.f32 %v41_v19  ;;  %vm49_vm2 = vweird.f32 %v41_v19 }
  0xf7   :  { %v38_v20 = vpop.xlane.xlu1 %37 }
  0xf8   :  { %v40_v21 = vmul.f32 %v38_v20, %v28_v8 }
  0xfa   :  { %v87_v22 = vpop.eup %86  ;;  %v42_v23 = vadd.f32 1e-05, %v40_v21 }
  0xfb   :  { %v44_v24 = vmul.f32 %v87_v22, %v41_v19  ;;  %vm50_vm1 = vweird.f32 %v87_v22 }
  0xfc   :  { %88 = vrsqrt.f32 %v42_v23  ;;  %vm51_vm3 = vmor %vm49_vm2, %vm50_vm1  ;;  %vm59_vm5 = vweird.f32 %v42_v23 }
  0xfd   :  { %v45_v25 = vmul.f32 %v87_v22, %v44_v24 }
  0xff   :  { %v46_v26 = vmul.f32 0.5, %v45_v25 }
 0x101   :  { %v47_v27 = vsub.f32 1.5, %v46_v26 }
 0x102   :  { %v89_v28 = vpop.eup %88 }
 0x103   :  { %v48_v29 = vmul.f32 %v87_v22, %v47_v27  ;;  %v54_v30 = vmul.f32 %v89_v28, %v42_v23  ;;  %vm60_vm4 = vweird.f32 %v89_v28 }
 0x104   :  { %vm61_vm6 = vmor %vm59_vm5, %vm60_vm4 }
 0x105   :  { %v52_v32 = vsel %vm51_vm3, %v87_v22, %v48_v29  ;;  %v55_v33 = vmul.f32 %v89_v28, %v54_v30 }
 0x106   :  { %v63_v35 = vmul.f32 %v52_v32, %v31_v11 }
 0x107   :  { %v56_v36 = vmul.f32 0.5, %v55_v33 }
 0x108   :  { %v68_v37 = vmul.f32 %v82_v31, %v63_v35 }
 0x109   :  { %v57_v38 = vsub.f32 1.5, %v56_v36 }
 0x10a   :  { %v73_v39 = vadd.f32 %v83_v34, %v68_v37 }
 0x10b   :  { %v58_v40 = vmul.f32 %v89_v28, %v57_v38 }
 0x10c   :  { %75 = vst [vmem:[%s132_s3] sm:$0xff] %v73_v39 }
 0x10d   :  { %v62_v41 = vsel %vm61_vm6, %v89_v28, %v58_v40 }
 0x10e   :  { %v64_v42 = vmul.f32 %v62_v41, %v32_v15 }
 0x110   :  { %v69_v43 = vmul.f32 %v82_v31, %v64_v42 }
 0x112   :  { %v74_v44 = vadd.f32 %v83_v34, %v69_v43 }
 0x114   :  { %76 = vst [vmem:[%s132_s3 + $0x8] sm:$0xff] %v74_v44 }

// kernel: clip_encoder_forward.41
= control target key start
LH: loop header
LB: loop body
LE: loop exit
PB: predicated region body
PF: predicated region fallthrough
CT: control target
= control target key end

     0   :  { %s166_s0 = inlined_call_operand.vmem [shape: f32[2,128], index: 0, kind: input, shape index: {}]   ;;  %s167_s1 = inlined_call_operand.vmem [shape: f32[128,64], index: 1, kind: input, shape index: {}]   ;;  %s168_s2 = inlined_call_operand.hbm [shape: f32[2,64], index: 2, kind: output, shape index: {}]  }
   0x1   :  { %v28_v0 = vld [vmem:[%s167_s1 + $0x70] sm:$0xff]  ;;  %v29_v1 = vld [vmem:[%s167_s1 + $0x78] sm:$0xff]  ;;  %v26_v2 = vld [vmem:[%s167_s1 + $0x60] sm:$0xff] }
   0x2   :  { %v37_v3 = vpack.c.bf16 %v29_v1, %v28_v0  ;;  %v27_v4 = vld [vmem:[%s167_s1 + $0x68] sm:$0xff]  ;;  %v24_v6 = vld [vmem:[%s167_s1 + $0x50] sm:$0xff]  ;;  %v25_v7 = vld [vmem:[%s167_s1 + $0x58] sm:$0xff] }
   0x3   :  { %v36_v5 = vpack.c.bf16 %v27_v4, %v26_v2 }
   0x4   :  { %38 = vmatpush.bf16.msra.mxu0 %v37_v3 }
   0x5   :  { %7 = vsyncpa [#allocation3], 0  ;;  %v35_v8 = vpack.c.bf16 %v25_v7, %v24_v6  ;;  %v22_v9 = vld [vmem:[%s167_s1 + $0x40] sm:$0xff]  ;;  %v23_v10 = vld [vmem:[%s167_s1 + $0x48] sm:$0xff]  ;;  %s96_s15 = smov [#allocation2]   ;;  %s60_s19 = sshll.u32 %s168_s2, 4  ;;  %s61_s19 = int_to_ptr.hbm [resolvable:$true] %s60_s19 }
   0x6   :  { %v34_v11 = vpack.c.bf16 %v23_v10, %v22_v9  ;;  %v20_v12 = vld [vmem:[%s167_s1 + $0x30] sm:$0xff]  ;;  %v21_v13 = vld [vmem:[%s167_s1 + $0x38] sm:$0xff]  ;;  %v18_v15 = vld [vmem:[%s167_s1 + $0x20] sm:$0xff]  ;;  %s58_s16 = sshll.u32 %s96_s15, 4  ;;  %vm51_vm0 = vcmask 517120   ;;  %s59_s16 = int_to_ptr.vmem [resolvable:$true] %s58_s16 }
   0x7   :  { %v33_v14 = vpack.c.bf16 %v21_v13, %v20_v12  ;;  %v19_v16 = vld [vmem:[%s167_s1 + $0x28] sm:$0xff]  ;;  %v16_v18 = vld [vmem:[%s167_s1 + $0x10] sm:$0xff]  ;;  %v17_v19 = vld [vmem:[%s167_s1 + $0x18] sm:$0xff] }
   0x8   :  { %39 = vmatpush.bf16.msra.mxu0 %v36_v5  ;;  %v32_v17 = vpack.c.bf16 %v19_v16, %v18_v15  ;;  %v31_v20 = vpack.c.bf16 %v17_v19, %v16_v18  ;;  %v14_v21 = vld [vmem:[%s167_s1] sm:$0xff]  ;;  %v15_v22 = vld [vmem:[%s167_s1 + $0x8] sm:$0xff] }
   0x9   :  { %v30_v23 = vpack.c.bf16 %v15_v22, %v14_v21  ;;  %v12_v24 = vld [vmem:[%s166_s0] sm:$0x3] }
   0xa   :  { %v13_v25 = vpack.c.bf16 %v12_v24, %v12_v24 }
   0xc   :  { %40 = vmatpush.bf16.msra.mxu0 %v35_v8 }
  0x10   :  { %41 = vmatpush.bf16.msra.mxu0 %v34_v11 }
  0x14   :  { %42 = vmatpush.bf16.msra.mxu0 %v33_v14 }
  0x18   :  { %43 = vmatpush.bf16.msra.mxu0 %v32_v17 }
  0x1c   :  { %44 = vmatpush.bf16.msra.mxu0 %v31_v20 }
  0x20   :  { %45 = vmatpush.bf16.msra.mxu0 %v30_v23 }
  0x23   :  { %46 = vmatmul.bf16.vlgmr.msra.gmra.mxu0 %v13_v25 }
  0xa0   :  { %v47_v26 = vpop.f32.mrf.mxu0 }
  0xa1   :  { %52 = vst.msk [vmem:[#allocation2] sm:$0x3] %vm51_vm0, %v47_v26 }
  0xa2   :  { %63 = dma.vmem_to_hbm [thread:$0]  %s59_s16, 32, %s61_s19, [#allocation3]  }
  0xa8   :  { %v49_v27 = vpop.f32.mrf.mxu0 }
  0xa9   :  { %94 = dma.done.wait [#allocation3], 32  }
  0xaa   :  { %95 = vsyncadd [#allocation3], 4294967264 }
  0xab   :  { %68 = vsyncpa [#allocation3], 1 }

</bundles_post_ra>
